<compile_context>
chip_gen: v7x
topology: tpu7x:2x2x1
jax: 0.10.0
libtpu: 0.0.40
codegen_flags: <defaults>
</compile_context>

<pallas_src>
import math
from functools import partial

import numpy as np
import jax
import jax.numpy as jnp
from jax.experimental import pallas as pl
from jax.experimental.pallas import tpu as pltpu

# Model hyper-parameters (match the PyTorch defaults, small run sizes).
EMB = 128           # emb_size
NHEAD = 4           # nhead
HEAD_DIM = EMB // NHEAD
FFN = 256           # dim_feedforward
NLAYERS = 2         # num_layers
MAX_SEQ = 32        # max_seq_len
VOCAB = 128         # vocab_size (lane friendly; one-hot embedding matmul relies on it being small)
LN_EPS = 1e-5
N_PER_LAYER = 12    # tensors per encoder layer handed to the kernel


def _layer_norm(x, w, b):
    mean = jnp.mean(x, axis=-1, keepdims=True)
    var = jnp.mean((x - mean) ** 2, axis=-1, keepdims=True)
    return (x - mean) * jax.lax.rsqrt(var + LN_EPS) * w + b


# ----------------------------------------------------------------------------
# Fused Pallas kernel: embedding + 2x encoder layer + LM head for BT sequences.
# ----------------------------------------------------------------------------
def fused_lm_kernel(tok_ref, emb_ref, pos_ref, *rest, bt):
    o_ref = rest[-1]
    w_refs = rest[:-1]
    fc_w_ref = w_refs[NLAYERS * N_PER_LAYER]
    fc_b_ref = w_refs[NLAYERS * N_PER_LAYER + 1]

    _, S, _ = tok_ref.shape                  # tokens block: (bt, S, 1) int32
    rows = bt * S

    # --- embedding lookup as an exact one-hot matmul (vocab=128, f32) --------
    tok = tok_ref[...]                                            # (bt, S, 1)
    vocab_iota = jax.lax.broadcasted_iota(jnp.int32, (bt, S, VOCAB), 2)
    onehot = (tok == vocab_iota).astype(jnp.float32)              # (bt, S, V)
    x = jnp.dot(onehot.reshape(rows, VOCAB), emb_ref[...],
                preferred_element_type=jnp.float32)               # (rows, E)
    x = (x.reshape(bt, S, EMB) + pos_ref[...][None]).reshape(rows, EMB)

    # --- causal mask: built once, f32, reused across layers ------------------
    row_i = jax.lax.broadcasted_iota(jnp.int32, (1, S, S), 1)
    col_i = jax.lax.broadcasted_iota(jnp.int32, (1, S, S), 2)
    mask = jnp.where(col_i > row_i, jnp.float32(-1e30), jnp.float32(0.0))

    for layer in range(NLAYERS):
        (in_w, in_b, out_w, out_b, ln1_w, ln1_b,
         w1, b1, w2, b2, ln2_w, ln2_b) = \
            w_refs[layer * N_PER_LAYER:(layer + 1) * N_PER_LAYER]

        # --- self attention (q already pre-scaled via folded weights) --------
        qkv = jnp.dot(x.astype(jnp.bfloat16), in_w[...],
                      preferred_element_type=jnp.float32) + in_b[...]
        qkv_bf = qkv.astype(jnp.bfloat16)                         # (rows, 3E)

        head_outs = []
        for h in range(NHEAD):  # 4 static iterations; each batched over all bt seqs
            lo = h * HEAD_DIM
            hi = lo + HEAD_DIM
            q = qkv_bf[:, lo:hi].reshape(bt, S, HEAD_DIM)
            k = qkv_bf[:, EMB + lo:EMB + hi].reshape(bt, S, HEAD_DIM)
            v = qkv_bf[:, 2 * EMB + lo:2 * EMB + hi].reshape(bt, S, HEAD_DIM)
            # Contract on the last dim of BOTH operands (no explicit k.T).
            s = jnp.einsum("bqd,bkd->bqk", q, k,
                           preferred_element_type=jnp.float32) + mask
            m = jnp.max(s, axis=-1, keepdims=True)
            p = jnp.exp(s - m)
            p = p * pl.reciprocal(jnp.sum(p, axis=-1, keepdims=True), approx=True)
            o = jnp.einsum("bqk,bkd->bqd", p.astype(jnp.bfloat16), v,
                           preferred_element_type=jnp.float32)
            head_outs.append(o.reshape(rows, HEAD_DIM))
        attn = jnp.concatenate(head_outs, axis=-1)                # (rows, E) f32

        # Single K=128 output projection for all heads / all sequences.
        attn = jnp.dot(attn.astype(jnp.bfloat16), out_w[...],
                       preferred_element_type=jnp.float32) + out_b[...]
        x = _layer_norm(x + attn, ln1_w[...], ln1_b[...])

        # --- feed forward (dropout is a no-op, eval semantics) ---------------
        h1 = jnp.maximum(
            jnp.dot(x.astype(jnp.bfloat16), w1[...],
                    preferred_element_type=jnp.float32) + b1[...], 0.0)
        h2 = jnp.dot(h1.astype(jnp.bfloat16), w2[...],
                     preferred_element_type=jnp.float32) + b2[...]
        x = _layer_norm(x + h2, ln2_w[...], ln2_b[...])

    # --- LM head --------------------------------------------------------------
    logits = jnp.dot(x.astype(jnp.bfloat16), fc_w_ref[...],
                     preferred_element_type=jnp.float32) + fc_b_ref[...]
    o_ref[...] = logits.reshape(o_ref.shape)


# ----------------------------------------------------------------------------
# Wrappers
# ----------------------------------------------------------------------------
def prepare_kernel_params(params):
    """One-time host prep: transpose matmul weights to (in, out), fold the
    1/sqrt(head_dim) softmax scale into the q projection, and cast matmul
    weight matrices to bf16 (biases / LN params stay f32)."""
    scale = 1.0 / math.sqrt(HEAD_DIM)

    def w16(a):
        return jnp.asarray(a, jnp.float32).T.astype(jnp.bfloat16)

    def f32(a):
        return jnp.asarray(a, jnp.float32)

    flat = []
    for lp in params["layers"]:
        in_w_t = jnp.asarray(lp["in_w"], jnp.float32).T           # (E, 3E)
        in_b = f32(lp["in_b"])                                    # (1, 3E)
        # Fold softmax scale into q columns; kernel must not rescale scores.
        in_w_t = in_w_t.at[:, :EMB].multiply(scale)
        in_b = in_b.at[:, :EMB].multiply(scale)
        flat += [in_w_t.astype(jnp.bfloat16), in_b,
                 w16(lp["out_w"]), f32(lp["out_b"]),
                 f32(lp["ln1_w"]), f32(lp["ln1_b"]),
                 w16(lp["w1"]), f32(lp["b1"]),
                 w16(lp["w2"]), f32(lp["b2"]),
                 f32(lp["ln2_w"]), f32(lp["ln2_b"])]
    flat += [w16(params["fc_w"]), f32(params["fc_b"])]
    return flat


def _choose_block_batch(B, S, target_rows=256):
    """Sequences per grid step. Aim for >=256 rows per step (256-wide MXU on
    v6e/v7x, amortizes per-step overhead); if the batch is large enough to
    split, keep >=2 grid steps so both v7x TensorCores get work."""
    bt_cap = max(1, target_rows // S)
    if B <= bt_cap:
        return B                          # one grid step with all sequences
    best = 1
    for bt in range(1, min(bt_cap, B // 2) + 1):
        if B % bt == 0:
            best = bt
    return best


def fused_lm_call(tokens, emb, pos, kernel_weights):
    B, S = tokens.shape
    V = kernel_weights[-2].shape[1]
    BT = _choose_block_batch(B, S)
    grid = (B // BT,)

    tokens3 = tokens.astype(jnp.int32).reshape(B, S, 1)   # (B,S,1): keeps int32 block (8,128)-friendly
    pos_s = pos[:S]                                       # (S, E)

    # NOTE: constant-index weight blocks are fetched once; single-buffering them
    # (pipeline_mode=pl.Buffered(1)) is optional headroom on v7x, not needed here.
    weight_specs = [pl.BlockSpec(w.shape, lambda i: (0, 0)) for w in kernel_weights]
    return pl.pallas_call(
        partial(fused_lm_kernel, bt=BT),
        out_shape=jax.ShapeDtypeStruct((B, S, V), jnp.float32),
        grid=grid,
        in_specs=[pl.BlockSpec((BT, S, 1), lambda i: (i, 0, 0)),   # tokens
                  pl.BlockSpec(emb.shape, lambda i: (0, 0)),       # embedding table
                  pl.BlockSpec(pos_s.shape, lambda i: (0, 0))]     # positional table[:S]
                 + weight_specs,
        out_specs=pl.BlockSpec((BT, S, V), lambda i: (i, 0, 0)),
        compiler_params=pltpu.CompilerParams(dimension_semantics=("parallel",)),
    )(tokens3, emb, pos_s, *kernel_weights)


def transformer_lm_forward(tokens, emb, pos, kernel_weights):
    # Whole forward (embedding gather + pos add + 2 encoder layers + LM head)
    # runs in a single fused Pallas kernel; no JAX glue ops remain.
    return fused_lm_call(tokens, emb, pos, kernel_weights)


# ----------------------------------------------------------------------------
# Deterministic parameter init (synthetic; shapes match the nn.Module,
# stored PyTorch-style as (out_features, in_features)).
# ----------------------------------------------------------------------------
def init_params(key):
    keys = iter(jax.random.split(key, 64))

    def rnd(shape, scale=0.02):
        return (scale * jax.random.normal(next(keys), shape)).astype(jnp.float32)

    params = {
        "emb": rnd((VOCAB, EMB)),
        "pos": rnd((MAX_SEQ, EMB)),
        "fc_w": rnd((VOCAB, EMB)),
        "fc_b": rnd((1, VOCAB)),
        "layers": [],
    }
    for _ in range(NLAYERS):
        params["layers"].append({
            "in_w": rnd((3 * EMB, EMB)), "in_b": rnd((1, 3 * EMB)),
            "out_w": rnd((EMB, EMB)),    "out_b": rnd((1, EMB)),
            "ln1_w": jnp.ones((1, EMB), jnp.float32),
            "ln1_b": jnp.zeros((1, EMB), jnp.float32),
            "w1": rnd((FFN, EMB)), "b1": rnd((1, FFN)),
            "w2": rnd((EMB, FFN)), "b2": rnd((1, EMB)),
            "ln2_w": jnp.ones((1, EMB), jnp.float32),
            "ln2_b": jnp.zeros((1, EMB), jnp.float32),
        })
    return params


# ----------------------------------------------------------------------------
# Pure-JAX f32 reference (same math, PyTorch semantics) for a sanity check
# ----------------------------------------------------------------------------
def _ref_encoder_layer(x, mask, lp):
    B, S, _ = x.shape
    qkv = jnp.einsum("bse,fe->bsf", x, lp["in_w"]) + lp["in_b"][0]
    q, k, v = qkv[..., :EMB], qkv[..., EMB:2 * EMB], qkv[..., 2 * EMB:]
    q = q.reshape(B, S, NHEAD, HEAD_DIM).transpose(0, 2, 1, 3)
    k = k.reshape(B, S, NHEAD, HEAD_DIM).transpose(0, 2, 1, 3)
    v = v.reshape(B, S, NHEAD, HEAD_DIM).transpose(0, 2, 1, 3)
    scores = jnp.einsum("bhqd,bhkd->bhqk", q, k) / math.sqrt(HEAD_DIM) + mask
    p = jax.nn.softmax(scores, axis=-1)
    o = jnp.einsum("bhqk,bhkd->bhqd", p, v).transpose(0, 2, 1, 3).reshape(B, S, EMB)
    o = jnp.einsum("bse,fe->bsf", o, lp["out_w"]) + lp["out_b"][0]
    x = _layer_norm(x + o, lp["ln1_w"][0], lp["ln1_b"][0])
    h = jax.nn.relu(jnp.einsum("bse,fe->bsf", x, lp["w1"]) + lp["b1"][0])
    h = jnp.einsum("bsf,ef->bse", h, lp["w2"]) + lp["b2"][0]
    return _layer_norm(x + h, lp["ln2_w"][0], lp["ln2_b"][0])


def ref_forward(tokens, params):
    B, S = tokens.shape
    x = params["emb"][tokens] + params["pos"][None, :S, :]
    idx = jnp.arange(S)
    mask = jnp.where(idx[None, :] > idx[:, None],
                     jnp.float32(-jnp.inf), jnp.float32(0.0))
    for lp in params["layers"]:
        x = _ref_encoder_layer(x, mask, lp)
    return jnp.einsum("bse,ve->bsv", x, params["fc_w"]) + params["fc_b"][0]


if __name__ == "__main__":
    key = jax.random.PRNGKey(0)
    pkey, tkey = jax.random.split(key)
    params = init_params(pkey)
    kernel_weights = prepare_kernel_params(params)     # one-time host-side prep

    B, S = 2, 8
    tokens = jax.random.randint(tkey, (B, S), 0, VOCAB, dtype=jnp.int32)

    fwd = jax.jit(transformer_lm_forward)
    logits = jax.block_until_ready(
        fwd(tokens, params["emb"], params["pos"], kernel_weights))
    assert logits.shape == (B, S, VOCAB)

    ref = jax.block_until_ready(ref_forward(tokens, params))
    # bf16 MXU operands (f32 accumulation) vs. the pure-f32 reference.
    np.testing.assert_allclose(np.asarray(logits), np.asarray(ref),
                               rtol=2e-2, atol=2e-2)

    print("KERNEL_OK")
</pallas_src>

<mosaic_0001>
module attributes {stable_mosaic.version = 11 : i64} {
  func.func @fused_lm_kernel(%arg0: i32, %arg1: memref<2x8x1xi32, #tpu.memory_space<vmem>>, %arg2: memref<128x128xf32, #tpu.memory_space<vmem>>, %arg3: memref<8x128xf32, #tpu.memory_space<vmem>>, %arg4: memref<128x384xbf16, #tpu.memory_space<vmem>>, %arg5: memref<1x384xf32, #tpu.memory_space<vmem>>, %arg6: memref<128x128xbf16, #tpu.memory_space<vmem>>, %arg7: memref<1x128xf32, #tpu.memory_space<vmem>>, %arg8: memref<1x128xf32, #tpu.memory_space<vmem>>, %arg9: memref<1x128xf32, #tpu.memory_space<vmem>>, %arg10: memref<128x256xbf16, #tpu.memory_space<vmem>>, %arg11: memref<1x256xf32, #tpu.memory_space<vmem>>, %arg12: memref<256x128xbf16, #tpu.memory_space<vmem>>, %arg13: memref<1x128xf32, #tpu.memory_space<vmem>>, %arg14: memref<1x128xf32, #tpu.memory_space<vmem>>, %arg15: memref<1x128xf32, #tpu.memory_space<vmem>>, %arg16: memref<128x384xbf16, #tpu.memory_space<vmem>>, %arg17: memref<1x384xf32, #tpu.memory_space<vmem>>, %arg18: memref<128x128xbf16, #tpu.memory_space<vmem>>, %arg19: memref<1x128xf32, #tpu.memory_space<vmem>>, %arg20: memref<1x128xf32, #tpu.memory_space<vmem>>, %arg21: memref<1x128xf32, #tpu.memory_space<vmem>>, %arg22: memref<128x256xbf16, #tpu.memory_space<vmem>>, %arg23: memref<1x256xf32, #tpu.memory_space<vmem>>, %arg24: memref<256x128xbf16, #tpu.memory_space<vmem>>, %arg25: memref<1x128xf32, #tpu.memory_space<vmem>>, %arg26: memref<1x128xf32, #tpu.memory_space<vmem>>, %arg27: memref<1x128xf32, #tpu.memory_space<vmem>>, %arg28: memref<128x128xbf16, #tpu.memory_space<vmem>>, %arg29: memref<1x128xf32, #tpu.memory_space<vmem>>, %arg30: memref<2x8x128xf32, #tpu.memory_space<vmem>>) attributes {dimension_semantics = [#tpu.dimension_semantics<parallel>], iteration_bounds = array<i64: 1>, scalar_prefetch = 0 : i64, scratch_operands = 0 : i64, tpu.core_type = #tpu.core_type<tc>, window_params = [{transform_indices = @transform_0, window_bounds = array<i64: 2, 8, 1>}, {pipeline_mode = #tpu.pipeline_mode<synchronous>, transform_indices = @transform_1, window_bounds = array<i64: 128, 128>}, {pipeline_mode = #tpu.pipeline_mode<synchronous>, transform_indices = @transform_2, window_bounds = array<i64: 8, 128>}, {pipeline_mode = #tpu.pipeline_mode<synchronous>, transform_indices = @transform_3, window_bounds = array<i64: 128, 384>}, {pipeline_mode = #tpu.pipeline_mode<synchronous>, transform_indices = @transform_4, window_bounds = array<i64: 1, 384>}, {pipeline_mode = #tpu.pipeline_mode<synchronous>, transform_indices = @transform_5, window_bounds = array<i64: 128, 128>}, {pipeline_mode = #tpu.pipeline_mode<synchronous>, transform_indices = @transform_6, window_bounds = array<i64: 1, 128>}, {pipeline_mode = #tpu.pipeline_mode<synchronous>, transform_indices = @transform_7, window_bounds = array<i64: 1, 128>}, {pipeline_mode = #tpu.pipeline_mode<synchronous>, transform_indices = @transform_8, window_bounds = array<i64: 1, 128>}, {pipeline_mode = #tpu.pipeline_mode<synchronous>, transform_indices = @transform_9, window_bounds = array<i64: 128, 256>}, {pipeline_mode = #tpu.pipeline_mode<synchronous>, transform_indices = @transform_10, window_bounds = array<i64: 1, 256>}, {pipeline_mode = #tpu.pipeline_mode<synchronous>, transform_indices = @transform_11, window_bounds = array<i64: 256, 128>}, {pipeline_mode = #tpu.pipeline_mode<synchronous>, transform_indices = @transform_12, window_bounds = array<i64: 1, 128>}, {pipeline_mode = #tpu.pipeline_mode<synchronous>, transform_indices = @transform_13, window_bounds = array<i64: 1, 128>}, {pipeline_mode = #tpu.pipeline_mode<synchronous>, transform_indices = @transform_14, window_bounds = array<i64: 1, 128>}, {pipeline_mode = #tpu.pipeline_mode<synchronous>, transform_indices = @transform_15, window_bounds = array<i64: 128, 384>}, {pipeline_mode = #tpu.pipeline_mode<synchronous>, transform_indices = @transform_16, window_bounds = array<i64: 1, 384>}, {pipeline_mode = #tpu.pipeline_mode<synchronous>, transform_indices = @transform_17, window_bounds = array<i64: 128, 128>}, {pipeline_mode = #tpu.pipeline_mode<synchronous>, transform_indices = @transform_18, window_bounds = array<i64: 1, 128>}, {pipeline_mode = #tpu.pipeline_mode<synchronous>, transform_indices = @transform_19, window_bounds = array<i64: 1, 128>}, {pipeline_mode = #tpu.pipeline_mode<synchronous>, transform_indices = @transform_20, window_bounds = array<i64: 1, 128>}, {pipeline_mode = #tpu.pipeline_mode<synchronous>, transform_indices = @transform_21, window_bounds = array<i64: 128, 256>}, {pipeline_mode = #tpu.pipeline_mode<synchronous>, transform_indices = @transform_22, window_bounds = array<i64: 1, 256>}, {pipeline_mode = #tpu.pipeline_mode<synchronous>, transform_indices = @transform_23, window_bounds = array<i64: 256, 128>}, {pipeline_mode = #tpu.pipeline_mode<synchronous>, transform_indices = @transform_24, window_bounds = array<i64: 1, 128>}, {pipeline_mode = #tpu.pipeline_mode<synchronous>, transform_indices = @transform_25, window_bounds = array<i64: 1, 128>}, {pipeline_mode = #tpu.pipeline_mode<synchronous>, transform_indices = @transform_26, window_bounds = array<i64: 1, 128>}, {pipeline_mode = #tpu.pipeline_mode<synchronous>, transform_indices = @transform_27, window_bounds = array<i64: 128, 128>}, {pipeline_mode = #tpu.pipeline_mode<synchronous>, transform_indices = @transform_28, window_bounds = array<i64: 1, 128>}, {transform_indices = @transform_29, window_bounds = array<i64: 2, 8, 128>}]} {
    %c0 = arith.constant 0 : index
    %c0_0 = arith.constant 0 : index
    %c0_1 = arith.constant 0 : index
    %0 = vector.load %arg1[%c0, %c0_0, %c0_1] : memref<2x8x1xi32, #tpu.memory_space<vmem>>, vector<2x8x1xi32>
    %1 = tpu.iota {dimensions = array<i32: 2>} : vector<2x8x128xi32>
    %2 = vector.broadcast %0 : vector<2x8x1xi32> to vector<2x8x128xi32>
    %3 = arith.cmpi eq, %2, %1 : vector<2x8x128xi32>
    %4 = arith.extui %3 : vector<2x8x128xi1> to vector<2x8x128xi32>
    %5 = arith.sitofp %4 : vector<2x8x128xi32> to vector<2x8x128xf32>
    %6 = vector.shape_cast %5 : vector<2x8x128xf32> to vector<16x128xf32>
    %c0_2 = arith.constant 0 : index
    %c0_3 = arith.constant 0 : index
    %7 = vector.load %arg2[%c0_2, %c0_3] : memref<128x128xf32, #tpu.memory_space<vmem>>, vector<128x128xf32>
    %cst = arith.constant dense<0.000000e+00> : vector<16x128xf32>
    %8 = tpu.matmul %6, %7, %cst {dimension_numbers = #tpu.dot_dimension_numbers<[1], [0], [0], [1], [0, 0, 1, 1], [], []>} : vector<16x128xf32>, vector<128x128xf32>, vector<16x128xf32> -> vector<16x128xf32>
    %9 = vector.shape_cast %8 : vector<16x128xf32> to vector<2x8x128xf32>
    %c0_4 = arith.constant 0 : index
    %c0_5 = arith.constant 0 : index
    %10 = vector.load %arg3[%c0_4, %c0_5] : memref<8x128xf32, #tpu.memory_space<vmem>>, vector<8x128xf32>
    %11 = vector.shape_cast %10 : vector<8x128xf32> to vector<1x8x128xf32>
    %12 = vector.broadcast %11 : vector<1x8x128xf32> to vector<2x8x128xf32>
    %13 = arith.addf %9, %12 : vector<2x8x128xf32>
    %14 = vector.shape_cast %13 : vector<2x8x128xf32> to vector<16x128xf32>
    %15 = tpu.iota {dimensions = array<i32: 1>} : vector<1x8x8xi32>
    %16 = tpu.iota {dimensions = array<i32: 2>} : vector<1x8x8xi32>
    %17 = arith.cmpi sgt, %16, %15 : vector<1x8x8xi32>
    %cst_6 = arith.constant -1.000000e+30 : f32
    %cst_7 = arith.constant 0.000000e+00 : f32
    %18 = vector.broadcast %cst_6 : f32 to vector<1x8x8xf32>
    %19 = vector.broadcast %cst_7 : f32 to vector<1x8x8xf32>
    %20 = arith.select %17, %18, %19 : vector<1x8x8xi1>, vector<1x8x8xf32>
    %21 = arith.truncf %14 : vector<16x128xf32> to vector<16x128xbf16>
    %c0_8 = arith.constant 0 : index
    %c0_9 = arith.constant 0 : index
    %22 = vector.load %arg4[%c0_8, %c0_9] : memref<128x384xbf16, #tpu.memory_space<vmem>>, vector<128x384xbf16>
    %cst_10 = arith.constant dense<0.000000e+00> : vector<16x384xf32>
    %23 = tpu.matmul %21, %22, %cst_10 {dimension_numbers = #tpu.dot_dimension_numbers<[1], [0], [0], [1], [0, 0, 1, 1], [], []>} : vector<16x128xbf16>, vector<128x384xbf16>, vector<16x384xf32> -> vector<16x384xf32>
    %c0_11 = arith.constant 0 : index
    %c0_12 = arith.constant 0 : index
    %24 = vector.load %arg5[%c0_11, %c0_12] : memref<1x384xf32, #tpu.memory_space<vmem>>, vector<1x384xf32>
    %25 = vector.broadcast %24 : vector<1x384xf32> to vector<16x384xf32>
    %26 = arith.addf %23, %25 : vector<16x384xf32>
    %27 = arith.truncf %26 : vector<16x384xf32> to vector<16x384xbf16>
    %28 = vector.extract_strided_slice %27 {offsets = [0, 0], sizes = [16, 32], strides = [1, 1]} : vector<16x384xbf16> to vector<16x32xbf16>
    %29 = vector.shape_cast %28 : vector<16x32xbf16> to vector<2x8x32xbf16>
    %30 = vector.extract_strided_slice %27 {offsets = [0, 128], sizes = [16, 32], strides = [1, 1]} : vector<16x384xbf16> to vector<16x32xbf16>
    %31 = vector.shape_cast %30 : vector<16x32xbf16> to vector<2x8x32xbf16>
    %32 = vector.extract_strided_slice %27 {offsets = [0, 256], sizes = [16, 32], strides = [1, 1]} : vector<16x384xbf16> to vector<16x32xbf16>
    %33 = vector.shape_cast %32 : vector<16x32xbf16> to vector<2x8x32xbf16>
    "tpu.trace_start"() <{level = 10 : i32, message = "bqd,bkd->bqk"}> : () -> ()
    %cst_13 = arith.constant dense<0.000000e+00> : vector<2x8x8xf32>
    %34 = tpu.matmul %29, %31, %cst_13 {dimension_numbers = #tpu.dot_dimension_numbers<[2], [2], [1], [1], [0, 0, 0, 1, 1, 1], [0], [0]>} : vector<2x8x32xbf16>, vector<2x8x32xbf16>, vector<2x8x8xf32> -> vector<2x8x8xf32>
    "tpu.trace_stop"() : () -> ()
    %35 = vector.broadcast %20 : vector<1x8x8xf32> to vector<2x8x8xf32>
    %36 = arith.addf %34, %35 : vector<2x8x8xf32>
    %cst_14 = arith.constant dense<0xFF800000> : vector<2x8xf32>
    %37 = vector.multi_reduction <maximumf>, %36, %cst_14 [2] : vector<2x8x8xf32> to vector<2x8xf32>
    %38 = vector.shape_cast %37 : vector<2x8xf32> to vector<2x8x1xf32>
    %39 = vector.broadcast %38 : vector<2x8x1xf32> to vector<2x8x8xf32>
    %40 = arith.subf %36, %39 : vector<2x8x8xf32>
    %41 = math.exp %40 : vector<2x8x8xf32>
    %cst_15 = arith.constant dense<0.000000e+00> : vector<2x8xf32>
    %42 = vector.multi_reduction <add>, %41, %cst_15 [2] : vector<2x8x8xf32> to vector<2x8xf32>
    %43 = vector.shape_cast %42 : vector<2x8xf32> to vector<2x8x1xf32>
    %44 = tpu.reciprocal %43 {approx = true} : vector<2x8x1xf32> -> vector<2x8x1xf32>
    %45 = vector.broadcast %44 : vector<2x8x1xf32> to vector<2x8x8xf32>
    %46 = arith.mulf %41, %45 : vector<2x8x8xf32>
    %47 = arith.truncf %46 : vector<2x8x8xf32> to vector<2x8x8xbf16>
    "tpu.trace_start"() <{level = 10 : i32, message = "bqk,bkd->bqd"}> : () -> ()
    %cst_16 = arith.constant dense<0.000000e+00> : vector<2x8x32xf32>
    %48 = tpu.matmul %47, %33, %cst_16 {dimension_numbers = #tpu.dot_dimension_numbers<[2], [1], [1], [2], [0, 0, 0, 1, 1, 2], [0], [0]>} : vector<2x8x8xbf16>, vector<2x8x32xbf16>, vector<2x8x32xf32> -> vector<2x8x32xf32>
    "tpu.trace_stop"() : () -> ()
    %49 = vector.shape_cast %48 : vector<2x8x32xf32> to vector<16x32xf32>
    %50 = vector.extract_strided_slice %27 {offsets = [0, 32], sizes = [16, 32], strides = [1, 1]} : vector<16x384xbf16> to vector<16x32xbf16>
    %51 = vector.shape_cast %50 : vector<16x32xbf16> to vector<2x8x32xbf16>
    %52 = vector.extract_strided_slice %27 {offsets = [0, 160], sizes = [16, 32], strides = [1, 1]} : vector<16x384xbf16> to vector<16x32xbf16>
    %53 = vector.shape_cast %52 : vector<16x32xbf16> to vector<2x8x32xbf16>
    %54 = vector.extract_strided_slice %27 {offsets = [0, 288], sizes = [16, 32], strides = [1, 1]} : vector<16x384xbf16> to vector<16x32xbf16>
    %55 = vector.shape_cast %54 : vector<16x32xbf16> to vector<2x8x32xbf16>
    "tpu.trace_start"() <{level = 10 : i32, message = "bqd,bkd->bqk"}> : () -> ()
    %cst_17 = arith.constant dense<0.000000e+00> : vector<2x8x8xf32>
    %56 = tpu.matmul %51, %53, %cst_17 {dimension_numbers = #tpu.dot_dimension_numbers<[2], [2], [1], [1], [0, 0, 0, 1, 1, 1], [0], [0]>} : vector<2x8x32xbf16>, vector<2x8x32xbf16>, vector<2x8x8xf32> -> vector<2x8x8xf32>
    "tpu.trace_stop"() : () -> ()
    %57 = vector.broadcast %20 : vector<1x8x8xf32> to vector<2x8x8xf32>
    %58 = arith.addf %56, %57 : vector<2x8x8xf32>
    %cst_18 = arith.constant dense<0xFF800000> : vector<2x8xf32>
    %59 = vector.multi_reduction <maximumf>, %58, %cst_18 [2] : vector<2x8x8xf32> to vector<2x8xf32>
    %60 = vector.shape_cast %59 : vector<2x8xf32> to vector<2x8x1xf32>
    %61 = vector.broadcast %60 : vector<2x8x1xf32> to vector<2x8x8xf32>
    %62 = arith.subf %58, %61 : vector<2x8x8xf32>
    %63 = math.exp %62 : vector<2x8x8xf32>
    %cst_19 = arith.constant dense<0.000000e+00> : vector<2x8xf32>
    %64 = vector.multi_reduction <add>, %63, %cst_19 [2] : vector<2x8x8xf32> to vector<2x8xf32>
    %65 = vector.shape_cast %64 : vector<2x8xf32> to vector<2x8x1xf32>
    %66 = tpu.reciprocal %65 {approx = true} : vector<2x8x1xf32> -> vector<2x8x1xf32>
    %67 = vector.broadcast %66 : vector<2x8x1xf32> to vector<2x8x8xf32>
    %68 = arith.mulf %63, %67 : vector<2x8x8xf32>
    %69 = arith.truncf %68 : vector<2x8x8xf32> to vector<2x8x8xbf16>
    "tpu.trace_start"() <{level = 10 : i32, message = "bqk,bkd->bqd"}> : () -> ()
    %cst_20 = arith.constant dense<0.000000e+00> : vector<2x8x32xf32>
    %70 = tpu.matmul %69, %55, %cst_20 {dimension_numbers = #tpu.dot_dimension_numbers<[2], [1], [1], [2], [0, 0, 0, 1, 1, 2], [0], [0]>} : vector<2x8x8xbf16>, vector<2x8x32xbf16>, vector<2x8x32xf32> -> vector<2x8x32xf32>
    "tpu.trace_stop"() : () -> ()
    %71 = vector.shape_cast %70 : vector<2x8x32xf32> to vector<16x32xf32>
    %72 = vector.extract_strided_slice %27 {offsets = [0, 64], sizes = [16, 32], strides = [1, 1]} : vector<16x384xbf16> to vector<16x32xbf16>
    %73 = vector.shape_cast %72 : vector<16x32xbf16> to vector<2x8x32xbf16>
    %74 = vector.extract_strided_slice %27 {offsets = [0, 192], sizes = [16, 32], strides = [1, 1]} : vector<16x384xbf16> to vector<16x32xbf16>
    %75 = vector.shape_cast %74 : vector<16x32xbf16> to vector<2x8x32xbf16>
    %76 = vector.extract_strided_slice %27 {offsets = [0, 320], sizes = [16, 32], strides = [1, 1]} : vector<16x384xbf16> to vector<16x32xbf16>
    %77 = vector.shape_cast %76 : vector<16x32xbf16> to vector<2x8x32xbf16>
    "tpu.trace_start"() <{level = 10 : i32, message = "bqd,bkd->bqk"}> : () -> ()
    %cst_21 = arith.constant dense<0.000000e+00> : vector<2x8x8xf32>
    %78 = tpu.matmul %73, %75, %cst_21 {dimension_numbers = #tpu.dot_dimension_numbers<[2], [2], [1], [1], [0, 0, 0, 1, 1, 1], [0], [0]>} : vector<2x8x32xbf16>, vector<2x8x32xbf16>, vector<2x8x8xf32> -> vector<2x8x8xf32>
    "tpu.trace_stop"() : () -> ()
    %79 = vector.broadcast %20 : vector<1x8x8xf32> to vector<2x8x8xf32>
    %80 = arith.addf %78, %79 : vector<2x8x8xf32>
    %cst_22 = arith.constant dense<0xFF800000> : vector<2x8xf32>
    %81 = vector.multi_reduction <maximumf>, %80, %cst_22 [2] : vector<2x8x8xf32> to vector<2x8xf32>
    %82 = vector.shape_cast %81 : vector<2x8xf32> to vector<2x8x1xf32>
    %83 = vector.broadcast %82 : vector<2x8x1xf32> to vector<2x8x8xf32>
    %84 = arith.subf %80, %83 : vector<2x8x8xf32>
    %85 = math.exp %84 : vector<2x8x8xf32>
    %cst_23 = arith.constant dense<0.000000e+00> : vector<2x8xf32>
    %86 = vector.multi_reduction <add>, %85, %cst_23 [2] : vector<2x8x8xf32> to vector<2x8xf32>
    %87 = vector.shape_cast %86 : vector<2x8xf32> to vector<2x8x1xf32>
    %88 = tpu.reciprocal %87 {approx = true} : vector<2x8x1xf32> -> vector<2x8x1xf32>
    %89 = vector.broadcast %88 : vector<2x8x1xf32> to vector<2x8x8xf32>
    %90 = arith.mulf %85, %89 : vector<2x8x8xf32>
    %91 = arith.truncf %90 : vector<2x8x8xf32> to vector<2x8x8xbf16>
    "tpu.trace_start"() <{level = 10 : i32, message = "bqk,bkd->bqd"}> : () -> ()
    %cst_24 = arith.constant dense<0.000000e+00> : vector<2x8x32xf32>
    %92 = tpu.matmul %91, %77, %cst_24 {dimension_numbers = #tpu.dot_dimension_numbers<[2], [1], [1], [2], [0, 0, 0, 1, 1, 2], [0], [0]>} : vector<2x8x8xbf16>, vector<2x8x32xbf16>, vector<2x8x32xf32> -> vector<2x8x32xf32>
    "tpu.trace_stop"() : () -> ()
    %93 = vector.shape_cast %92 : vector<2x8x32xf32> to vector<16x32xf32>
    %94 = vector.extract_strided_slice %27 {offsets = [0, 96], sizes = [16, 32], strides = [1, 1]} : vector<16x384xbf16> to vector<16x32xbf16>
    %95 = vector.shape_cast %94 : vector<16x32xbf16> to vector<2x8x32xbf16>
    %96 = vector.extract_strided_slice %27 {offsets = [0, 224], sizes = [16, 32], strides = [1, 1]} : vector<16x384xbf16> to vector<16x32xbf16>
    %97 = vector.shape_cast %96 : vector<16x32xbf16> to vector<2x8x32xbf16>
    %98 = vector.extract_strided_slice %27 {offsets = [0, 352], sizes = [16, 32], strides = [1, 1]} : vector<16x384xbf16> to vector<16x32xbf16>
    %99 = vector.shape_cast %98 : vector<16x32xbf16> to vector<2x8x32xbf16>
    "tpu.trace_start"() <{level = 10 : i32, message = "bqd,bkd->bqk"}> : () -> ()
    %cst_25 = arith.constant dense<0.000000e+00> : vector<2x8x8xf32>
    %100 = tpu.matmul %95, %97, %cst_25 {dimension_numbers = #tpu.dot_dimension_numbers<[2], [2], [1], [1], [0, 0, 0, 1, 1, 1], [0], [0]>} : vector<2x8x32xbf16>, vector<2x8x32xbf16>, vector<2x8x8xf32> -> vector<2x8x8xf32>
    "tpu.trace_stop"() : () -> ()
    %101 = vector.broadcast %20 : vector<1x8x8xf32> to vector<2x8x8xf32>
    %102 = arith.addf %100, %101 : vector<2x8x8xf32>
    %cst_26 = arith.constant dense<0xFF800000> : vector<2x8xf32>
    %103 = vector.multi_reduction <maximumf>, %102, %cst_26 [2] : vector<2x8x8xf32> to vector<2x8xf32>
    %104 = vector.shape_cast %103 : vector<2x8xf32> to vector<2x8x1xf32>
    %105 = vector.broadcast %104 : vector<2x8x1xf32> to vector<2x8x8xf32>
    %106 = arith.subf %102, %105 : vector<2x8x8xf32>
    %107 = math.exp %106 : vector<2x8x8xf32>
    %cst_27 = arith.constant dense<0.000000e+00> : vector<2x8xf32>
    %108 = vector.multi_reduction <add>, %107, %cst_27 [2] : vector<2x8x8xf32> to vector<2x8xf32>
    %109 = vector.shape_cast %108 : vector<2x8xf32> to vector<2x8x1xf32>
    %110 = tpu.reciprocal %109 {approx = true} : vector<2x8x1xf32> -> vector<2x8x1xf32>
    %111 = vector.broadcast %110 : vector<2x8x1xf32> to vector<2x8x8xf32>
    %112 = arith.mulf %107, %111 : vector<2x8x8xf32>
    %113 = arith.truncf %112 : vector<2x8x8xf32> to vector<2x8x8xbf16>
    "tpu.trace_start"() <{level = 10 : i32, message = "bqk,bkd->bqd"}> : () -> ()
    %cst_28 = arith.constant dense<0.000000e+00> : vector<2x8x32xf32>
    %114 = tpu.matmul %113, %99, %cst_28 {dimension_numbers = #tpu.dot_dimension_numbers<[2], [1], [1], [2], [0, 0, 0, 1, 1, 2], [0], [0]>} : vector<2x8x8xbf16>, vector<2x8x32xbf16>, vector<2x8x32xf32> -> vector<2x8x32xf32>
    "tpu.trace_stop"() : () -> ()
    %115 = vector.shape_cast %114 : vector<2x8x32xf32> to vector<16x32xf32>
    %116 = tpu.concatenate %49, %71, %93, %115 in 1 : vector<16x32xf32>, vector<16x32xf32>, vector<16x32xf32>, vector<16x32xf32> -> vector<16x128xf32>
    %117 = arith.truncf %116 : vector<16x128xf32> to vector<16x128xbf16>
    %c0_29 = arith.constant 0 : index
    %c0_30 = arith.constant 0 : index
    %118 = vector.load %arg6[%c0_29, %c0_30] : memref<128x128xbf16, #tpu.memory_space<vmem>>, vector<128x128xbf16>
    %cst_31 = arith.constant dense<0.000000e+00> : vector<16x128xf32>
    %119 = tpu.matmul %117, %118, %cst_31 {dimension_numbers = #tpu.dot_dimension_numbers<[1], [0], [0], [1], [0, 0, 1, 1], [], []>} : vector<16x128xbf16>, vector<128x128xbf16>, vector<16x128xf32> -> vector<16x128xf32>
    %c0_32 = arith.constant 0 : index
    %c0_33 = arith.constant 0 : index
    %120 = vector.load %arg7[%c0_32, %c0_33] : memref<1x128xf32, #tpu.memory_space<vmem>>, vector<1x128xf32>
    %121 = vector.broadcast %120 : vector<1x128xf32> to vector<16x128xf32>
    %122 = arith.addf %119, %121 : vector<16x128xf32>
    %123 = arith.addf %14, %122 : vector<16x128xf32>
    %c0_34 = arith.constant 0 : index
    %c0_35 = arith.constant 0 : index
    %124 = vector.load %arg8[%c0_34, %c0_35] : memref<1x128xf32, #tpu.memory_space<vmem>>, vector<1x128xf32>
    %c0_36 = arith.constant 0 : index
    %c0_37 = arith.constant 0 : index
    %125 = vector.load %arg9[%c0_36, %c0_37] : memref<1x128xf32, #tpu.memory_space<vmem>>, vector<1x128xf32>
    %cst_38 = arith.constant dense<0.000000e+00> : vector<16xf32>
    %126 = vector.multi_reduction <add>, %123, %cst_38 [1] : vector<16x128xf32> to vector<16xf32>
    %127 = vector.shape_cast %126 : vector<16xf32> to vector<16x1xf32>
    %cst_39 = arith.constant 1.280000e+02 : f32
    %128 = vector.broadcast %cst_39 : f32 to vector<16x1xf32>
    %129 = arith.divf %127, %128 : vector<16x1xf32>
    %130 = vector.broadcast %129 : vector<16x1xf32> to vector<16x128xf32>
    %131 = arith.subf %123, %130 : vector<16x128xf32>
    %132 = arith.mulf %131, %131 : vector<16x128xf32>
    %cst_40 = arith.constant dense<0.000000e+00> : vector<16xf32>
    %133 = vector.multi_reduction <add>, %132, %cst_40 [1] : vector<16x128xf32> to vector<16xf32>
    %134 = vector.shape_cast %133 : vector<16xf32> to vector<16x1xf32>
    %cst_41 = arith.constant 1.280000e+02 : f32
    %135 = vector.broadcast %cst_41 : f32 to vector<16x1xf32>
    %136 = arith.divf %134, %135 : vector<16x1xf32>
    %137 = vector.broadcast %129 : vector<16x1xf32> to vector<16x128xf32>
    %138 = arith.subf %123, %137 : vector<16x128xf32>
    %cst_42 = arith.constant 9.99999974E-6 : f32
    %139 = vector.broadcast %cst_42 : f32 to vector<16x1xf32>
    %140 = arith.addf %136, %139 : vector<16x1xf32>
    %141 = math.rsqrt %140 : vector<16x1xf32>
    %142 = vector.broadcast %141 : vector<16x1xf32> to vector<16x128xf32>
    %143 = arith.mulf %138, %142 : vector<16x128xf32>
    %144 = vector.broadcast %124 : vector<1x128xf32> to vector<16x128xf32>
    %145 = arith.mulf %143, %144 : vector<16x128xf32>
    %146 = vector.broadcast %125 : vector<1x128xf32> to vector<16x128xf32>
    %147 = arith.addf %145, %146 : vector<16x128xf32>
    %148 = arith.truncf %147 : vector<16x128xf32> to vector<16x128xbf16>
    %c0_43 = arith.constant 0 : index
    %c0_44 = arith.constant 0 : index
    %149 = vector.load %arg10[%c0_43, %c0_44] : memref<128x256xbf16, #tpu.memory_space<vmem>>, vector<128x256xbf16>
    %cst_45 = arith.constant dense<0.000000e+00> : vector<16x256xf32>
    %150 = tpu.matmul %148, %149, %cst_45 {dimension_numbers = #tpu.dot_dimension_numbers<[1], [0], [0], [1], [0, 0, 1, 1], [], []>} : vector<16x128xbf16>, vector<128x256xbf16>, vector<16x256xf32> -> vector<16x256xf32>
    %c0_46 = arith.constant 0 : index
    %c0_47 = arith.constant 0 : index
    %151 = vector.load %arg11[%c0_46, %c0_47] : memref<1x256xf32, #tpu.memory_space<vmem>>, vector<1x256xf32>
    %152 = vector.broadcast %151 : vector<1x256xf32> to vector<16x256xf32>
    %153 = arith.addf %150, %152 : vector<16x256xf32>
    %cst_48 = arith.constant 0.000000e+00 : f32
    %154 = vector.broadcast %cst_48 : f32 to vector<16x256xf32>
    %155 = arith.maximumf %153, %154 : vector<16x256xf32>
    %156 = arith.truncf %155 : vector<16x256xf32> to vector<16x256xbf16>
    %c0_49 = arith.constant 0 : index
    %c0_50 = arith.constant 0 : index
    %157 = vector.load %arg12[%c0_49, %c0_50] : memref<256x128xbf16, #tpu.memory_space<vmem>>, vector<256x128xbf16>
    %cst_51 = arith.constant dense<0.000000e+00> : vector<16x128xf32>
    %158 = tpu.matmul %156, %157, %cst_51 {dimension_numbers = #tpu.dot_dimension_numbers<[1], [0], [0], [1], [0, 0, 1, 1], [], []>} : vector<16x256xbf16>, vector<256x128xbf16>, vector<16x128xf32> -> vector<16x128xf32>
    %c0_52 = arith.constant 0 : index
    %c0_53 = arith.constant 0 : index
    %159 = vector.load %arg13[%c0_52, %c0_53] : memref<1x128xf32, #tpu.memory_space<vmem>>, vector<1x128xf32>
    %160 = vector.broadcast %159 : vector<1x128xf32> to vector<16x128xf32>
    %161 = arith.addf %158, %160 : vector<16x128xf32>
    %162 = arith.addf %147, %161 : vector<16x128xf32>
    %c0_54 = arith.constant 0 : index
    %c0_55 = arith.constant 0 : index
    %163 = vector.load %arg14[%c0_54, %c0_55] : memref<1x128xf32, #tpu.memory_space<vmem>>, vector<1x128xf32>
    %c0_56 = arith.constant 0 : index
    %c0_57 = arith.constant 0 : index
    %164 = vector.load %arg15[%c0_56, %c0_57] : memref<1x128xf32, #tpu.memory_space<vmem>>, vector<1x128xf32>
    %cst_58 = arith.constant dense<0.000000e+00> : vector<16xf32>
    %165 = vector.multi_reduction <add>, %162, %cst_58 [1] : vector<16x128xf32> to vector<16xf32>
    %166 = vector.shape_cast %165 : vector<16xf32> to vector<16x1xf32>
    %cst_59 = arith.constant 1.280000e+02 : f32
    %167 = vector.broadcast %cst_59 : f32 to vector<16x1xf32>
    %168 = arith.divf %166, %167 : vector<16x1xf32>
    %169 = vector.broadcast %168 : vector<16x1xf32> to vector<16x128xf32>
    %170 = arith.subf %162, %169 : vector<16x128xf32>
    %171 = arith.mulf %170, %170 : vector<16x128xf32>
    %cst_60 = arith.constant dense<0.000000e+00> : vector<16xf32>
    %172 = vector.multi_reduction <add>, %171, %cst_60 [1] : vector<16x128xf32> to vector<16xf32>
    %173 = vector.shape_cast %172 : vector<16xf32> to vector<16x1xf32>
    %cst_61 = arith.constant 1.280000e+02 : f32
    %174 = vector.broadcast %cst_61 : f32 to vector<16x1xf32>
    %175 = arith.divf %173, %174 : vector<16x1xf32>
    %176 = vector.broadcast %168 : vector<16x1xf32> to vector<16x128xf32>
    %177 = arith.subf %162, %176 : vector<16x128xf32>
    %cst_62 = arith.constant 9.99999974E-6 : f32
    %178 = vector.broadcast %cst_62 : f32 to vector<16x1xf32>
    %179 = arith.addf %175, %178 : vector<16x1xf32>
    %180 = math.rsqrt %179 : vector<16x1xf32>
    %181 = vector.broadcast %180 : vector<16x1xf32> to vector<16x128xf32>
    %182 = arith.mulf %177, %181 : vector<16x128xf32>
    %183 = vector.broadcast %163 : vector<1x128xf32> to vector<16x128xf32>
    %184 = arith.mulf %182, %183 : vector<16x128xf32>
    %185 = vector.broadcast %164 : vector<1x128xf32> to vector<16x128xf32>
    %186 = arith.addf %184, %185 : vector<16x128xf32>
    %187 = arith.truncf %186 : vector<16x128xf32> to vector<16x128xbf16>
    %c0_63 = arith.constant 0 : index
    %c0_64 = arith.constant 0 : index
    %188 = vector.load %arg16[%c0_63, %c0_64] : memref<128x384xbf16, #tpu.memory_space<vmem>>, vector<128x384xbf16>
    %cst_65 = arith.constant dense<0.000000e+00> : vector<16x384xf32>
    %189 = tpu.matmul %187, %188, %cst_65 {dimension_numbers = #tpu.dot_dimension_numbers<[1], [0], [0], [1], [0, 0, 1, 1], [], []>} : vector<16x128xbf16>, vector<128x384xbf16>, vector<16x384xf32> -> vector<16x384xf32>
    %c0_66 = arith.constant 0 : index
    %c0_67 = arith.constant 0 : index
    %190 = vector.load %arg17[%c0_66, %c0_67] : memref<1x384xf32, #tpu.memory_space<vmem>>, vector<1x384xf32>
    %191 = vector.broadcast %190 : vector<1x384xf32> to vector<16x384xf32>
    %192 = arith.addf %189, %191 : vector<16x384xf32>
    %193 = arith.truncf %192 : vector<16x384xf32> to vector<16x384xbf16>
    %194 = vector.extract_strided_slice %193 {offsets = [0, 0], sizes = [16, 32], strides = [1, 1]} : vector<16x384xbf16> to vector<16x32xbf16>
    %195 = vector.shape_cast %194 : vector<16x32xbf16> to vector<2x8x32xbf16>
    %196 = vector.extract_strided_slice %193 {offsets = [0, 128], sizes = [16, 32], strides = [1, 1]} : vector<16x384xbf16> to vector<16x32xbf16>
    %197 = vector.shape_cast %196 : vector<16x32xbf16> to vector<2x8x32xbf16>
    %198 = vector.extract_strided_slice %193 {offsets = [0, 256], sizes = [16, 32], strides = [1, 1]} : vector<16x384xbf16> to vector<16x32xbf16>
    %199 = vector.shape_cast %198 : vector<16x32xbf16> to vector<2x8x32xbf16>
    "tpu.trace_start"() <{level = 10 : i32, message = "bqd,bkd->bqk"}> : () -> ()
    %cst_68 = arith.constant dense<0.000000e+00> : vector<2x8x8xf32>
    %200 = tpu.matmul %195, %197, %cst_68 {dimension_numbers = #tpu.dot_dimension_numbers<[2], [2], [1], [1], [0, 0, 0, 1, 1, 1], [0], [0]>} : vector<2x8x32xbf16>, vector<2x8x32xbf16>, vector<2x8x8xf32> -> vector<2x8x8xf32>
    "tpu.trace_stop"() : () -> ()
    %201 = vector.broadcast %20 : vector<1x8x8xf32> to vector<2x8x8xf32>
    %202 = arith.addf %200, %201 : vector<2x8x8xf32>
    %cst_69 = arith.constant dense<0xFF800000> : vector<2x8xf32>
    %203 = vector.multi_reduction <maximumf>, %202, %cst_69 [2] : vector<2x8x8xf32> to vector<2x8xf32>
    %204 = vector.shape_cast %203 : vector<2x8xf32> to vector<2x8x1xf32>
    %205 = vector.broadcast %204 : vector<2x8x1xf32> to vector<2x8x8xf32>
    %206 = arith.subf %202, %205 : vector<2x8x8xf32>
    %207 = math.exp %206 : vector<2x8x8xf32>
    %cst_70 = arith.constant dense<0.000000e+00> : vector<2x8xf32>
    %208 = vector.multi_reduction <add>, %207, %cst_70 [2] : vector<2x8x8xf32> to vector<2x8xf32>
    %209 = vector.shape_cast %208 : vector<2x8xf32> to vector<2x8x1xf32>
    %210 = tpu.reciprocal %209 {approx = true} : vector<2x8x1xf32> -> vector<2x8x1xf32>
    %211 = vector.broadcast %210 : vector<2x8x1xf32> to vector<2x8x8xf32>
    %212 = arith.mulf %207, %211 : vector<2x8x8xf32>
    %213 = arith.truncf %212 : vector<2x8x8xf32> to vector<2x8x8xbf16>
    "tpu.trace_start"() <{level = 10 : i32, message = "bqk,bkd->bqd"}> : () -> ()
    %cst_71 = arith.constant dense<0.000000e+00> : vector<2x8x32xf32>
    %214 = tpu.matmul %213, %199, %cst_71 {dimension_numbers = #tpu.dot_dimension_numbers<[2], [1], [1], [2], [0, 0, 0, 1, 1, 2], [0], [0]>} : vector<2x8x8xbf16>, vector<2x8x32xbf16>, vector<2x8x32xf32> -> vector<2x8x32xf32>
    "tpu.trace_stop"() : () -> ()
    %215 = vector.shape_cast %214 : vector<2x8x32xf32> to vector<16x32xf32>
    %216 = vector.extract_strided_slice %193 {offsets = [0, 32], sizes = [16, 32], strides = [1, 1]} : vector<16x384xbf16> to vector<16x32xbf16>
    %217 = vector.shape_cast %216 : vector<16x32xbf16> to vector<2x8x32xbf16>
    %218 = vector.extract_strided_slice %193 {offsets = [0, 160], sizes = [16, 32], strides = [1, 1]} : vector<16x384xbf16> to vector<16x32xbf16>
    %219 = vector.shape_cast %218 : vector<16x32xbf16> to vector<2x8x32xbf16>
    %220 = vector.extract_strided_slice %193 {offsets = [0, 288], sizes = [16, 32], strides = [1, 1]} : vector<16x384xbf16> to vector<16x32xbf16>
    %221 = vector.shape_cast %220 : vector<16x32xbf16> to vector<2x8x32xbf16>
    "tpu.trace_start"() <{level = 10 : i32, message = "bqd,bkd->bqk"}> : () -> ()
    %cst_72 = arith.constant dense<0.000000e+00> : vector<2x8x8xf32>
    %222 = tpu.matmul %217, %219, %cst_72 {dimension_numbers = #tpu.dot_dimension_numbers<[2], [2], [1], [1], [0, 0, 0, 1, 1, 1], [0], [0]>} : vector<2x8x32xbf16>, vector<2x8x32xbf16>, vector<2x8x8xf32> -> vector<2x8x8xf32>
    "tpu.trace_stop"() : () -> ()
    %223 = vector.broadcast %20 : vector<1x8x8xf32> to vector<2x8x8xf32>
    %224 = arith.addf %222, %223 : vector<2x8x8xf32>
    %cst_73 = arith.constant dense<0xFF800000> : vector<2x8xf32>
    %225 = vector.multi_reduction <maximumf>, %224, %cst_73 [2] : vector<2x8x8xf32> to vector<2x8xf32>
    %226 = vector.shape_cast %225 : vector<2x8xf32> to vector<2x8x1xf32>
    %227 = vector.broadcast %226 : vector<2x8x1xf32> to vector<2x8x8xf32>
    %228 = arith.subf %224, %227 : vector<2x8x8xf32>
    %229 = math.exp %228 : vector<2x8x8xf32>
    %cst_74 = arith.constant dense<0.000000e+00> : vector<2x8xf32>
    %230 = vector.multi_reduction <add>, %229, %cst_74 [2] : vector<2x8x8xf32> to vector<2x8xf32>
    %231 = vector.shape_cast %230 : vector<2x8xf32> to vector<2x8x1xf32>
    %232 = tpu.reciprocal %231 {approx = true} : vector<2x8x1xf32> -> vector<2x8x1xf32>
    %233 = vector.broadcast %232 : vector<2x8x1xf32> to vector<2x8x8xf32>
    %234 = arith.mulf %229, %233 : vector<2x8x8xf32>
    %235 = arith.truncf %234 : vector<2x8x8xf32> to vector<2x8x8xbf16>
    "tpu.trace_start"() <{level = 10 : i32, message = "bqk,bkd->bqd"}> : () -> ()
    %cst_75 = arith.constant dense<0.000000e+00> : vector<2x8x32xf32>
    %236 = tpu.matmul %235, %221, %cst_75 {dimension_numbers = #tpu.dot_dimension_numbers<[2], [1], [1], [2], [0, 0, 0, 1, 1, 2], [0], [0]>} : vector<2x8x8xbf16>, vector<2x8x32xbf16>, vector<2x8x32xf32> -> vector<2x8x32xf32>
    "tpu.trace_stop"() : () -> ()
    %237 = vector.shape_cast %236 : vector<2x8x32xf32> to vector<16x32xf32>
    %238 = vector.extract_strided_slice %193 {offsets = [0, 64], sizes = [16, 32], strides = [1, 1]} : vector<16x384xbf16> to vector<16x32xbf16>
    %239 = vector.shape_cast %238 : vector<16x32xbf16> to vector<2x8x32xbf16>
    %240 = vector.extract_strided_slice %193 {offsets = [0, 192], sizes = [16, 32], strides = [1, 1]} : vector<16x384xbf16> to vector<16x32xbf16>
    %241 = vector.shape_cast %240 : vector<16x32xbf16> to vector<2x8x32xbf16>
    %242 = vector.extract_strided_slice %193 {offsets = [0, 320], sizes = [16, 32], strides = [1, 1]} : vector<16x384xbf16> to vector<16x32xbf16>
    %243 = vector.shape_cast %242 : vector<16x32xbf16> to vector<2x8x32xbf16>
    "tpu.trace_start"() <{level = 10 : i32, message = "bqd,bkd->bqk"}> : () -> ()
    %cst_76 = arith.constant dense<0.000000e+00> : vector<2x8x8xf32>
    %244 = tpu.matmul %239, %241, %cst_76 {dimension_numbers = #tpu.dot_dimension_numbers<[2], [2], [1], [1], [0, 0, 0, 1, 1, 1], [0], [0]>} : vector<2x8x32xbf16>, vector<2x8x32xbf16>, vector<2x8x8xf32> -> vector<2x8x8xf32>
    "tpu.trace_stop"() : () -> ()
    %245 = vector.broadcast %20 : vector<1x8x8xf32> to vector<2x8x8xf32>
    %246 = arith.addf %244, %245 : vector<2x8x8xf32>
    %cst_77 = arith.constant dense<0xFF800000> : vector<2x8xf32>
    %247 = vector.multi_reduction <maximumf>, %246, %cst_77 [2] : vector<2x8x8xf32> to vector<2x8xf32>
    %248 = vector.shape_cast %247 : vector<2x8xf32> to vector<2x8x1xf32>
    %249 = vector.broadcast %248 : vector<2x8x1xf32> to vector<2x8x8xf32>
    %250 = arith.subf %246, %249 : vector<2x8x8xf32>
    %251 = math.exp %250 : vector<2x8x8xf32>
    %cst_78 = arith.constant dense<0.000000e+00> : vector<2x8xf32>
    %252 = vector.multi_reduction <add>, %251, %cst_78 [2] : vector<2x8x8xf32> to vector<2x8xf32>
    %253 = vector.shape_cast %252 : vector<2x8xf32> to vector<2x8x1xf32>
    %254 = tpu.reciprocal %253 {approx = true} : vector<2x8x1xf32> -> vector<2x8x1xf32>
    %255 = vector.broadcast %254 : vector<2x8x1xf32> to vector<2x8x8xf32>
    %256 = arith.mulf %251, %255 : vector<2x8x8xf32>
    %257 = arith.truncf %256 : vector<2x8x8xf32> to vector<2x8x8xbf16>
    "tpu.trace_start"() <{level = 10 : i32, message = "bqk,bkd->bqd"}> : () -> ()
    %cst_79 = arith.constant dense<0.000000e+00> : vector<2x8x32xf32>
    %258 = tpu.matmul %257, %243, %cst_79 {dimension_numbers = #tpu.dot_dimension_numbers<[2], [1], [1], [2], [0, 0, 0, 1, 1, 2], [0], [0]>} : vector<2x8x8xbf16>, vector<2x8x32xbf16>, vector<2x8x32xf32> -> vector<2x8x32xf32>
    "tpu.trace_stop"() : () -> ()
    %259 = vector.shape_cast %258 : vector<2x8x32xf32> to vector<16x32xf32>
    %260 = vector.extract_strided_slice %193 {offsets = [0, 96], sizes = [16, 32], strides = [1, 1]} : vector<16x384xbf16> to vector<16x32xbf16>
    %261 = vector.shape_cast %260 : vector<16x32xbf16> to vector<2x8x32xbf16>
    %262 = vector.extract_strided_slice %193 {offsets = [0, 224], sizes = [16, 32], strides = [1, 1]} : vector<16x384xbf16> to vector<16x32xbf16>
    %263 = vector.shape_cast %262 : vector<16x32xbf16> to vector<2x8x32xbf16>
    %264 = vector.extract_strided_slice %193 {offsets = [0, 352], sizes = [16, 32], strides = [1, 1]} : vector<16x384xbf16> to vector<16x32xbf16>
    %265 = vector.shape_cast %264 : vector<16x32xbf16> to vector<2x8x32xbf16>
    "tpu.trace_start"() <{level = 10 : i32, message = "bqd,bkd->bqk"}> : () -> ()
    %cst_80 = arith.constant dense<0.000000e+00> : vector<2x8x8xf32>
    %266 = tpu.matmul %261, %263, %cst_80 {dimension_numbers = #tpu.dot_dimension_numbers<[2], [2], [1], [1], [0, 0, 0, 1, 1, 1], [0], [0]>} : vector<2x8x32xbf16>, vector<2x8x32xbf16>, vector<2x8x8xf32> -> vector<2x8x8xf32>
    "tpu.trace_stop"() : () -> ()
    %267 = vector.broadcast %20 : vector<1x8x8xf32> to vector<2x8x8xf32>
    %268 = arith.addf %266, %267 : vector<2x8x8xf32>
    %cst_81 = arith.constant dense<0xFF800000> : vector<2x8xf32>
    %269 = vector.multi_reduction <maximumf>, %268, %cst_81 [2] : vector<2x8x8xf32> to vector<2x8xf32>
    %270 = vector.shape_cast %269 : vector<2x8xf32> to vector<2x8x1xf32>
    %271 = vector.broadcast %270 : vector<2x8x1xf32> to vector<2x8x8xf32>
    %272 = arith.subf %268, %271 : vector<2x8x8xf32>
    %273 = math.exp %272 : vector<2x8x8xf32>
    %cst_82 = arith.constant dense<0.000000e+00> : vector<2x8xf32>
    %274 = vector.multi_reduction <add>, %273, %cst_82 [2] : vector<2x8x8xf32> to vector<2x8xf32>
    %275 = vector.shape_cast %274 : vector<2x8xf32> to vector<2x8x1xf32>
    %276 = tpu.reciprocal %275 {approx = true} : vector<2x8x1xf32> -> vector<2x8x1xf32>
    %277 = vector.broadcast %276 : vector<2x8x1xf32> to vector<2x8x8xf32>
    %278 = arith.mulf %273, %277 : vector<2x8x8xf32>
    %279 = arith.truncf %278 : vector<2x8x8xf32> to vector<2x8x8xbf16>
    "tpu.trace_start"() <{level = 10 : i32, message = "bqk,bkd->bqd"}> : () -> ()
    %cst_83 = arith.constant dense<0.000000e+00> : vector<2x8x32xf32>
    %280 = tpu.matmul %279, %265, %cst_83 {dimension_numbers = #tpu.dot_dimension_numbers<[2], [1], [1], [2], [0, 0, 0, 1, 1, 2], [0], [0]>} : vector<2x8x8xbf16>, vector<2x8x32xbf16>, vector<2x8x32xf32> -> vector<2x8x32xf32>
    "tpu.trace_stop"() : () -> ()
    %281 = vector.shape_cast %280 : vector<2x8x32xf32> to vector<16x32xf32>
    %282 = tpu.concatenate %215, %237, %259, %281 in 1 : vector<16x32xf32>, vector<16x32xf32>, vector<16x32xf32>, vector<16x32xf32> -> vector<16x128xf32>
    %283 = arith.truncf %282 : vector<16x128xf32> to vector<16x128xbf16>
    %c0_84 = arith.constant 0 : index
    %c0_85 = arith.constant 0 : index
    %284 = vector.load %arg18[%c0_84, %c0_85] : memref<128x128xbf16, #tpu.memory_space<vmem>>, vector<128x128xbf16>
    %cst_86 = arith.constant dense<0.000000e+00> : vector<16x128xf32>
    %285 = tpu.matmul %283, %284, %cst_86 {dimension_numbers = #tpu.dot_dimension_numbers<[1], [0], [0], [1], [0, 0, 1, 1], [], []>} : vector<16x128xbf16>, vector<128x128xbf16>, vector<16x128xf32> -> vector<16x128xf32>
    %c0_87 = arith.constant 0 : index
    %c0_88 = arith.constant 0 : index
    %286 = vector.load %arg19[%c0_87, %c0_88] : memref<1x128xf32, #tpu.memory_space<vmem>>, vector<1x128xf32>
    %287 = vector.broadcast %286 : vector<1x128xf32> to vector<16x128xf32>
    %288 = arith.addf %285, %287 : vector<16x128xf32>
    %289 = arith.addf %186, %288 : vector<16x128xf32>
    %c0_89 = arith.constant 0 : index
    %c0_90 = arith.constant 0 : index
    %290 = vector.load %arg20[%c0_89, %c0_90] : memref<1x128xf32, #tpu.memory_space<vmem>>, vector<1x128xf32>
    %c0_91 = arith.constant 0 : index
    %c0_92 = arith.constant 0 : index
    %291 = vector.load %arg21[%c0_91, %c0_92] : memref<1x128xf32, #tpu.memory_space<vmem>>, vector<1x128xf32>
    %cst_93 = arith.constant dense<0.000000e+00> : vector<16xf32>
    %292 = vector.multi_reduction <add>, %289, %cst_93 [1] : vector<16x128xf32> to vector<16xf32>
    %293 = vector.shape_cast %292 : vector<16xf32> to vector<16x1xf32>
    %cst_94 = arith.constant 1.280000e+02 : f32
    %294 = vector.broadcast %cst_94 : f32 to vector<16x1xf32>
    %295 = arith.divf %293, %294 : vector<16x1xf32>
    %296 = vector.broadcast %295 : vector<16x1xf32> to vector<16x128xf32>
    %297 = arith.subf %289, %296 : vector<16x128xf32>
    %298 = arith.mulf %297, %297 : vector<16x128xf32>
    %cst_95 = arith.constant dense<0.000000e+00> : vector<16xf32>
    %299 = vector.multi_reduction <add>, %298, %cst_95 [1] : vector<16x128xf32> to vector<16xf32>
    %300 = vector.shape_cast %299 : vector<16xf32> to vector<16x1xf32>
    %cst_96 = arith.constant 1.280000e+02 : f32
    %301 = vector.broadcast %cst_96 : f32 to vector<16x1xf32>
    %302 = arith.divf %300, %301 : vector<16x1xf32>
    %303 = vector.broadcast %295 : vector<16x1xf32> to vector<16x128xf32>
    %304 = arith.subf %289, %303 : vector<16x128xf32>
    %cst_97 = arith.constant 9.99999974E-6 : f32
    %305 = vector.broadcast %cst_97 : f32 to vector<16x1xf32>
    %306 = arith.addf %302, %305 : vector<16x1xf32>
    %307 = math.rsqrt %306 : vector<16x1xf32>
    %308 = vector.broadcast %307 : vector<16x1xf32> to vector<16x128xf32>
    %309 = arith.mulf %304, %308 : vector<16x128xf32>
    %310 = vector.broadcast %290 : vector<1x128xf32> to vector<16x128xf32>
    %311 = arith.mulf %309, %310 : vector<16x128xf32>
    %312 = vector.broadcast %291 : vector<1x128xf32> to vector<16x128xf32>
    %313 = arith.addf %311, %312 : vector<16x128xf32>
    %314 = arith.truncf %313 : vector<16x128xf32> to vector<16x128xbf16>
    %c0_98 = arith.constant 0 : index
    %c0_99 = arith.constant 0 : index
    %315 = vector.load %arg22[%c0_98, %c0_99] : memref<128x256xbf16, #tpu.memory_space<vmem>>, vector<128x256xbf16>
    %cst_100 = arith.constant dense<0.000000e+00> : vector<16x256xf32>
    %316 = tpu.matmul %314, %315, %cst_100 {dimension_numbers = #tpu.dot_dimension_numbers<[1], [0], [0], [1], [0, 0, 1, 1], [], []>} : vector<16x128xbf16>, vector<128x256xbf16>, vector<16x256xf32> -> vector<16x256xf32>
    %c0_101 = arith.constant 0 : index
    %c0_102 = arith.constant 0 : index
    %317 = vector.load %arg23[%c0_101, %c0_102] : memref<1x256xf32, #tpu.memory_space<vmem>>, vector<1x256xf32>
    %318 = vector.broadcast %317 : vector<1x256xf32> to vector<16x256xf32>
    %319 = arith.addf %316, %318 : vector<16x256xf32>
    %cst_103 = arith.constant 0.000000e+00 : f32
    %320 = vector.broadcast %cst_103 : f32 to vector<16x256xf32>
    %321 = arith.maximumf %319, %320 : vector<16x256xf32>
    %322 = arith.truncf %321 : vector<16x256xf32> to vector<16x256xbf16>
    %c0_104 = arith.constant 0 : index
    %c0_105 = arith.constant 0 : index
    %323 = vector.load %arg24[%c0_104, %c0_105] : memref<256x128xbf16, #tpu.memory_space<vmem>>, vector<256x128xbf16>
    %cst_106 = arith.constant dense<0.000000e+00> : vector<16x128xf32>
    %324 = tpu.matmul %322, %323, %cst_106 {dimension_numbers = #tpu.dot_dimension_numbers<[1], [0], [0], [1], [0, 0, 1, 1], [], []>} : vector<16x256xbf16>, vector<256x128xbf16>, vector<16x128xf32> -> vector<16x128xf32>
    %c0_107 = arith.constant 0 : index
    %c0_108 = arith.constant 0 : index
    %325 = vector.load %arg25[%c0_107, %c0_108] : memref<1x128xf32, #tpu.memory_space<vmem>>, vector<1x128xf32>
    %326 = vector.broadcast %325 : vector<1x128xf32> to vector<16x128xf32>
    %327 = arith.addf %324, %326 : vector<16x128xf32>
    %328 = arith.addf %313, %327 : vector<16x128xf32>
    %c0_109 = arith.constant 0 : index
    %c0_110 = arith.constant 0 : index
    %329 = vector.load %arg26[%c0_109, %c0_110] : memref<1x128xf32, #tpu.memory_space<vmem>>, vector<1x128xf32>
    %c0_111 = arith.constant 0 : index
    %c0_112 = arith.constant 0 : index
    %330 = vector.load %arg27[%c0_111, %c0_112] : memref<1x128xf32, #tpu.memory_space<vmem>>, vector<1x128xf32>
    %cst_113 = arith.constant dense<0.000000e+00> : vector<16xf32>
    %331 = vector.multi_reduction <add>, %328, %cst_113 [1] : vector<16x128xf32> to vector<16xf32>
    %332 = vector.shape_cast %331 : vector<16xf32> to vector<16x1xf32>
    %cst_114 = arith.constant 1.280000e+02 : f32
    %333 = vector.broadcast %cst_114 : f32 to vector<16x1xf32>
    %334 = arith.divf %332, %333 : vector<16x1xf32>
    %335 = vector.broadcast %334 : vector<16x1xf32> to vector<16x128xf32>
    %336 = arith.subf %328, %335 : vector<16x128xf32>
    %337 = arith.mulf %336, %336 : vector<16x128xf32>
    %cst_115 = arith.constant dense<0.000000e+00> : vector<16xf32>
    %338 = vector.multi_reduction <add>, %337, %cst_115 [1] : vector<16x128xf32> to vector<16xf32>
    %339 = vector.shape_cast %338 : vector<16xf32> to vector<16x1xf32>
    %cst_116 = arith.constant 1.280000e+02 : f32
    %340 = vector.broadcast %cst_116 : f32 to vector<16x1xf32>
    %341 = arith.divf %339, %340 : vector<16x1xf32>
    %342 = vector.broadcast %334 : vector<16x1xf32> to vector<16x128xf32>
    %343 = arith.subf %328, %342 : vector<16x128xf32>
    %cst_117 = arith.constant 9.99999974E-6 : f32
    %344 = vector.broadcast %cst_117 : f32 to vector<16x1xf32>
    %345 = arith.addf %341, %344 : vector<16x1xf32>
    %346 = math.rsqrt %345 : vector<16x1xf32>
    %347 = vector.broadcast %346 : vector<16x1xf32> to vector<16x128xf32>
    %348 = arith.mulf %343, %347 : vector<16x128xf32>
    %349 = vector.broadcast %329 : vector<1x128xf32> to vector<16x128xf32>
    %350 = arith.mulf %348, %349 : vector<16x128xf32>
    %351 = vector.broadcast %330 : vector<1x128xf32> to vector<16x128xf32>
    %352 = arith.addf %350, %351 : vector<16x128xf32>
    %353 = arith.truncf %352 : vector<16x128xf32> to vector<16x128xbf16>
    %c0_118 = arith.constant 0 : index
    %c0_119 = arith.constant 0 : index
    %354 = vector.load %arg28[%c0_118, %c0_119] : memref<128x128xbf16, #tpu.memory_space<vmem>>, vector<128x128xbf16>
    %cst_120 = arith.constant dense<0.000000e+00> : vector<16x128xf32>
    %355 = tpu.matmul %353, %354, %cst_120 {dimension_numbers = #tpu.dot_dimension_numbers<[1], [0], [0], [1], [0, 0, 1, 1], [], []>} : vector<16x128xbf16>, vector<128x128xbf16>, vector<16x128xf32> -> vector<16x128xf32>
    %c0_121 = arith.constant 0 : index
    %c0_122 = arith.constant 0 : index
    %356 = vector.load %arg29[%c0_121, %c0_122] : memref<1x128xf32, #tpu.memory_space<vmem>>, vector<1x128xf32>
    %357 = vector.broadcast %356 : vector<1x128xf32> to vector<16x128xf32>
    %358 = arith.addf %355, %357 : vector<16x128xf32>
    %359 = vector.shape_cast %358 : vector<16x128xf32> to vector<2x8x128xf32>
    %c0_123 = arith.constant 0 : index
    %c0_124 = arith.constant 0 : index
    %c0_125 = arith.constant 0 : index
    %360 = vector.load %arg30[%c0_123, %c0_124, %c0_125] : memref<2x8x128xf32, #tpu.memory_space<vmem>>, vector<2x8x128xf32>
    tpu.vector_store %arg30[%c0_123, %c0_124, %c0_125], %359 {strides = array<i32>} : memref<2x8x128xf32, #tpu.memory_space<vmem>>, vector<2x8x128xf32>,
    return
  }
  func.func @transform_0(%arg0: i32) -> (i32, i32, i32) {
    %c0_i32 = arith.constant 0 : i32
    %c0_i32_0 = arith.constant 0 : i32
    %c0_i32_1 = arith.constant 0 : i32
    return %arg0, %c0_i32, %c0_i32_0 : i32, i32, i32
  }
  func.func @transform_1(%arg0: i32) -> (i32, i32) {
    %c0_i32 = arith.constant 0 : i32
    %c0_i32_0 = arith.constant 0 : i32
    %c0_i32_1 = arith.constant 0 : i32
    return %c0_i32, %c0_i32_0 : i32, i32
  }
  func.func @transform_2(%arg0: i32) -> (i32, i32) {
    %c0_i32 = arith.constant 0 : i32
    %c0_i32_0 = arith.constant 0 : i32
    %c0_i32_1 = arith.constant 0 : i32
    return %c0_i32, %c0_i32_0 : i32, i32
  }
  func.func @transform_3(%arg0: i32) -> (i32, i32) {
    %c0_i32 = arith.constant 0 : i32
    %c0_i32_0 = arith.constant 0 : i32
    %c0_i32_1 = arith.constant 0 : i32
    return %c0_i32, %c0_i32_0 : i32, i32
  }
  func.func @transform_4(%arg0: i32) -> (i32, i32) {
    %c0_i32 = arith.constant 0 : i32
    %c0_i32_0 = arith.constant 0 : i32
    %c0_i32_1 = arith.constant 0 : i32
    return %c0_i32, %c0_i32_0 : i32, i32
  }
  func.func @transform_5(%arg0: i32) -> (i32, i32) {
    %c0_i32 = arith.constant 0 : i32
    %c0_i32_0 = arith.constant 0 : i32
    %c0_i32_1 = arith.constant 0 : i32
    return %c0_i32, %c0_i32_0 : i32, i32
  }
  func.func @transform_6(%arg0: i32) -> (i32, i32) {
    %c0_i32 = arith.constant 0 : i32
    %c0_i32_0 = arith.constant 0 : i32
    %c0_i32_1 = arith.constant 0 : i32
    return %c0_i32, %c0_i32_0 : i32, i32
  }
  func.func @transform_7(%arg0: i32) -> (i32, i32) {
    %c0_i32 = arith.constant 0 : i32
    %c0_i32_0 = arith.constant 0 : i32
    %c0_i32_1 = arith.constant 0 : i32
    return %c0_i32, %c0_i32_0 : i32, i32
  }
  func.func @transform_8(%arg0: i32) -> (i32, i32) {
    %c0_i32 = arith.constant 0 : i32
    %c0_i32_0 = arith.constant 0 : i32
    %c0_i32_1 = arith.constant 0 : i32
    return %c0_i32, %c0_i32_0 : i32, i32
  }
  func.func @transform_9(%arg0: i32) -> (i32, i32) {
    %c0_i32 = arith.constant 0 : i32
    %c0_i32_0 = arith.constant 0 : i32
    %c0_i32_1 = arith.constant 0 : i32
    return %c0_i32, %c0_i32_0 : i32, i32
  }
  func.func @transform_10(%arg0: i32) -> (i32, i32) {
    %c0_i32 = arith.constant 0 : i32
    %c0_i32_0 = arith.constant 0 : i32
    %c0_i32_1 = arith.constant 0 : i32
    return %c0_i32, %c0_i32_0 : i32, i32
  }
  func.func @transform_11(%arg0: i32) -> (i32, i32) {
    %c0_i32 = arith.constant 0 : i32
    %c0_i32_0 = arith.constant 0 : i32
    %c0_i32_1 = arith.constant 0 : i32
    return %c0_i32, %c0_i32_0 : i32, i32
  }
  func.func @transform_12(%arg0: i32) -> (i32, i32) {
    %c0_i32 = arith.constant 0 : i32
    %c0_i32_0 = arith.constant 0 : i32
    %c0_i32_1 = arith.constant 0 : i32
    return %c0_i32, %c0_i32_0 : i32, i32
  }
  func.func @transform_13(%arg0: i32) -> (i32, i32) {
    %c0_i32 = arith.constant 0 : i32
    %c0_i32_0 = arith.constant 0 : i32
    %c0_i32_1 = arith.constant 0 : i32
    return %c0_i32, %c0_i32_0 : i32, i32
  }
  func.func @transform_14(%arg0: i32) -> (i32, i32) {
    %c0_i32 = arith.constant 0 : i32
    %c0_i32_0 = arith.constant 0 : i32
    %c0_i32_1 = arith.constant 0 : i32
    return %c0_i32, %c0_i32_0 : i32, i32
  }
  func.func @transform_15(%arg0: i32) -> (i32, i32) {
    %c0_i32 = arith.constant 0 : i32
    %c0_i32_0 = arith.constant 0 : i32
    %c0_i32_1 = arith.constant 0 : i32
    return %c0_i32, %c0_i32_0 : i32, i32
  }
  func.func @transform_16(%arg0: i32) -> (i32, i32) {
    %c0_i32 = arith.constant 0 : i32
    %c0_i32_0 = arith.constant 0 : i32
    %c0_i32_1 = arith.constant 0 : i32
    return %c0_i32, %c0_i32_0 : i32, i32
  }
  func.func @transform_17(%arg0: i32) -> (i32, i32) {
    %c0_i32 = arith.constant 0 : i32
    %c0_i32_0 = arith.constant 0 : i32
    %c0_i32_1 = arith.constant 0 : i32
    return %c0_i32, %c0_i32_0 : i32, i32
  }
  func.func @transform_18(%arg0: i32) -> (i32, i32) {
    %c0_i32 = arith.constant 0 : i32
    %c0_i32_0 = arith.constant 0 : i32
    %c0_i32_1 = arith.constant 0 : i32
    return %c0_i32, %c0_i32_0 : i32, i32
  }
  func.func @transform_19(%arg0: i32) -> (i32, i32) {
    %c0_i32 = arith.constant 0 : i32
    %c0_i32_0 = arith.constant 0 : i32
    %c0_i32_1 = arith.constant 0 : i32
    return %c0_i32, %c0_i32_0 : i32, i32
  }
  func.func @transform_20(%arg0: i32) -> (i32, i32) {
    %c0_i32 = arith.constant 0 : i32
    %c0_i32_0 = arith.constant 0 : i32
    %c0_i32_1 = arith.constant 0 : i32
    return %c0_i32, %c0_i32_0 : i32, i32
  }
  func.func @transform_21(%arg0: i32) -> (i32, i32) {
    %c0_i32 = arith.constant 0 : i32
    %c0_i32_0 = arith.constant 0 : i32
    %c0_i32_1 = arith.constant 0 : i32
    return %c0_i32, %c0_i32_0 : i32, i32
  }
  func.func @transform_22(%arg0: i32) -> (i32, i32) {
    %c0_i32 = arith.constant 0 : i32
    %c0_i32_0 = arith.constant 0 : i32
    %c0_i32_1 = arith.constant 0 : i32
    return %c0_i32, %c0_i32_0 : i32, i32
  }
  func.func @transform_23(%arg0: i32) -> (i32, i32) {
    %c0_i32 = arith.constant 0 : i32
    %c0_i32_0 = arith.constant 0 : i32
    %c0_i32_1 = arith.constant 0 : i32
    return %c0_i32, %c0_i32_0 : i32, i32
  }
  func.func @transform_24(%arg0: i32) -> (i32, i32) {
    %c0_i32 = arith.constant 0 : i32
    %c0_i32_0 = arith.constant 0 : i32
    %c0_i32_1 = arith.constant 0 : i32
    return %c0_i32, %c0_i32_0 : i32, i32
  }
  func.func @transform_25(%arg0: i32) -> (i32, i32) {
    %c0_i32 = arith.constant 0 : i32
    %c0_i32_0 = arith.constant 0 : i32
    %c0_i32_1 = arith.constant 0 : i32
    return %c0_i32, %c0_i32_0 : i32, i32
  }
  func.func @transform_26(%arg0: i32) -> (i32, i32) {
    %c0_i32 = arith.constant 0 : i32
    %c0_i32_0 = arith.constant 0 : i32
    %c0_i32_1 = arith.constant 0 : i32
    return %c0_i32, %c0_i32_0 : i32, i32
  }
  func.func @transform_27(%arg0: i32) -> (i32, i32) {
    %c0_i32 = arith.constant 0 : i32
    %c0_i32_0 = arith.constant 0 : i32
    %c0_i32_1 = arith.constant 0 : i32
    return %c0_i32, %c0_i32_0 : i32, i32
  }
  func.func @transform_28(%arg0: i32) -> (i32, i32) {
    %c0_i32 = arith.constant 0 : i32
    %c0_i32_0 = arith.constant 0 : i32
    %c0_i32_1 = arith.constant 0 : i32
    return %c0_i32, %c0_i32_0 : i32, i32
  }
  func.func @transform_29(%arg0: i32) -> (i32, i32, i32) {
    %c0_i32 = arith.constant 0 : i32
    %c0_i32_0 = arith.constant 0 : i32
    %c0_i32_1 = arith.constant 0 : i32
    return %arg0, %c0_i32, %c0_i32_0 : i32, i32, i32
  }
}

</mosaic_0001>

<bundles_post_ra>
// kernel: transformer_lm_forward.1
= control target key start
LH: loop header
LB: loop body
LE: loop exit
PB: predicated region body
PF: predicated region fallthrough
CT: control target
= control target key end

     0   :  { %s5718_s6 = smov 1   ;;  %s5719_s10 = smov 2   ;;  %s6566_s0 = inlined_call_operand.smem [shape: u32[30], index: -1, kind: input, shape index: {}] }
   0x1   :  { %s5790_s5 = sld [smem:[%s6566_s0]]   ;;  %s5720_s14 = smov 3  }
   0x2   :  { %s5795_s9 = sld [smem:[%s6566_s0 + %s5718_s6]]   ;;  %s5721_s18 = smov 4  }
   0x3   :  { %s5800_s13 = sld [smem:[%s6566_s0 + %s5719_s10]]   ;;  %s5722_s22 = smov 5  }
   0x4   :  { %s5805_s17 = sld [smem:[%s6566_s0 + %s5720_s14]]   ;;  %s5723_s26 = smov 6  }
   0x5   :  { %s5810_s21 = sld [smem:[%s6566_s0 + %s5721_s18]]   ;;  %s5724_s30 = smov 7  }
   0x6   :  { %s5815_s25 = sld [smem:[%s6566_s0 + %s5722_s22]]   ;;  %s5725_s4 = smov 8  }
   0x7   :  { %6577 = sst [smem:[#allocation51_spill]] %s5790_s5  ;;  %s5726_s10 = smov 9  }
   0x8   :  { %s5820_s29 = sld [smem:[%s6566_s0 + %s5723_s26]]   ;;  %s5727_s15 = smov 10  }
   0x9   :  { %6578 = sst [smem:[#allocation52_spill]] %s5800_s13  ;;  %s5728_s20 = smov 11  }
   0xa   :  { %s5825_s3 = sld [smem:[%s6566_s0 + %s5724_s30]]   ;;  %s5729_s26 = smov 12  }
   0xb   :  { %s5830_s8 = sld [smem:[%s6566_s0 + %s5725_s4]]   ;;  %s5730_s1 = smov 13  }
   0xc   :  { %s5835_s14 = sld [smem:[%s6566_s0 + %s5726_s10]]   ;;  %s5731_s7 = smov 14  }
   0xd   :  { %s5840_s19 = sld [smem:[%s6566_s0 + %s5727_s15]]   ;;  %s5732_s15 = smov 15  }
   0xe   :  { %s5845_s24 = sld [smem:[%s6566_s0 + %s5728_s20]]   ;;  %s5733_s22 = smov 16  }
   0xf   :  { %s5850_s30 = sld [smem:[%s6566_s0 + %s5729_s26]]   ;;  %s5734_s28 = smov 17  }
  0x10   :  { %s5855_s6 = sld [smem:[%s6566_s0 + %s5730_s1]]  }
  0x11   :  { %s5860_s12 = sld [smem:[%s6566_s0 + %s5731_s7]]   ;;  %s5735_s7 = smov 18  }
  0x12   :  { %s5865_s20 = sld [smem:[%s6566_s0 + %s5732_s15]]   ;;  %s5736_s15 = smov 19  }
  0x13   :  { %6579 = sst [smem:[#allocation53_spill]] %s5840_s19 }
  0x14   :  { %s5870_s27 = sld [smem:[%s6566_s0 + %s5733_s22]]   ;;  %s5737_s22 = smov 20  }
  0x15   :  { %6580 = sst [smem:[#allocation54_spill]] %s5850_s30 }
  0x16   :  { %s5875_s4 = sld [smem:[%s6566_s0 + %s5734_s28]]   ;;  %s5738_s28 = smov 21  }
  0x17   :  { %6581 = sst [smem:[#allocation55_spill]] %s5860_s12 }
  0x18   :  { %s5880_s13 = sld [smem:[%s6566_s0 + %s5735_s7]]   ;;  %s5739_s7 = smov 22  }
  0x19   :  { %s5885_s5 = sld [smem:[%s6566_s0 + %s5736_s15]]   ;;  %s5740_s15 = smov 23  }
  0x1a   :  { %6582 = sst [smem:[#allocation56_spill]] %s5870_s27 }
  0x1b   :  { %s5890_s27 = sld [smem:[%s6566_s0 + %s5737_s22]]   ;;  %s5741_s22 = smov 24  }
  0x1c   :  { %6583 = sst [smem:[#allocation57_spill]] %s5875_s4 }
  0x1d   :  { %s5895_s4 = sld [smem:[%s6566_s0 + %s5738_s28]]   ;;  %s5742_s28 = smov 25  }
  0x1e   :  { %s5900_s12 = sld [smem:[%s6566_s0 + %s5739_s7]]   ;;  %s5743_s7 = smov 26  }
  0x1f   :  { %6584 = sst [smem:[#allocation58_spill]] %s5885_s5 }
  0x20   :  { %s5905_s5 = sld [smem:[%s6566_s0 + %s5740_s15]]   ;;  %s5744_s15 = smov 27  }
  0x21   :  { %s5910_s30 = sld [smem:[%s6566_s0 + %s5741_s22]]   ;;  %s5745_s22 = smov 28  }
  0x22   :  { %s5920_s19 = sld [smem:[%s6566_s0 + %s5743_s7]]  }
  0x23   :  { %6585 = sst [smem:[#allocation59_spill]] %s5895_s4 }
  0x24   :  { %s5915_s4 = sld [smem:[%s6566_s0 + %s5742_s28]]   ;;  %s5746_s28 = smov 29  }
  0x26   :  { %6586 = sst [smem:[#allocation60_spill]] %s5905_s5 }
  0x27   :  { %6587 = sst [smem:[#allocation61_spill]] %s5910_s30 }
  0x28   :  { %s5925_s5 = sld [smem:[%s6566_s0 + %s5744_s15]]  }
  0x29   :  { %s5930_s30 = sld [smem:[%s6566_s0 + %s5745_s22]]  }
  0x2a   :  { %6588 = sst [smem:[#allocation62_spill]] %s5915_s4 }
  0x2b   :  { %s5935_s4 = sld [smem:[%s6566_s0 + %s5746_s28]]  }
  0x2c   :  { %64 = vsyncpa [#allocation3], 0 }
  0x2d   :  { %65 = vsyncpa [#allocation6], 0 }
  0x2e   :  { %66 = vsyncpa [#allocation9], 0 }
  0x2f   :  { %67 = vsyncpa [#allocation12], 0 }
  0x30   :  { %68 = vsyncpa [#allocation15], 0 }
  0x31   :  { %69 = vsyncpa [#allocation18], 0 }
  0x32   :  { %70 = vsyncpa [#allocation21], 0 }
  0x33   :  { %71 = vsyncpa [#allocation24], 0 }
  0x34   :  { %72 = vsyncpa [#allocation27], 0 }
  0x35   :  { %73 = vsyncpa [#allocation30], 0 }
  0x36   :  { %74 = vsyncpa [#allocation33], 0 }
  0x37   :  { %75 = vsyncpa [#allocation36], 0 }
  0x38   :  { %76 = vsyncpa [#allocation4], 0  ;;  %s5747_s7 = smov [#allocation5]   ;;  %s5186_s0 = scalar_lea.hbm %s5805_s17, 3072 }
  0x39   :  { %s98_s10 = sshll.u32 %s5747_s7, 4  ;;  %p5187_p0 = scmp.ne.s32.totalorder %s5805_s17, %s5186_s0  ;;  %s99_s10 = int_to_ptr.vmem [resolvable:$true] %s98_s10 }
  0x3a   :  { %p5190_p1 = scmp.lt.u32.totalorder %s5186_s0, %s5805_s17 }
  0x3c   :  { %p5192_p2 = pnand %p5190_p1, %p5187_p0 }
  0x3e   :  { %5195 = shalt.err (!%p5192_p2)
}
  0x3f   :  { %s5196_s11 = scalar_lea.vmem %s99_s10, 3072  ;;  %p5201_p4 = scmp.lt.s32.totalorder %s99_s10, %s99_s10 }
  0x40   :  { %p5197_p3 = scmp.ne.s32.totalorder %s99_s10, %s5196_s11  ;;  %p5202_p5 = scmp.lt.s32.totalorder %s5196_s11, %s5196_s11 }
  0x42   :  { %p5203_p6 = por %p5202_p5, %p5201_p4 }
  0x44   :  { %p5204_p7 = pnand %p5203_p6, %p5197_p3 }
  0x46   :  { %5207 = shalt.err (!%p5204_p7)
}
  0x47   :  { %s5748_s15 = smov 192   ;;  %s5749_s16 = smov 12  }
  0x48   :  { %104 = dma.hbm_to_vmem [thread:$0]  %s5805_s17, 3072, %s99_s10, [#allocation6], %s5748_s15, %s5748_s15, %s5749_s16  }
  0x49   :  { %s5750_s18 = smov [#allocation8]   ;;  %s5208_s23 = scalar_lea.hbm %s5815_s25, 1024 }
  0x4a   :  { %s120_s22 = sshll.u32 %s5750_s18, 4  ;;  %p5209_p8 = scmp.ne.s32.totalorder %s5815_s25, %s5208_s23  ;;  %s121_s22 = int_to_ptr.vmem [resolvable:$true] %s120_s22 }
  0x4b   :  { %p5212_p9 = scmp.lt.u32.totalorder %s5208_s23, %s5815_s25 }
  0x4d   :  { %p5214_p10 = pnand %p5212_p9, %p5209_p8 }
  0x4f   :  { %5217 = shalt.err (!%p5214_p10)
}
  0x50   :  { %s5218_s26 = scalar_lea.vmem %s121_s22, 1024  ;;  %p5223_p12 = scmp.lt.s32.totalorder %s121_s22, %s121_s22 }
  0x51   :  { %p5219_p11 = scmp.ne.s32.totalorder %s121_s22, %s5218_s26  ;;  %p5224_p13 = scmp.lt.s32.totalorder %s5218_s26, %s5218_s26 }
  0x53   :  { %p5225_p0 = por %p5224_p13, %p5223_p12 }
  0x55   :  { %p5226_p1 = pnand %p5225_p0, %p5219_p11 }
  0x57   :  { %5229 = shalt.err (!%p5226_p1)
}
  0x58   :  { %s5751_s28 = smov 64   ;;  %s5752_s17 = smov 4  }
  0x59   :  { %126 = dma.hbm_to_vmem [thread:$0]  %s5815_s25, 1024, %s121_s22, [#allocation9], %s5751_s28, %s5751_s28, %s5752_s17  }
  0x5a   :  { %s5753_s1 = smov [#allocation11]   ;;  %s5230_s7 = scalar_lea.hbm %s5825_s3, 16 }
  0x5b   :  { %s143_s2 = sshll.u32 %s5753_s1, 4  ;;  %p5231_p2 = scmp.ne.s32.totalorder %s5825_s3, %s5230_s7  ;;  %s144_s2 = int_to_ptr.vmem [resolvable:$true] %s143_s2 }
  0x5c   :  { %p5234_p3 = scmp.lt.u32.totalorder %s5230_s7, %s5825_s3 }
  0x5e   :  { %p5236_p4 = pnand %p5234_p3, %p5231_p2 }
  0x60   :  { %5239 = shalt.err (!%p5236_p4)
}
  0x61   :  { %s5240_s10 = scalar_lea.vmem %s144_s2, 16  ;;  %s5244_s0 = scalar_lea.vmem %s144_s2, 32 }
  0x62   :  { %p5241_p5 = scmp.ne.s32.totalorder %s144_s2, %s5240_s10  ;;  %p5245_p6 = scmp.lt.s32.totalorder %s144_s2, %s144_s2 }
  0x63   :  { %p5246_p7 = scmp.lt.s32.totalorder %s5244_s0, %s5240_s10 }
  0x65   :  { %p5247_p8 = por %p5246_p7, %p5245_p6 }
  0x67   :  { %p5248_p9 = pnand %p5247_p8, %p5241_p5 }
  0x69   :  { %5251 = shalt.err (!%p5248_p9)
}
  0x6a   :  { %146 = dma.hbm_to_vmem [thread:$0]  %s5825_s3, 16, %s144_s2, [#allocation12]  }
  0x6b   :  { %s5754_s25 = smov [#allocation14]   ;;  %s5755_s18 = smov [#allocation17]  }
  0x6c   :  { %s162_s11 = sshll.u32 %s5754_s25, 4  ;;  %s184_s22 = sshll.u32 %s5755_s18, 4  ;;  %s163_s11 = int_to_ptr.vmem [resolvable:$true] %s162_s11  ;;  %s185_s22 = int_to_ptr.vmem [resolvable:$true] %s184_s22 }
  0x6d   :  { %s5252_s23 = scalar_lea.hbm %s5835_s14, 2048 }
  0x6e   :  { %p5253_p10 = scmp.ne.s32.totalorder %s5835_s14, %s5252_s23  ;;  %p5256_p11 = scmp.lt.u32.totalorder %s5252_s23, %s5835_s14 }
  0x70   :  { %p5258_p12 = pnand %p5256_p11, %p5253_p10 }
  0x72   :  { %5261 = shalt.err (!%p5258_p12)
}
  0x73   :  { %s5262_s26 = scalar_lea.vmem %s163_s11, 2048  ;;  %p5267_p0 = scmp.lt.s32.totalorder %s163_s11, %s163_s11 }
  0x74   :  { %p5263_p13 = scmp.ne.s32.totalorder %s163_s11, %s5262_s26  ;;  %p5268_p1 = scmp.lt.s32.totalorder %s5262_s26, %s5262_s26 }
  0x76   :  { %p5269_p2 = por %p5268_p1, %p5267_p0 }
  0x78   :  { %p5270_p3 = pnand %p5269_p2, %p5263_p13 }
  0x7a   :  { %5273 = shalt.err (!%p5270_p3)
}
  0x7b   :  { %s5756_s1 = smov 128   ;;  %s5757_s3 = smov 8  }
  0x7c   :  { %168 = dma.hbm_to_vmem [thread:$0]  %s5835_s14, 2048, %s163_s11, [#allocation15], %s5756_s1, %s5756_s1, %s5757_s3  }
  0x7d   :  { %s5274_s2 = scalar_lea.hbm %s5845_s24, 2048 }
  0x7e   :  { %p5275_p4 = scmp.ne.s32.totalorder %s5845_s24, %s5274_s2  ;;  %p5278_p5 = scmp.lt.u32.totalorder %s5274_s2, %s5845_s24 }
  0x80   :  { %p5280_p6 = pnand %p5278_p5, %p5275_p4 }
  0x82   :  { %5283 = shalt.err (!%p5280_p6)
}
  0x83   :  { %s5284_s7 = scalar_lea.vmem %s185_s22, 2048  ;;  %p5289_p8 = scmp.lt.s32.totalorder %s185_s22, %s185_s22 }
  0x84   :  { %p5285_p7 = scmp.ne.s32.totalorder %s185_s22, %s5284_s7  ;;  %p5290_p9 = scmp.lt.s32.totalorder %s5284_s7, %s5284_s7 }
  0x86   :  { %p5291_p10 = por %p5290_p9, %p5289_p8 }
  0x88   :  { %p5292_p11 = pnand %p5291_p10, %p5285_p7 }
  0x8a   :  { %5295 = shalt.err (!%p5292_p11)
}
  0x8b   :  { %190 = dma.hbm_to_vmem [thread:$0]  %s5845_s24, 2048, %s185_s22, [#allocation18], %s5751_s28, %s5751_s28, %s5752_s17  }
  0x8c   :  { %s5758_s14 = smov [#allocation20]   ;;  %s5759_s0 = smov [#allocation23]  }
  0x8d   :  { %s207_s10 = sshll.u32 %s5758_s14, 4  ;;  %s226_s25 = sshll.u32 %s5759_s0, 4  ;;  %s208_s10 = int_to_ptr.vmem [resolvable:$true] %s207_s10  ;;  %s227_s25 = int_to_ptr.vmem [resolvable:$true] %s226_s25 }
  0x8e   :  { %s5296_s11 = scalar_lea.hbm %s5855_s6, 16 }
  0x8f   :  { %p5297_p12 = scmp.ne.s32.totalorder %s5855_s6, %s5296_s11  ;;  %p5300_p13 = scmp.lt.u32.totalorder %s5296_s11, %s5855_s6 }
  0x91   :  { %p5302_p0 = pnand %p5300_p13, %p5297_p12 }
  0x93   :  { %5305 = shalt.err (!%p5302_p0)
}
  0x94   :  { %s5306_s18 = scalar_lea.vmem %s208_s10, 16  ;;  %s5310_s23 = scalar_lea.vmem %s208_s10, 32 }
  0x95   :  { %p5307_p1 = scmp.ne.s32.totalorder %s208_s10, %s5306_s18  ;;  %p5311_p2 = scmp.lt.s32.totalorder %s208_s10, %s208_s10 }
  0x96   :  { %p5312_p3 = scmp.lt.s32.totalorder %s5310_s23, %s5306_s18 }
  0x98   :  { %p5313_p4 = por %p5312_p3, %p5311_p2 }
  0x9a   :  { %p5314_p5 = pnand %p5313_p4, %p5307_p1 }
  0x9c   :  { %5317 = shalt.err (!%p5314_p5)
}
  0x9d   :  { %210 = dma.hbm_to_vmem [thread:$0]  %s5855_s6, 16, %s208_s10, [#allocation21]  }
  0x9e   :  { %s5318_s24 = scalar_lea.hbm %s5865_s20, 3072 }
  0x9f   :  { %p5319_p6 = scmp.ne.s32.totalorder %s5865_s20, %s5318_s24  ;;  %p5322_p7 = scmp.lt.u32.totalorder %s5318_s24, %s5865_s20 }
  0xa1   :  { %p5324_p8 = pnand %p5322_p7, %p5319_p6 }
  0xa3   :  { %5327 = shalt.err (!%p5324_p8)
}
  0xa4   :  { %s5328_s22 = scalar_lea.vmem %s227_s25, 3072  ;;  %p5333_p10 = scmp.lt.s32.totalorder %s227_s25, %s227_s25 }
  0xa5   :  { %p5329_p9 = scmp.ne.s32.totalorder %s227_s25, %s5328_s22  ;;  %p5334_p11 = scmp.lt.s32.totalorder %s5328_s22, %s5328_s22 }
  0xa7   :  { %p5335_p12 = por %p5334_p11, %p5333_p10 }
  0xa9   :  { %p5336_p13 = pnand %p5335_p12, %p5329_p9 }
  0xab   :  { %5339 = shalt.err (!%p5336_p13)
}
  0xac   :  { %232 = dma.hbm_to_vmem [thread:$0]  %s5865_s20, 3072, %s227_s25, [#allocation24], %s5748_s15, %s5748_s15, %s5749_s16  }
  0xad   :  { %s5760_s6 = smov [#allocation26]   ;;  %s5761_s2 = smov [#allocation29]  }
  0xae   :  { %s251_s26 = sshll.u32 %s5760_s6, 4  ;;  %s271_s7 = sshll.u32 %s5761_s2, 4  ;;  %s252_s26 = int_to_ptr.vmem [resolvable:$true] %s251_s26  ;;  %s272_s7 = int_to_ptr.vmem [resolvable:$true] %s271_s7 }
  0xaf   :  { %s5340_s14 = scalar_lea.hbm %s5880_s13, 16 }
  0xb0   :  { %p5341_p0 = scmp.ne.s32.totalorder %s5880_s13, %s5340_s14  ;;  %p5344_p1 = scmp.lt.u32.totalorder %s5340_s14, %s5880_s13 }
  0xb2   :  { %p5346_p2 = pnand %p5344_p1, %p5341_p0 }
  0xb4   :  { %5349 = shalt.err (!%p5346_p2)
}
  0xb5   :  { %s5350_s10 = scalar_lea.vmem %s252_s26, 16  ;;  %s5354_s0 = scalar_lea.vmem %s252_s26, 32 }
  0xb6   :  { %p5351_p3 = scmp.ne.s32.totalorder %s252_s26, %s5350_s10  ;;  %p5355_p4 = scmp.lt.s32.totalorder %s252_s26, %s252_s26 }
  0xb7   :  { %p5356_p5 = scmp.lt.s32.totalorder %s5354_s0, %s5350_s10 }
  0xb9   :  { %p5357_p6 = por %p5356_p5, %p5355_p4 }
  0xbb   :  { %p5358_p7 = pnand %p5357_p6, %p5351_p3 }
  0xbd   :  { %5361 = shalt.err (!%p5358_p7)
}
  0xbe   :  { %254 = dma.hbm_to_vmem [thread:$0]  %s5880_s13, 16, %s252_s26, [#allocation27]  }
  0xbf   :  { %s5362_s20 = scalar_lea.hbm %s5890_s27, 16 }
  0xc0   :  { %p5363_p8 = scmp.ne.s32.totalorder %s5890_s27, %s5362_s20  ;;  %p5366_p9 = scmp.lt.u32.totalorder %s5362_s20, %s5890_s27 }
  0xc2   :  { %p5368_p10 = pnand %p5366_p9, %p5363_p8 }
  0xc4   :  { %5371 = shalt.err (!%p5368_p10)
}
  0xc5   :  { %s5372_s15 = scalar_lea.vmem %s272_s7, 16  ;;  %s5376_s16 = scalar_lea.vmem %s272_s7, 32 }
  0xc6   :  { %p5373_p11 = scmp.ne.s32.totalorder %s272_s7, %s5372_s15  ;;  %p5377_p12 = scmp.lt.s32.totalorder %s272_s7, %s272_s7 }
  0xc7   :  { %p5378_p13 = scmp.lt.s32.totalorder %s5376_s16, %s5372_s15 }
  0xc9   :  { %p5379_p0 = por %p5378_p13, %p5377_p12 }
  0xcb   :  { %p5380_p1 = pnand %p5379_p0, %p5373_p11 }
  0xcd   :  { %5383 = shalt.err (!%p5380_p1)
}
  0xce   :  { %274 = dma.hbm_to_vmem [thread:$0]  %s5890_s27, 16, %s272_s7, [#allocation30]  }
  0xcf   :  { %s5762_s13 = smov [#allocation32]   ;;  %s5763_s11 = smov [#allocation2]  }
  0xd0   :  { %s293_s25 = sshll.u32 %s5762_s13, 4  ;;  %s84_s18 = sshll.u32 %s5763_s11, 4  ;;  %s294_s25 = int_to_ptr.vmem [resolvable:$true] %s293_s25  ;;  %s85_s18 = int_to_ptr.vmem [resolvable:$true] %s84_s18 }
  0xd1   :  { %s5384_s23 = scalar_lea.hbm %s5900_s12, 32 }
  0xd2   :  { %p5385_p2 = scmp.ne.s32.totalorder %s5900_s12, %s5384_s23  ;;  %p5388_p3 = scmp.lt.u32.totalorder %s5384_s23, %s5900_s12 }
  0xd4   :  { %p5390_p4 = pnand %p5388_p3, %p5385_p2 }
  0xd6   :  { %5393 = shalt.err (!%p5390_p4)
}
  0xd7   :  { %s5394_s24 = scalar_lea.vmem %s294_s25, 32  ;;  %p5399_p6 = scmp.lt.s32.totalorder %s294_s25, %s294_s25 }
  0xd8   :  { %p5395_p5 = scmp.ne.s32.totalorder %s294_s25, %s5394_s24  ;;  %p5400_p7 = scmp.lt.s32.totalorder %s5394_s24, %s5394_s24 }
  0xda   :  { %p5401_p8 = por %p5400_p7, %p5399_p6 }
  0xdc   :  { %p5402_p9 = pnand %p5401_p8, %p5395_p5 }
  0xde   :  { %5405 = shalt.err (!%p5402_p9)
}
  0xdf   :  { %296 = dma.hbm_to_vmem [thread:$0]  %s5900_s12, 32, %s294_s25, [#allocation33]  }
  0xe0   :  { %s5406_s27 = scalar_lea.hbm %s5795_s9, 2048 }
  0xe1   :  { %p5407_p10 = scmp.ne.s32.totalorder %s5795_s9, %s5406_s27  ;;  %p5410_p11 = scmp.lt.u32.totalorder %s5406_s27, %s5795_s9 }
  0xe3   :  { %p5412_p12 = pnand %p5410_p11, %p5407_p10 }
  0xe5   :  { %5415 = shalt.err (!%p5412_p12)
}
  0xe6   :  { %s5416_s22 = scalar_lea.vmem %s85_s18, 2048  ;;  %p5421_p0 = scmp.lt.s32.totalorder %s85_s18, %s85_s18 }
  0xe7   :  { %p5417_p13 = scmp.ne.s32.totalorder %s85_s18, %s5416_s22  ;;  %p5422_p1 = scmp.lt.s32.totalorder %s5416_s22, %s5416_s22 }
  0xe9   :  { %p5423_p2 = por %p5422_p1, %p5421_p0 }
  0xeb   :  { %p5424_p3 = pnand %p5423_p2, %p5417_p13 }
  0xed   :  { %5427 = shalt.err (!%p5424_p3)
}
  0xee   :  { %90 = dma.hbm_to_vmem [thread:$0]  %s5795_s9, 2048, %s85_s18, [#allocation3], %s5756_s1, %s5756_s1, %s5757_s3  }
  0xef   :  { %s5764_s12 = smov [#allocation7]   ;;  %s5765_s26 = smov [#allocation10]  }
  0xf0   :  { %s111_s6 = sshll.u32 %s5764_s12, 4  ;;  %s133_s2 = sshll.u32 %s5765_s26, 4  ;;  %s112_s6 = int_to_ptr.vmem [resolvable:$true] %s111_s6  ;;  %s134_s2 = int_to_ptr.vmem [resolvable:$true] %s133_s2 }
  0xf1   :  { %s5428_s7 = scalar_lea.hbm %s5810_s21, 48 }
  0xf2   :  { %p5429_p4 = scmp.ne.s32.totalorder %s5810_s21, %s5428_s7  ;;  %p5432_p5 = scmp.lt.u32.totalorder %s5428_s7, %s5810_s21 }
  0xf4   :  { %p5434_p6 = pnand %p5432_p5, %p5429_p4 }
  0xf6   :  { %5437 = shalt.err (!%p5434_p6)
}
  0xf7   :  { %s5438_s14 = scalar_lea.vmem %s112_s6, 48  ;;  %s5442_s10 = scalar_lea.vmem %s112_s6, 64 }
  0xf8   :  { %p5439_p7 = scmp.ne.s32.totalorder %s112_s6, %s5438_s14  ;;  %p5443_p8 = scmp.lt.s32.totalorder %s112_s6, %s112_s6 }
  0xf9   :  { %p5444_p9 = scmp.lt.s32.totalorder %s5442_s10, %s5438_s14 }
  0xfb   :  { %p5445_p10 = por %p5444_p9, %p5443_p8 }
  0xfd   :  { %p5446_p11 = pnand %p5445_p10, %p5439_p7 }
  0xff   :  { %5449 = shalt.err (!%p5446_p11)
}
 0x100   :  { %114 = dma.hbm_to_vmem [thread:$0]  %s5810_s21, 48, %s112_s6, [#allocation6]  }
 0x101   :  { %s5450_s9 = scalar_lea.hbm %s5820_s29, 16 }
 0x102   :  { %p5451_p12 = scmp.ne.s32.totalorder %s5820_s29, %s5450_s9  ;;  %p5454_p13 = scmp.lt.u32.totalorder %s5450_s9, %s5820_s29 }
 0x104   :  { %p5456_p0 = pnand %p5454_p13, %p5451_p12 }
 0x106   :  { %5459 = shalt.err (!%p5456_p0)
}
 0x107   :  { %s5460_s0 = scalar_lea.vmem %s134_s2, 16  ;;  %s5464_s20 = scalar_lea.vmem %s134_s2, 32 }
 0x108   :  { %p5461_p1 = scmp.ne.s32.totalorder %s134_s2, %s5460_s0  ;;  %p5465_p2 = scmp.lt.s32.totalorder %s134_s2, %s134_s2 }
 0x109   :  { %p5466_p3 = scmp.lt.s32.totalorder %s5464_s20, %s5460_s0 }
 0x10b   :  { %p5467_p4 = por %p5466_p3, %p5465_p2 }
 0x10d   :  { %p5468_p5 = pnand %p5467_p4, %p5461_p1 }
 0x10f   :  { %5471 = shalt.err (!%p5468_p5)
}
 0x110   :  { %136 = dma.hbm_to_vmem [thread:$0]  %s5820_s29, 16, %s134_s2, [#allocation9]  }
 0x111   :  { %s5766_s21 = smov [#allocation13]   ;;  %s5767_s16 = smov [#allocation16]  }
 0x112   :  { %s153_s15 = sshll.u32 %s5766_s21, 4  ;;  %s175_s13 = sshll.u32 %s5767_s16, 4  ;;  %s154_s15 = int_to_ptr.vmem [resolvable:$true] %s153_s15  ;;  %s176_s13 = int_to_ptr.vmem [resolvable:$true] %s175_s13 }
 0x113   :  { %s5472_s25 = scalar_lea.hbm %s5830_s8, 16 }
 0x114   :  { %p5473_p6 = scmp.ne.s32.totalorder %s5830_s8, %s5472_s25  ;;  %p5476_p7 = scmp.lt.u32.totalorder %s5472_s25, %s5830_s8 }
 0x116   :  { %p5478_p8 = pnand %p5476_p7, %p5473_p6 }
 0x118   :  { %5481 = shalt.err (!%p5478_p8)
}
 0x119   :  { %s5482_s11 = scalar_lea.vmem %s154_s15, 16  ;;  %s5486_s18 = scalar_lea.vmem %s154_s15, 32 }
 0x11a   :  { %p5483_p9 = scmp.ne.s32.totalorder %s154_s15, %s5482_s11  ;;  %p5487_p10 = scmp.lt.s32.totalorder %s154_s15, %s154_s15 }
 0x11b   :  { %p5488_p11 = scmp.lt.s32.totalorder %s5486_s18, %s5482_s11 }
 0x11d   :  { %p5489_p12 = por %p5488_p11, %p5487_p10 }
 0x11f   :  { %p5490_p13 = pnand %p5489_p12, %p5483_p9 }
 0x121   :  { %5493 = shalt.err (!%p5490_p13)
}
 0x122   :  { %s6589_s29 = sld [smem:[#allocation53_spill]] }
 0x123   :  { %156 = dma.hbm_to_vmem [thread:$0]  %s5830_s8, 16, %s154_s15, [#allocation12]  }
 0x128   :  { %s5494_s23 = scalar_lea.hbm %s6589_s29, 32 }
 0x129   :  { %p5495_p0 = scmp.ne.s32.totalorder %s6589_s29, %s5494_s23  ;;  %p5498_p1 = scmp.lt.u32.totalorder %s5494_s23, %s6589_s29 }
 0x12b   :  { %p5500_p2 = pnand %p5498_p1, %p5495_p0 }
 0x12d   :  { %5503 = shalt.err (!%p5500_p2)
}
 0x12e   :  { %s5504_s24 = scalar_lea.vmem %s176_s13, 32  ;;  %p5509_p4 = scmp.lt.s32.totalorder %s176_s13, %s176_s13 }
 0x12f   :  { %p5505_p3 = scmp.ne.s32.totalorder %s176_s13, %s5504_s24  ;;  %p5510_p5 = scmp.lt.s32.totalorder %s5504_s24, %s5504_s24 }
 0x131   :  { %p5511_p6 = por %p5510_p5, %p5509_p4 }
 0x133   :  { %p5512_p7 = pnand %p5511_p6, %p5505_p3 }
 0x135   :  { %5515 = shalt.err (!%p5512_p7)
}
 0x136   :  { %s6590_s27 = sld [smem:[#allocation54_spill]]  ;;  %s5768_s22 = smov [#allocation19]  }
 0x137   :  { %178 = dma.hbm_to_vmem [thread:$0]  %s6589_s29, 32, %s176_s13, [#allocation15]  }
 0x138   :  { %s197_s8 = sshll.u32 %s5768_s22, 4  ;;  %s5769_s12 = smov [#allocation22]   ;;  %s198_s8 = int_to_ptr.vmem [resolvable:$true] %s197_s8 }
 0x139   :  { %s217_s6 = sshll.u32 %s5769_s12, 4  ;;  %s218_s6 = int_to_ptr.vmem [resolvable:$true] %s217_s6 }
 0x13c   :  { %s5516_s26 = scalar_lea.hbm %s6590_s27, 16 }
 0x13d   :  { %p5517_p8 = scmp.ne.s32.totalorder %s6590_s27, %s5516_s26  ;;  %p5520_p9 = scmp.lt.u32.totalorder %s5516_s26, %s6590_s27 }
 0x13f   :  { %p5522_p10 = pnand %p5520_p9, %p5517_p8 }
 0x141   :  { %5525 = shalt.err (!%p5522_p10)
}
 0x142   :  { %s5526_s2 = scalar_lea.vmem %s198_s8, 16  ;;  %s5530_s7 = scalar_lea.vmem %s198_s8, 32 }
 0x143   :  { %p5527_p11 = scmp.ne.s32.totalorder %s198_s8, %s5526_s2  ;;  %p5531_p12 = scmp.lt.s32.totalorder %s198_s8, %s198_s8 }
 0x144   :  { %p5532_p13 = scmp.lt.s32.totalorder %s5530_s7, %s5526_s2 }
 0x146   :  { %p5533_p0 = por %p5532_p13, %p5531_p12 }
 0x148   :  { %p5534_p1 = pnand %p5533_p0, %p5527_p11 }
 0x14a   :  { %5537 = shalt.err (!%p5534_p1)
}
 0x14b   :  { %s6591_s14 = sld [smem:[#allocation55_spill]] }
 0x14c   :  { %200 = dma.hbm_to_vmem [thread:$0]  %s6590_s27, 16, %s198_s8, [#allocation18]  }
 0x151   :  { %s5538_s10 = scalar_lea.hbm %s6591_s14, 16 }
 0x152   :  { %p5539_p2 = scmp.ne.s32.totalorder %s6591_s14, %s5538_s10  ;;  %p5542_p3 = scmp.lt.u32.totalorder %s5538_s10, %s6591_s14 }
 0x154   :  { %p5544_p4 = pnand %p5542_p3, %p5539_p2 }
 0x156   :  { %5547 = shalt.err (!%p5544_p4)
}
 0x157   :  { %s5548_s9 = scalar_lea.vmem %s218_s6, 16  ;;  %s5552_s0 = scalar_lea.vmem %s218_s6, 32 }
 0x158   :  { %p5549_p5 = scmp.ne.s32.totalorder %s218_s6, %s5548_s9  ;;  %p5553_p6 = scmp.lt.s32.totalorder %s218_s6, %s218_s6 }
 0x159   :  { %p5554_p7 = scmp.lt.s32.totalorder %s5552_s0, %s5548_s9 }
 0x15b   :  { %p5555_p8 = por %p5554_p7, %p5553_p6 }
 0x15d   :  { %p5556_p9 = pnand %p5555_p8, %p5549_p5 }
 0x15f   :  { %5559 = shalt.err (!%p5556_p9)
}
 0x160   :  { %s6592_s20 = sld [smem:[#allocation56_spill]]  ;;  %s5770_s21 = smov [#allocation25]  }
 0x161   :  { %220 = dma.hbm_to_vmem [thread:$0]  %s6591_s14, 16, %s218_s6, [#allocation21]  }
 0x162   :  { %s239_s15 = sshll.u32 %s5770_s21, 4  ;;  %s5771_s16 = smov [#allocation28]   ;;  %s240_s15 = int_to_ptr.vmem [resolvable:$true] %s239_s15 }
 0x163   :  { %s261_s13 = sshll.u32 %s5771_s16, 4  ;;  %s262_s13 = int_to_ptr.vmem [resolvable:$true] %s261_s13 }
 0x166   :  { %s5560_s25 = scalar_lea.hbm %s6592_s20, 48 }
 0x167   :  { %p5561_p10 = scmp.ne.s32.totalorder %s6592_s20, %s5560_s25  ;;  %p5564_p11 = scmp.lt.u32.totalorder %s5560_s25, %s6592_s20 }
 0x169   :  { %p5566_p12 = pnand %p5564_p11, %p5561_p10 }
 0x16b   :  { %5569 = shalt.err (!%p5566_p12)
}
 0x16c   :  { %s5570_s11 = scalar_lea.vmem %s240_s15, 48  ;;  %s5574_s18 = scalar_lea.vmem %s240_s15, 64 }
 0x16d   :  { %p5571_p13 = scmp.ne.s32.totalorder %s240_s15, %s5570_s11  ;;  %p5575_p0 = scmp.lt.s32.totalorder %s240_s15, %s240_s15 }
 0x16e   :  { %p5576_p1 = scmp.lt.s32.totalorder %s5574_s18, %s5570_s11 }
 0x170   :  { %p5577_p2 = por %p5576_p1, %p5575_p0 }
 0x172   :  { %p5578_p3 = pnand %p5577_p2, %p5571_p13 }
 0x174   :  { %5581 = shalt.err (!%p5578_p3)
}
 0x175   :  { %s6593_s29 = sld [smem:[#allocation58_spill]] }
 0x176   :  { %242 = dma.hbm_to_vmem [thread:$0]  %s6592_s20, 48, %s240_s15, [#allocation24]  }
 0x17b   :  { %s5582_s23 = scalar_lea.hbm %s6593_s29, 16 }
 0x17c   :  { %p5583_p4 = scmp.ne.s32.totalorder %s6593_s29, %s5582_s23  ;;  %p5586_p5 = scmp.lt.u32.totalorder %s5582_s23, %s6593_s29 }
 0x17e   :  { %p5588_p6 = pnand %p5586_p5, %p5583_p4 }
 0x180   :  { %5591 = shalt.err (!%p5588_p6)
}
 0x181   :  { %s5592_s24 = scalar_lea.vmem %s262_s13, 16  ;;  %s5596_s27 = scalar_lea.vmem %s262_s13, 32 }
 0x182   :  { %p5593_p7 = scmp.ne.s32.totalorder %s262_s13, %s5592_s24  ;;  %p5597_p8 = scmp.lt.s32.totalorder %s262_s13, %s262_s13 }
 0x183   :  { %p5598_p9 = scmp.lt.s32.totalorder %s5596_s27, %s5592_s24 }
 0x185   :  { %p5599_p10 = por %p5598_p9, %p5597_p8 }
 0x187   :  { %p5600_p11 = pnand %p5599_p10, %p5593_p7 }
 0x189   :  { %5603 = shalt.err (!%p5600_p11)
}
 0x18a   :  { %s6594_s22 = sld [smem:[#allocation59_spill]]  ;;  %s5772_s8 = smov [#allocation31]  }
 0x18b   :  { %264 = dma.hbm_to_vmem [thread:$0]  %s6593_s29, 16, %s262_s13, [#allocation27]  }
 0x18c   :  { %s280_s12 = sshll.u32 %s5772_s8, 4  ;;  %s5773_s6 = smov [#allocation34]   ;;  %s281_s12 = int_to_ptr.vmem [resolvable:$true] %s280_s12 }
 0x18d   :  { %s302_s26 = sshll.u32 %s5773_s6, 4  ;;  %s303_s26 = int_to_ptr.vmem [resolvable:$true] %s302_s26 }
 0x190   :  { %s5604_s2 = scalar_lea.hbm %s6594_s22, 2048 }
 0x191   :  { %p5605_p12 = scmp.ne.s32.totalorder %s6594_s22, %s5604_s2  ;;  %p5608_p13 = scmp.lt.u32.totalorder %s5604_s2, %s6594_s22 }
 0x193   :  { %p5610_p0 = pnand %p5608_p13, %p5605_p12 }
 0x195   :  { %5613 = shalt.err (!%p5610_p0)
}
 0x196   :  { %s5614_s7 = scalar_lea.vmem %s281_s12, 2048  ;;  %p5619_p2 = scmp.lt.s32.totalorder %s281_s12, %s281_s12 }
 0x197   :  { %p5615_p1 = scmp.ne.s32.totalorder %s281_s12, %s5614_s7  ;;  %p5620_p3 = scmp.lt.s32.totalorder %s5614_s7, %s5614_s7 }
 0x199   :  { %p5621_p4 = por %p5620_p3, %p5619_p2 }
 0x19b   :  { %p5622_p5 = pnand %p5621_p4, %p5615_p1 }
 0x19d   :  { %5625 = shalt.err (!%p5622_p5)
}
 0x19e   :  { %s6595_s14 = sld [smem:[#allocation60_spill]] }
 0x19f   :  { %286 = dma.hbm_to_vmem [thread:$0]  %s6594_s22, 2048, %s281_s12, [#allocation30], %s5756_s1, %s5756_s1, %s5757_s3  }
 0x1a4   :  { %s5626_s10 = scalar_lea.hbm %s6595_s14, 2048 }
 0x1a5   :  { %p5627_p6 = scmp.ne.s32.totalorder %s6595_s14, %s5626_s10  ;;  %p5630_p7 = scmp.lt.u32.totalorder %s5626_s10, %s6595_s14 }
 0x1a7   :  { %p5632_p8 = pnand %p5630_p7, %p5627_p6 }
 0x1a9   :  { %5635 = shalt.err (!%p5632_p8)
}
 0x1aa   :  { %s5636_s9 = scalar_lea.vmem %s303_s26, 2048  ;;  %p5641_p10 = scmp.lt.s32.totalorder %s303_s26, %s303_s26 }
 0x1ab   :  { %p5637_p9 = scmp.ne.s32.totalorder %s303_s26, %s5636_s9  ;;  %p5642_p11 = scmp.lt.s32.totalorder %s5636_s9, %s5636_s9 }
 0x1ad   :  { %p5643_p12 = por %p5642_p11, %p5641_p10 }
 0x1af   :  { %p5644_p13 = pnand %p5643_p12, %p5637_p9 }
 0x1b1   :  { %5647 = shalt.err (!%p5644_p13)
}
 0x1b2   :  { %s6596_s0 = sld [smem:[#allocation61_spill]]  ;;  %s5774_s20 = smov [#allocation35]  }
 0x1b3   :  { %308 = dma.hbm_to_vmem [thread:$0]  %s6595_s14, 2048, %s303_s26, [#allocation33], %s5751_s28, %s5751_s28, %s5752_s17  }
 0x1b4   :  { %s315_s21 = sshll.u32 %s5774_s20, 4  ;;  %s316_s21 = int_to_ptr.vmem [resolvable:$true] %s315_s21 }
 0x1b8   :  { %s5648_s15 = scalar_lea.hbm %s6596_s0, 16 }
 0x1b9   :  { %p5649_p0 = scmp.ne.s32.totalorder %s6596_s0, %s5648_s15  ;;  %p5652_p1 = scmp.lt.u32.totalorder %s5648_s15, %s6596_s0 }
 0x1bb   :  { %p5654_p2 = pnand %p5652_p1, %p5649_p0 }
 0x1bd   :  { %5657 = shalt.err (!%p5654_p2)
}
 0x1be   :  { %s5658_s16 = scalar_lea.vmem %s316_s21, 16  ;;  %s5662_s13 = scalar_lea.vmem %s316_s21, 32 }
 0x1bf   :  { %p5659_p3 = scmp.ne.s32.totalorder %s316_s21, %s5658_s16  ;;  %p5663_p4 = scmp.lt.s32.totalorder %s316_s21, %s316_s21 }
 0x1c0   :  { %p5664_p5 = scmp.lt.s32.totalorder %s5662_s13, %s5658_s16 }
 0x1c2   :  { %p5665_p6 = por %p5664_p5, %p5663_p4 }
 0x1c4   :  { %p5666_p7 = pnand %p5665_p6, %p5659_p3 }
 0x1c6   :  { %5669 = shalt.err (!%p5666_p7)
}
 0x1c7   :  { %318 = dma.hbm_to_vmem [thread:$0]  %s6596_s0, 16, %s316_s21, [#allocation36]  }
 0x1c8   :  { %5692 = dma.done.wait [#allocation3], 2048  }
 0x1c9   :  { %5693 = vsyncadd [#allocation3], 4294965248 }
 0x1ca   :  { %5694 = dma.done.wait [#allocation6], 3120  }
 0x1cb   :  { %5695 = vsyncadd [#allocation6], 4294964176 }
 0x1cc   :  { %5696 = dma.done.wait [#allocation9], 1040  }
 0x1cd   :  { %5697 = vsyncadd [#allocation9], 4294966256 }
 0x1ce   :  { %5698 = dma.done.wait [#allocation12], 32  }
 0x1cf   :  { %5699 = vsyncadd [#allocation12], 4294967264 }
 0x1d0   :  { %5700 = dma.done.wait [#allocation15], 2080  }
 0x1d1   :  { %5701 = vsyncadd [#allocation15], 4294965216 }
 0x1d2   :  { %5702 = dma.done.wait [#allocation18], 2064  }
 0x1d3   :  { %5703 = vsyncadd [#allocation18], 4294965232 }
 0x1d4   :  { %5704 = dma.done.wait [#allocation21], 32  }
 0x1d5   :  { %5705 = vsyncadd [#allocation21], 4294967264 }
 0x1d6   :  { %5706 = dma.done.wait [#allocation24], 3120  }
 0x1d7   :  { %5707 = vsyncadd [#allocation24], 4294964176 }
 0x1d8   :  { %5708 = dma.done.wait [#allocation27], 32  }
 0x1d9   :  { %5709 = vsyncadd [#allocation27], 4294967264 }
 0x1da   :  { %5710 = dma.done.wait [#allocation30], 2064  }
 0x1db   :  { %5711 = vsyncadd [#allocation30], 4294965232 }
 0x1dc   :  { %5712 = dma.done.wait [#allocation33], 2080  }
 0x1dd   :  { %5713 = vsyncadd [#allocation33], 4294965216 }
 0x1de   :  { %5714 = dma.done.wait [#allocation36], 16  }
 0x1df   :  { %5715 = vsyncadd [#allocation36], 4294967280  ;;  %s6597_s17 = sld [smem:[#allocation51_spill]]  ;;  %v5775_v0 = vmov 0   ;;  %v410_v2 = vld [vmem:[#allocation2] sm:$0xff]  ;;  %v411_v3 = vld [vmem:[#allocation2 + $0x8] sm:$0xff]  ;;  %v396_v42 = vlaneseq }
 0x1e0   :  { %4907 = vset.pattern.permute.xlu0 %v5775_v0  ;;  %718 = vmatprep.mubr.bf16.mxu1 %v5775_v0  ;;  %v412_v4 = vld [vmem:[#allocation2 + $0x10] sm:$0xff]  ;;  %v413_v5 = vld [vmem:[#allocation2 + $0x18] sm:$0xff]  ;;  %v4811_v7 = vpack.c.bf16 %v411_v3, %v410_v2  ;;  %v414_v9 = vld [vmem:[#allocation2 + $0x20] sm:$0xff]  ;;  %v5776_v41 = vmov 0.0   ;;  %v5777_v45 = vmov 1.0   ;;  %s6598_s25 = sld [smem:[#allocation52_spill]] }
 0x1e1   :  { %v4815_v8 = vpack.c.bf16 %v413_v5, %v412_v4  ;;  %v415_v10 = vld [vmem:[#allocation2 + $0x28] sm:$0xff]  ;;  %v416_v11 = vld [vmem:[#allocation2 + $0x30] sm:$0xff]  ;;  %v417_v12 = vld [vmem:[#allocation2 + $0x38] sm:$0xff]  ;;  %v6054_v43 = vand.u32 127, %v396_v42  ;;  %vm5778_vm2 = vmmov 0   ;;  %v6080_v63 = vshrl.u32 %v396_v42, 7 }
 0x1e2   :  { %4812 = vmatprep.subr.bf16.mxu0 %v4811_v7  ;;  %v4819_v13 = vpack.c.bf16 %v415_v10, %v414_v9  ;;  %v4938_v14 = vld [vmem:[#allocation5 + $0x4] ss:$12 sps:$4 sm:$0xff]   ;;  %v4940_v15 = vld [vmem:[#allocation5] ss:$12 sps:$4 sm:$0xff]   ;;  %v4942_v17 = vld [vmem:[#allocation5 + $0x1c] ss:$12 sps:$4 sm:$0xff]   ;;  %v4823_v19 = vpack.c.bf16 %v417_v12, %v416_v11 }
 0x1e3   :  { %4814 = vmatpush3.bf16.msra.mxu0 %v4811_v7  ;;  %686 = vmatprep.subr.bf16.mxu1 %v4938_v14  ;;  %v418_v16 = vld [vmem:[#allocation2 + $0x40] sm:$0xff]  ;;  %v419_v20 = vld [vmem:[#allocation2 + $0x48] sm:$0xff]  ;;  %v4948_v22 = vld [vmem:[#allocation5 + $0x30] ss:$12 sps:$4 sm:$0xff]   ;;  %v553_v3 = vsub.s32 2, %v6080_v63  ;;  %v6088_v5 = vsub.s32 0, %v6080_v63  ;;  %vm506_vm5 = vcmp.gt.s32.totalorder %v6054_v43, %v6080_v63 }
 0x1e4   :  { %4816 = vmatprep.subr.bf16.mxu0 %v4815_v8  ;;  %687 = vmatpush1.bf16.msra.mxu1 %v4940_v15  ;;  %v4944_v18 = vld [vmem:[#allocation5 + $0x18] ss:$12 sps:$4 sm:$0xff]   ;;  %v4946_v21 = vld [vmem:[#allocation5 + $0x34] ss:$12 sps:$4 sm:$0xff]   ;;  %v4827_v25 = vpack.c.bf16 %v419_v20, %v418_v16  ;;  %v423_v29 = vld [vmem:[#allocation2 + $0x68] sm:$0xff]  ;;  %vm788_vm3 = vcmask 261120  }
 0x1e5   :  { %v394_v1 = vld [vmem:[%s6597_s17] sm:$0xff]  ;;  %v395_v6 = vld [vmem:[%s6597_s17 + $0x8] sm:$0xff]  ;;  %688 = vmatprep.subr.bf16.mxu1 %v4942_v17  ;;  %v420_v23 = vld [vmem:[#allocation2 + $0x50] sm:$0xff]  ;;  %vm909_vm4 = vcmask 1043456   ;;  %vm881_vm6 = vcmask 64512   ;;  %s5779_s11 = smov 96  }
 0x1e6   :  { %399 = vperm.xlu0 %4907, %v394_v1   ;;  %v421_v24 = vld [vmem:[#allocation2 + $0x58] sm:$0xff]  ;;  %v4952_v27 = vld [vmem:[#allocation5 + $0x48] ss:$12 sps:$4 sm:$0xff]   ;;  %v422_v28 = vld [vmem:[#allocation2 + $0x60] sm:$0xff]  ;;  %v6083_v1 = vsub.s32 1, %v6080_v63  ;;  %s5780_s18 = smov 32  }
 0x1e7   :  { %4818 = vmatpush3.bf16.msra.mxu0 %v4815_v8  ;;  %v4950_v26 = vld [vmem:[#allocation5 + $0x4c] ss:$12 sps:$4 sm:$0xff]   ;;  %v4831_v30 = vpack.c.bf16 %v421_v24, %v420_v23  ;;  %v4954_v31 = vld [vmem:[#allocation5 + $0x64] ss:$12 sps:$4 sm:$0xff]   ;;  %v4835_v35 = vpack.c.bf16 %v423_v29, %v422_v28  ;;  %v4958_v36 = vld [vmem:[#allocation5 + $0x7c] ss:$12 sps:$4 sm:$0xff]  }
 0x1e8   :  { %4820 = vmatprep.subr.bf16.mxu0 %v4819_v13  ;;  %689 = vmatpush1.bf16.msra.mxu1 %v4944_v18  ;;  %v4956_v32 = vld [vmem:[#allocation5 + $0x60] ss:$12 sps:$4 sm:$0xff]   ;;  %v424_v33 = vld [vmem:[#allocation2 + $0x70] sm:$0xff]  ;;  %v425_v34 = vld [vmem:[#allocation2 + $0x78] sm:$0xff]  ;;  %vm1685_vm7 = vcmask 523264   ;;  %vm1688_vm8 = vcmask 785408  }
 0x1e9   :  { %690 = vmatprep.subr.bf16.mxu1 %v4946_v21  ;;  %v4960_v37 = vld [vmem:[#allocation5 + $0x78] ss:$12 sps:$4 sm:$0xff]   ;;  %v4839_v38 = vpack.c.bf16 %v425_v34, %v424_v33  ;;  %v4962_v39 = vld [vmem:[#allocation5 + $0x94] ss:$12 sps:$4 sm:$0xff]   ;;  %v4964_v40 = vld [vmem:[#allocation5 + $0x90] ss:$12 sps:$4 sm:$0xff]  }
 0x1ea   :  { %402 = vperm.xlu0 %4907, %v395_v6   ;;  %v4941_v46 = vld [vmem:[#allocation5 + $0x8] ss:$12 sps:$4 sm:$0xff]   ;;  %v4945_v48 = vld [vmem:[#allocation5 + $0x20] ss:$12 sps:$4 sm:$0xff]   ;;  %v4949_v49 = vld [vmem:[#allocation5 + $0x38] ss:$12 sps:$4 sm:$0xff]  }
 0x1eb   :  { %4822 = vmatpush3.bf16.msra.mxu0 %v4819_v13  ;;  %v4953_v50 = vld [vmem:[#allocation5 + $0x50] ss:$12 sps:$4 sm:$0xff]   ;;  %v4957_v51 = vld [vmem:[#allocation5 + $0x68] ss:$12 sps:$4 sm:$0xff]   ;;  %v4961_v52 = vld [vmem:[#allocation5 + $0x80] ss:$12 sps:$4 sm:$0xff]  }
 0x1ec   :  { %4824 = vmatprep.subr.bf16.mxu0 %v4823_v19  ;;  %691 = vmatpush1.bf16.msra.mxu1 %v4948_v22  ;;  %v4965_v53 = vld [vmem:[#allocation5 + $0x98] ss:$12 sps:$4 sm:$0xff]   ;;  %v4968_v55 = vld [vmem:[#allocation5 + $0xa8] ss:$12 sps:$4 sm:$0xff]   ;;  %v4969_v56 = vld [vmem:[#allocation5 + $0xb0] ss:$12 sps:$4 sm:$0xff]  }
 0x1ed   :  { %692 = vmatprep.subr.bf16.mxu1 %v4950_v26  ;;  %v4966_v54 = vld [vmem:[#allocation5 + $0xac] ss:$12 sps:$4 sm:$0xff]   ;;  %v501_v57 = vld [vmem:[%s6598_s25] sm:$0xff]  ;;  %s6600_s29 = sld [smem:[#allocation62_spill]] }
 0x1ee   :  { %v541_v2 = vld [vmem:[#allocation7] sm:$0x7] }
 0x1ef   :  { %4826 = vmatpush3.bf16.msra.mxu0 %v4823_v19  ;;  %v550_v4 = vrot.slane %v541_v2, %v6083_v1  ;;  %v554_v8 = vrot.slane %v541_v2, %v553_v3  ;;  %v546_v17 = vrot.slane %v541_v2, %v6088_v5 }
 0x1f0   :  { %4828 = vmatprep.subr.bf16.mxu0 %v4827_v25  ;;  %693 = vmatpush1.bf16.msra.mxu1 %v4952_v27 }
 0x1f1   :  { %694 = vmatprep.subr.bf16.mxu1 %v4954_v31 }
 0x1f3   :  { %4830 = vmatpush3.bf16.msra.mxu0 %v4827_v25 }
 0x1f4   :  { %4832 = vmatprep.subr.bf16.mxu0 %v4831_v30  ;;  %695 = vmatpush1.bf16.msra.mxu1 %v4956_v32 }
 0x1f5   :  { %696 = vmatprep.subr.bf16.mxu1 %v4958_v36 }
 0x1f7   :  { %4834 = vmatpush3.bf16.msra.mxu0 %v4831_v30  ;;  %v6125_v30 = vsel %vm506_vm5, -1e+30, %v5776_v41 }
 0x1f8   :  { %4836 = vmatprep.subr.bf16.mxu0 %v4835_v35  ;;  %697 = vmatpush1.bf16.msra.mxu1 %v4960_v37 }
 0x1f9   :  { %698 = vmatprep.subr.bf16.mxu1 %v4962_v39 }
 0x1fb   :  { %4838 = vmatpush3.bf16.msra.mxu0 %v4835_v35 }
 0x1fc   :  { %4840 = vmatprep.subr.bf16.mxu0 %v4839_v38  ;;  %699 = vmatpush1.bf16.msra.mxu1 %v4964_v40 }
 0x1fd   :  { %700 = vmatprep.subr.bf16.mxu1 %v4966_v54 }
 0x1ff   :  { %4842 = vmatpush3.bf16.msra.mxu0 %v4839_v38 }
 0x200   :  { %4519 = vmatprep.subr.bf16.mxu0 %v5776_v41  ;;  %701 = vmatpush1.bf16.msra.mxu1 %v4968_v55 }
 0x201   :  { %4539 = vmatprep.subr.bf16.mxu1 %v5776_v41 }
 0x265   :  { %v400_v44 = vpop.permute.xlu0 %399 }
 0x266   :  { %vm404_vm0 = vcmp.eq.s32.totalorder %v400_v44, %v6054_v43 }
 0x267   :  { %4516 = vmatprep.mubr.msk.f32.mxu0 %vm404_vm0, %v5777_v45 }
 0x269   :  { %v403_v47 = vpop.permute.xlu0 %402 }
 0x26a   :  { %vm405_vm1 = vcmp.eq.s32.totalorder %v403_v47, %v6054_v43 }
 0x26b   :  { %4517 = vmatmul.mubr.msk.f32.vlgmr.msra.gmra.mrb[0].mxu0 %vm405_vm1, %v5777_v45 }
 0x26c   :  { %4520 = vmatpush3.bf16.msra.mxu0 %v4941_v46  ;;  %4535 = vmatprep.mubr.msk.bf16.mxu0 %vm5778_vm2, %v5776_v41 }
 0x26d   :  { %4521 = vmatprep.subr.bf16.mxu0 %v5776_v41 }
 0x270   :  { %4522 = vmatpush3.bf16.msra.mxu0 %v4945_v48 }
 0x271   :  { %4523 = vmatprep.subr.bf16.mxu0 %v5776_v41 }
 0x274   :  { %4524 = vmatpush3.bf16.msra.mxu0 %v4949_v49 }
 0x275   :  { %4525 = vmatprep.subr.bf16.mxu0 %v5776_v41 }
 0x278   :  { %4526 = vmatpush3.bf16.msra.mxu0 %v4953_v50 }
 0x279   :  { %4527 = vmatprep.subr.bf16.mxu0 %v5776_v41 }
 0x27c   :  { %4528 = vmatpush3.bf16.msra.mxu0 %v4957_v51 }
 0x27d   :  { %4529 = vmatprep.subr.bf16.mxu0 %v5776_v41 }
 0x280   :  { %4530 = vmatpush3.bf16.msra.mxu0 %v4961_v52 }
 0x281   :  { %4531 = vmatprep.subr.bf16.mxu0 %v5776_v41 }
 0x284   :  { %4532 = vmatpush3.bf16.msra.mxu0 %v4965_v53 }
 0x285   :  { %4533 = vmatprep.subr.bf16.mxu0 %v5776_v41 }
 0x288   :  { %4534 = vmatpush3.bf16.msra.mxu0 %v4969_v56 }
 0x289   :  { %4563 = vmatprep.subr.bf16.mxu0 %v5776_v41 }
 0x33e   :  { %v4518_v58 = vpop.f32.mrb[0].mxu0 }
 0x33f   :  { %v6070_v59 = vadd.f32 %v4518_v58, %v501_v57  ;;  %v492_v60 = vpop.f32.mrb[1].mxu0 }
 0x340   :  { %v6072_v61 = vadd.f32 %v501_v57, %v492_v60 }
 0x342   :  { %v508_v62 = vpack.c.bf16 %v6070_v59, %v6072_v61 }
 0x344   :  { %719 = vmatmul.mubr.bf16.vlgmr.msra.gmra.mrb[0].mxu1 %v508_v62  ;;  %4536 = vmatmul.mubr.bf16.vlgmr.msra.gmra.mrb[4].mxu0 %v508_v62 }
 0x345   :  { %4541 = vmatprep.mubr.msk.bf16.mxu1 %vm5778_vm2, %v5776_v41  ;;  %4565 = vmatprep.mubr.msk.bf16.mxu0 %vm5778_vm2, %v5776_v41 }
 0x417   :  { %v720_v6 = vpop.f32.mrb[0].mxu1  ;;  %v763_v7 = vpop.f32.mrb[4].mxu0 }
 0x418   :  { %v722_v9 = vpop.f32.mrb[1].mxu1  ;;  %v4537_v10 = vpop.f32.mrb[5].mxu0  ;;  %v721_v21 = vadd.f32 %v720_v6, %v546_v17  ;;  %v764_v24 = vadd.f32 %v763_v7, %v554_v8 }
 0x419   :  { %v723_v11 = vadd.f32 %v722_v9, %v550_v4  ;;  %v724_v12 = vpop.f32.mrb[2].mxu1  ;;  %v766_v13 = vpop.f32.mrb[6].mxu0 }
 0x41a   :  { %v6092_v14 = vadd.f32 %v766_v13, %v554_v8  ;;  %v726_v15 = vpop.f32.mrb[3].mxu1  ;;  %v4538_v16 = vpop.f32.mrb[7].mxu0  ;;  %v6102_v23 = vpack.c.bf16 %v721_v21, %v721_v21  ;;  %v725_v26 = vadd.f32 %v724_v12, %v546_v17  ;;  %v6111_v27 = vpack.c.bf16 %v764_v24, %v764_v24 }
 0x41b   :  { %v6095_v18 = vpack.c.bf16 %v723_v11, %v723_v11  ;;  %v727_v19 = vadd.f32 %v726_v15, %v550_v4 }
 0x41c   :  { %v6113_v28 = vpack.c.bf16 %v725_v26, %v725_v26  ;;  %v911_v29 = vsel %vm909_vm4, %v6111_v27, 0  ;;  %v6145_v62 = vpack.c.bf16 %v6092_v14, %v6092_v14 }
 0x41d   :  { %v793_v20 = vsel %vm788_vm3, %v6095_v18, 0  ;;  %v6100_v22 = vpack.c.bf16 %v727_v19, %v727_v19 }
 0x41e   :  { %4540 = vmatpush3.bf16.xpose.msra.mxu1 %v793_v20  ;;  %v957_v7 = vsel %vm909_vm4, %v6145_v62, 0 }
 0x41f   :  { %4545 = vmatprep.subr.bf16.mxu1 %v5776_v41  ;;  %v839_v25 = vsel %vm788_vm3, %v6100_v22, 0 }
 0x425   :  { %4542 = vmatmul.mubr.msk.bf16.vlgmr.msra.gmra.mrb[4].mxu1 %vm788_vm3, %v6102_v23 }
 0x426   :  { %4546 = vmatpush3.bf16.xpose.msra.mxu1 %v839_v25  ;;  %4547 = vmatprep.mubr.msk.bf16.mxu1 %vm5778_vm2, %v5776_v41 }
 0x427   :  { %4551 = vmatprep.subr.bf16.mxu1 %v5776_v41 }
 0x42d   :  { %4548 = vmatmul.mubr.msk.bf16.vlgmr.msra.gmra.mrb[8].mxu1 %vm788_vm3, %v6113_v28 }
 0x42e   :  { %4552 = vmatpush3.bf16.msra.mxu1 %v911_v29  ;;  %4553 = vmatprep.mubr.msk.bf16.mxu1 %vm5778_vm2, %v5776_v41 }
 0x42f   :  { %4557 = vmatprep.subr.bf16.mxu1 %v5776_v41 }
 0x4f8   :  { %v829_v31 = vpop.f32.mrb[4].mxu1 }
 0x4f9   :  { %v830_v32 = vadd.f32 %v829_v31, %v6125_v30  ;;  %v4543_v33 = vpop.f32.mrb[5].mxu1 }
 0x4fa   :  { %v832_v34 = vpop.f32.mrb[6].mxu1 }
 0x4fb   :  { %v4544_v35 = vpop.f32.mrb[7].mxu1  ;;  %v882_v36 = vsel %vm881_vm6, %v830_v32, -inf }
 0x4fc   :  { %883 = vmax.xlane.f32.xlu1 %v882_v36 }
 0x500   :  { %v875_v37 = vpop.f32.mrb[8].mxu1 }
 0x501   :  { %v876_v38 = vadd.f32 %v875_v37, %v6125_v30  ;;  %v4549_v39 = vpop.f32.mrb[9].mxu1 }
 0x502   :  { %v878_v40 = vpop.f32.mrb[10].mxu1 }
 0x503   :  { %v4550_v42 = vpop.f32.mrb[11].mxu1  ;;  %v885_v43 = vsel %vm881_vm6, %v876_v38, -inf }
 0x504   :  { %886 = vmax.xlane.f32.xlu1 %v885_v43 }
 0x515   :  { %1001 = vrot.lane.b32.xlu1 %v6095_v18, %s5779_s11 }
 0x519   :  { %1051 = vrot.lane.b32.xlu1 %v6100_v22, %s5779_s11 }
 0x589   :  { %v884_v44 = vpop.xlane.xlu1 %883 }
 0x58a   :  { %v888_v45 = vsub.f32 %v830_v32, %v884_v44 }
 0x58c   :  { %v890_v46 = vmul.f32 1.442695, %v888_v45 }
 0x58e   :  { %5106 = vpow2.f32 %v890_v46 }
 0x591   :  { %v887_v47 = vpop.xlane.xlu1 %886 }
 0x592   :  { %v889_v48 = vsub.f32 %v876_v38, %v887_v47 }
 0x594   :  { %v892_v49 = vmul.f32 1.442695, %v889_v48 }
 0x595   :  { %v1002_v50 = vpop.permute.xlu1 %1001 }
 0x596   :  { %5108 = vpow2.f32 %v892_v49  ;;  %v1007_v51 = vsel %vm788_vm3, %v1002_v50, 0 }
 0x597   :  { %4564 = vmatpush3.bf16.xpose.msra.mxu0 %v1007_v51 }
 0x598   :  { %v5107_v52 = vpop.eup %5106  ;;  %4575 = vmatprep.subr.bf16.mxu0 %v5776_v41 }
 0x599   :  { %v894_v53 = vsel %vm881_vm6, %v5107_v52, 0.0  ;;  %v1052_v57 = vpop.permute.xlu1 %1051 }
 0x59a   :  { %895 = vadd.xlane.f32.xlu0 %v894_v53  ;;  %v1057_v11 = vsel %vm788_vm3, %v1052_v57, 0 }
 0x5a0   :  { %v5109_v54 = vpop.eup %5108 }
 0x5a1   :  { %v897_v55 = vsel %vm881_vm6, %v5109_v54, 0.0 }
 0x5a2   :  { %898 = vadd.xlane.f32.xlu1 %v897_v55 }
 0x5b3   :  { %999 = vrot.lane.b32.xlu1 %v6102_v23, %s5779_s11 }
 0x5b7   :  { %1049 = vrot.lane.b32.xlu1 %v6113_v28, %s5779_s11 }
 0x627   :  { %v896_v56 = vpop.xlane.xlu0 %895 }
 0x628   :  { %5110 = vrcp.f32 %v896_v56 }
 0x62f   :  { %v899_v58 = vpop.xlane.xlu1 %898 }
 0x630   :  { %5112 = vrcp.f32 %v899_v58 }
 0x632   :  { %v5111_v60 = vpop.eup %5110 }
 0x633   :  { %v902_v2 = vmul.f32 %v5111_v60, %v5107_v52  ;;  %v1000_v4 = vpop.permute.xlu1 %999 }
 0x634   :  { %4566 = vmatmul.mubr.msk.bf16.vlgmr.msra.gmra.mrb[8].mxu0 %vm788_vm3, %v1000_v4 }
 0x635   :  { %v904_v6 = vpack.c.bf16 %v902_v2, %v902_v2  ;;  %4577 = vmatprep.mubr.msk.bf16.mxu0 %vm5778_vm2, %v5776_v41 }
 0x637   :  { %4554 = vmatmul.mubr.msk.bf16.vlgmr.msra.gmra.mrb[12].mxu1 %vm881_vm6, %v904_v6  ;;  %v1050_v12 = vpop.permute.xlu1 %1049 }
 0x638   :  { %4558 = vmatpush3.bf16.msra.mxu1 %v957_v7  ;;  %4559 = vmatprep.mubr.msk.bf16.mxu1 %vm5778_vm2, %v5776_v41 }
 0x639   :  { %4569 = vmatprep.subr.bf16.mxu1 %v5776_v41 }
 0x63a   :  { %v5113_v8 = vpop.eup %5112 }
 0x63b   :  { %v903_v9 = vmul.f32 %v5113_v8, %v5109_v54 }
 0x63d   :  { %v905_v10 = vpack.c.bf16 %v903_v9, %v903_v9 }
 0x63f   :  { %4560 = vmatmul.mubr.msk.bf16.vlgmr.msra.gmra.mrb[16].mxu1 %vm881_vm6, %v905_v10 }
 0x640   :  { %4571 = vmatprep.mubr.msk.bf16.mxu1 %vm5778_vm2, %v5776_v41 }
 0x641   :  { %4570 = vmatpush3.bf16.xpose.msra.mxu1 %v1057_v11 }
 0x642   :  { %4581 = vmatprep.subr.bf16.mxu1 %v5776_v41 }
 0x648   :  { %4572 = vmatmul.mubr.msk.bf16.vlgmr.msra.gmra.mrb[20].mxu1 %vm788_vm3, %v1050_v12 }
 0x649   :  { %4583 = vmatprep.mubr.msk.bf16.mxu1 %vm5778_vm2, %v5776_v41 }
 0x707   :  { %v1043_v13 = vpop.f32.mrb[8].mxu0 }
 0x708   :  { %v1044_v14 = vadd.f32 %v1043_v13, %v6125_v30  ;;  %v4567_v15 = vpop.f32.mrb[9].mxu0 }
 0x709   :  { %v1046_v16 = vpop.f32.mrb[10].mxu0 }
 0x70a   :  { %v6165_v17 = vpop.f32.mrb[12].mxu1  ;;  %v4568_v19 = vpop.f32.mrb[11].mxu0  ;;  %v1099_v20 = vsel %vm881_vm6, %v1044_v14, -inf }
 0x70b   :  { %1100 = vmax.xlane.f32.xlu0 %v1099_v20  ;;  %v4555_v21 = vpop.f32.mrb[13].mxu1 }
 0x70c   :  { %v950_v24 = vpop.f32.mrb[14].mxu1 }
 0x70d   :  { %v4556_v25 = vpop.f32.mrb[15].mxu1 }
 0x712   :  { %v6168_v26 = vpop.f32.mrb[16].mxu1 }
 0x713   :  { %v4561_v29 = vpop.f32.mrb[17].mxu1 }
 0x714   :  { %v996_v31 = vpop.f32.mrb[18].mxu1 }
 0x715   :  { %v4562_v32 = vpop.f32.mrb[19].mxu1 }
 0x71b   :  { %v1093_v33 = vpop.f32.mrb[20].mxu1 }
 0x71c   :  { %v1094_v34 = vadd.f32 %v1093_v33, %v6125_v30  ;;  %v4573_v35 = vpop.f32.mrb[21].mxu1 }
 0x71d   :  { %v1096_v36 = vpop.f32.mrb[22].mxu1 }
 0x71e   :  { %v4574_v37 = vpop.f32.mrb[23].mxu1  ;;  %v1102_v38 = vsel %vm881_vm6, %v1094_v34, -inf }
 0x71f   :  { %1103 = vmax.xlane.f32.xlu1 %v1102_v38 }
 0x730   :  { %1271 = vrot.lane.b32.xlu1 %v6100_v22, %s5751_s28 }
 0x798   :  { %v1101_v39 = vpop.xlane.xlu0 %1100 }
 0x799   :  { %v1105_v40 = vsub.f32 %v1044_v14, %v1101_v39 }
 0x79b   :  { %v1107_v42 = vmul.f32 1.442695, %v1105_v40 }
 0x79d   :  { %5114 = vpow2.f32 %v1107_v42 }
 0x7a7   :  { %v5115_v43 = vpop.eup %5114 }
 0x7a8   :  { %v1111_v44 = vsel %vm881_vm6, %v5115_v43, 0.0 }
 0x7a9   :  { %1112 = vadd.xlane.f32.xlu0 %v1111_v44 }
 0x7ac   :  { %v1104_v45 = vpop.xlane.xlu1 %1103 }
 0x7ad   :  { %v1106_v46 = vsub.f32 %v1094_v34, %v1104_v45 }
 0x7af   :  { %v1109_v47 = vmul.f32 1.442695, %v1106_v46 }
 0x7b0   :  { %v1272_v8 = vpop.permute.xlu1 %1271 }
 0x7b1   :  { %5116 = vpow2.f32 %v1109_v47  ;;  %v1277_v10 = vsel %vm788_vm3, %v1272_v8, 0 }
 0x7bb   :  { %v5117_v48 = vpop.eup %5116 }
 0x7bc   :  { %v1114_v49 = vsel %vm881_vm6, %v5117_v48, 0.0 }
 0x7bf   :  { %1123 = vrot.lane.b32.xlu0 %v6111_v27, %s5779_s11 }
 0x7c3   :  { %1171 = vrot.lane.b32.xlu0 %v6145_v62, %s5779_s11 }
 0x7e2   :  { %1115 = vadd.xlane.f32.xlu0 %v1114_v49 }
 0x7f8   :  { %1221 = vrot.lane.b32.xlu0 %v6095_v18, %s5751_s28 }
 0x7fc   :  { %1219 = vrot.lane.b32.xlu0 %v6102_v23, %s5751_s28 }
 0x800   :  { %1269 = vrot.lane.b32.xlu0 %v6113_v28, %s5751_s28 }
 0x836   :  { %v1113_v50 = vpop.xlane.xlu0 %1112 }
 0x837   :  { %5118 = vrcp.f32 %v1113_v50 }
 0x83a   :  { %v1124_v51 = vpop.permute.xlu0 %1123 }
 0x83b   :  { %v1129_v52 = vsel %vm909_vm4, %v1124_v51, 0 }
 0x83c   :  { %4576 = vmatpush3.bf16.msra.mxu0 %v1129_v52 }
 0x83d   :  { %4587 = vmatprep.subr.bf16.mxu0 %v5776_v41 }
 0x83e   :  { %v1172_v53 = vpop.permute.xlu0 %1171 }
 0x83f   :  { %v1177_v54 = vsel %vm909_vm4, %v1172_v53, 0 }
 0x840   :  { %4582 = vmatpush3.bf16.msra.mxu1 %v1177_v54 }
 0x841   :  { %v5119_v55 = vpop.eup %5118  ;;  %4593 = vmatprep.subr.bf16.mxu1 %v5776_v41 }
 0x842   :  { %v1119_v56 = vmul.f32 %v5119_v55, %v5115_v43 }
 0x844   :  { %v1121_v57 = vpack.c.bf16 %v1119_v56, %v1119_v56 }
 0x846   :  { %4578 = vmatmul.mubr.msk.bf16.vlgmr.msra.gmra.mrb[12].mxu0 %vm881_vm6, %v1121_v57 }
 0x847   :  { %4589 = vmatprep.mubr.msk.bf16.mxu0 %vm5778_vm2, %v5776_v41 }
 0x86f   :  { %v1116_v58 = vpop.xlane.xlu0 %1115 }
 0x870   :  { %5120 = vrcp.f32 %v1116_v58 }
 0x873   :  { %v1222_v60 = vpop.permute.xlu0 %1221 }
 0x874   :  { %v1227_v2 = vsel %vm788_vm3, %v1222_v60, 0 }
 0x875   :  { %4588 = vmatpush3.bf16.xpose.msra.mxu0 %v1227_v2 }
 0x876   :  { %4599 = vmatprep.subr.bf16.mxu0 %v5776_v41 }
 0x877   :  { %v1220_v7 = vpop.permute.xlu0 %1219 }
 0x87a   :  { %v5121_v4 = vpop.eup %5120 }
 0x87b   :  { %v1120_v6 = vmul.f32 %v5121_v4, %v5117_v48  ;;  %v1270_v11 = vpop.permute.xlu0 %1269 }
 0x87c   :  { %4590 = vmatmul.mubr.msk.bf16.vlgmr.msra.gmra.mrb[16].mxu0 %vm788_vm3, %v1220_v7 }
 0x87d   :  { %v1122_v9 = vpack.c.bf16 %v1120_v6, %v1120_v6  ;;  %4601 = vmatprep.mubr.msk.bf16.mxu0 %vm5778_vm2, %v5776_v41 }
 0x87f   :  { %4584 = vmatmul.mubr.msk.bf16.vlgmr.msra.gmra.mrb[24].mxu1 %vm881_vm6, %v1122_v9 }
 0x880   :  { %4594 = vmatpush3.bf16.xpose.msra.mxu1 %v1277_v10  ;;  %4595 = vmatprep.mubr.msk.bf16.mxu1 %vm5778_vm2, %v5776_v41 }
 0x881   :  { %4605 = vmatprep.subr.bf16.mxu1 %v5776_v41 }
 0x887   :  { %4596 = vmatmul.mubr.msk.bf16.vlgmr.msra.gmra.mrb[28].mxu1 %vm788_vm3, %v1270_v11 }
 0x888   :  { %4607 = vmatprep.mubr.msk.bf16.mxu1 %vm5778_vm2, %v5776_v41 }
 0x919   :  { %v6206_v12 = vpop.f32.mrb[12].mxu0 }
 0x91a   :  { %v4579_v13 = vpop.f32.mrb[13].mxu0 }
 0x91b   :  { %v1168_v14 = vpop.f32.mrb[14].mxu0 }
 0x91c   :  { %v4580_v15 = vpop.f32.mrb[15].mxu0 }
 0x94f   :  { %v1263_v16 = vpop.f32.mrb[16].mxu0 }
 0x950   :  { %v1264_v19 = vadd.f32 %v1263_v16, %v6125_v30  ;;  %v4591_v20 = vpop.f32.mrb[17].mxu0 }
 0x951   :  { %v1266_v21 = vpop.f32.mrb[18].mxu0 }
 0x952   :  { %v6209_v24 = vpop.f32.mrb[24].mxu1  ;;  %v4592_v25 = vpop.f32.mrb[19].mxu0  ;;  %v1319_v29 = vsel %vm881_vm6, %v1264_v19, -inf }
 0x953   :  { %v4908_v31 = vpack.i.bf16 %v6209_v24, %v6206_v12  ;;  %1320 = vmax.xlane.f32.xlu0 %v1319_v29  ;;  %v4585_v32 = vpop.f32.mrb[25].mxu1 }
 0x954   :  { %v1216_v33 = vpop.f32.mrb[26].mxu1 }
 0x955   :  { %v4586_v34 = vpop.f32.mrb[27].mxu1 }
 0x95a   :  { %v1313_v35 = vpop.f32.mrb[28].mxu1 }
 0x95b   :  { %v1314_v36 = vadd.f32 %v1313_v35, %v6125_v30  ;;  %v4597_v37 = vpop.f32.mrb[29].mxu1 }
 0x95c   :  { %v1316_v38 = vpop.f32.mrb[30].mxu1 }
 0x95d   :  { %v4598_v39 = vpop.f32.mrb[31].mxu1  ;;  %v1322_v40 = vsel %vm881_vm6, %v1314_v36, -inf }
 0x95e   :  { %1323 = vmax.xlane.f32.xlu1 %v1322_v40 }
 0x96f   :  { %1391 = vrot.lane.b32.xlu1 %v6145_v62, %s5751_s28 }
 0x973   :  { %1441 = vrot.lane.b32.xlu1 %v6095_v18, %s5780_s18 }
 0x977   :  { %1439 = vrot.lane.b32.xlu1 %v6102_v23, %s5780_s18 }
 0x9e0   :  { %v1321_v42 = vpop.xlane.xlu0 %1320 }
 0x9e1   :  { %v1325_v43 = vsub.f32 %v1264_v19, %v1321_v42 }
 0x9e3   :  { %v1327_v44 = vmul.f32 1.442695, %v1325_v43 }
 0x9e5   :  { %5122 = vpow2.f32 %v1327_v44 }
 0x9eb   :  { %v1324_v45 = vpop.xlane.xlu1 %1323 }
 0x9ec   :  { %v1326_v18 = vsub.f32 %v1314_v36, %v1324_v45 }
 0x9ee   :  { %v1329_v23 = vmul.f32 1.442695, %v1326_v18 }
 0x9ef   :  { %v5123_v46 = vpop.eup %5122  ;;  %v1392_v47 = vpop.permute.xlu1 %1391 }
 0x9f0   :  { %v1397_v48 = vsel %vm909_vm4, %v1392_v47, 0  ;;  %v1331_v49 = vsel %vm881_vm6, %v5123_v46, 0.0  ;;  %5124 = vpow2.f32 %v1329_v23 }
 0x9f1   :  { %1332 = vadd.xlane.f32.xlu0 %v1331_v49  ;;  %4606 = vmatpush3.bf16.msra.mxu1 %v1397_v48 }
 0x9f2   :  { %4617 = vmatprep.subr.bf16.mxu1 %v5776_v41 }
 0x9f3   :  { %v1442_v57 = vpop.permute.xlu1 %1441 }
 0x9f4   :  { %v1447_v60 = vsel %vm788_vm3, %v1442_v57, 0 }
 0x9fa   :  { %v5125_v50 = vpop.eup %5124 }
 0x9fb   :  { %v1334_v51 = vsel %vm881_vm6, %v5125_v50, 0.0 }
 0xa07   :  { %1343 = vrot.lane.b32.xlu0 %v6111_v27, %s5751_s28 }
 0xa26   :  { %1335 = vadd.xlane.f32.xlu0 %v1334_v51 }
 0xa3c   :  { %1491 = vrot.lane.b32.xlu0 %v6100_v22, %s5780_s18  ;;  %v1440_v22 = vpop.permute.xlu1 %1439 }
 0xa40   :  { %1489 = vrot.lane.b32.xlu0 %v6113_v28, %s5780_s18 }
 0xa7e   :  { %v1333_v52 = vpop.xlane.xlu0 %1332 }
 0xa7f   :  { %5126 = vrcp.f32 %v1333_v52 }
 0xa82   :  { %v1344_v53 = vpop.permute.xlu0 %1343 }
 0xa83   :  { %v1349_v54 = vsel %vm909_vm4, %v1344_v53, 0 }
 0xa84   :  { %4600 = vmatpush3.bf16.msra.mxu0 %v1349_v54 }
 0xa85   :  { %4611 = vmatprep.subr.bf16.mxu0 %v5776_v41 }
 0xa89   :  { %v5127_v55 = vpop.eup %5126 }
 0xa8a   :  { %v1339_v56 = vmul.f32 %v5127_v55, %v5123_v46 }
 0xa8c   :  { %v1341_v58 = vpack.c.bf16 %v1339_v56, %v1339_v56 }
 0xa8e   :  { %4602 = vmatmul.mubr.msk.bf16.vlgmr.msra.gmra.mrb[20].mxu0 %vm881_vm6, %v1341_v58  ;;  %v4970_v58 = vld [vmem:[#allocation8] sm:$0xff]  }
 0xa8f   :  { %4612 = vmatpush3.bf16.xpose.msra.mxu0 %v1447_v60  ;;  %4613 = vmatprep.mubr.msk.bf16.mxu0 %vm5778_vm2, %v5776_v41  ;;  %v4971_v60 = vld [vmem:[#allocation8 + $0x8] sm:$0xff]  }
 0xa90   :  { %4623 = vmatprep.subr.bf16.mxu0 %v5776_v41 }
 0xa96   :  { %4614 = vmatmul.mubr.msk.bf16.vlgmr.msra.gmra.mrb[24].mxu0 %vm788_vm3, %v1440_v22  ;;  %v4972_v22 = vld [vmem:[#allocation8 + $0x10] sm:$0xff]  }
 0xa97   :  { %4625 = vmatprep.mubr.msk.bf16.mxu0 %vm5778_vm2, %v5776_v41 }
 0xab3   :  { %v1336_v28 = vpop.xlane.xlu0 %1335 }
 0xab4   :  { %5128 = vrcp.f32 %v1336_v28  ;;  %v4973_v28 = vld [vmem:[#allocation8 + $0x18] sm:$0xff]  }
 0xab7   :  { %v1492_v6 = vpop.permute.xlu0 %1491 }
 0xab8   :  { %v1497_v8 = vsel %vm788_vm3, %v1492_v6, 0  ;;  %v4976_v6 = vld [vmem:[#allocation8 + $0x30] sm:$0xff]  }
 0xabb   :  { %v1490_v9 = vpop.permute.xlu0 %1489 }
 0xabe   :  { %v5129_v2 = vpop.eup %5128 }
 0xabf   :  { %v1340_v4 = vmul.f32 %v5129_v2, %v5125_v50  ;;  %v4974_v2 = vld [vmem:[#allocation8 + $0x20] sm:$0xff]  }
 0xac1   :  { %v1342_v7 = vpack.c.bf16 %v1340_v4, %v1340_v4  ;;  %v4975_v4 = vld [vmem:[#allocation8 + $0x28] sm:$0xff]  }
 0xac3   :  { %4608 = vmatmul.mubr.msk.bf16.vlgmr.msra.gmra.mrb[32].mxu1 %vm881_vm6, %v1342_v7 }
 0xac4   :  { %4618 = vmatpush3.bf16.xpose.msra.mxu1 %v1497_v8  ;;  %4619 = vmatprep.mubr.msk.bf16.mxu1 %vm5778_vm2, %v5776_v41 }
 0xac5   :  { %4629 = vmatprep.subr.bf16.mxu1 %v5776_v41 }
 0xacb   :  { %4620 = vmatmul.mubr.msk.bf16.vlgmr.msra.gmra.mrb[36].mxu1 %vm788_vm3, %v1490_v9 }
 0xacc   :  { %4631 = vmatprep.mubr.msk.bf16.mxu1 %vm5778_vm2, %v5776_v41 }
 0xb61   :  { %v1385_v10 = vpop.f32.mrb[20].mxu0 }
 0xb62   :  { %v4603_v11 = vpop.f32.mrb[21].mxu0 }
 0xb63   :  { %v1388_v13 = vpop.f32.mrb[22].mxu0  ;;  %v4977_v11 = vld [vmem:[#allocation8 + $0x38] sm:$0xff]  }
 0xb64   :  { %v4604_v14 = vpop.f32.mrb[23].mxu0 }
 0xb69   :  { %v1483_v15 = vpop.f32.mrb[24].mxu0 }
 0xb6a   :  { %v1484_v16 = vadd.f32 %v1483_v15, %v6125_v30  ;;  %v4615_v19 = vpop.f32.mrb[25].mxu0 }
 0xb6b   :  { %v1486_v20 = vpop.f32.mrb[26].mxu0 }
 0xb6c   :  { %v4616_v21 = vpop.f32.mrb[27].mxu0  ;;  %v1539_v25 = vsel %vm881_vm6, %v1484_v16, -inf }
 0xb6d   :  { %1540 = vmax.xlane.f32.xlu1 %v1539_v25 }
 0xb96   :  { %v1433_v29 = vpop.f32.mrb[32].mxu1 }
 0xb97   :  { %v4913_v32 = vpack.i.bf16 %v1433_v29, %v1385_v10  ;;  %v4609_v33 = vpop.f32.mrb[33].mxu1 }
 0xb98   :  { %v1436_v34 = vpop.f32.mrb[34].mxu1 }
 0xb99   :  { %v4610_v35 = vpop.f32.mrb[35].mxu1 }
 0xb9e   :  { %v1533_v36 = vpop.f32.mrb[36].mxu1 }
 0xb9f   :  { %v1534_v37 = vadd.f32 %v1533_v36, %v6125_v30  ;;  %v4621_v38 = vpop.f32.mrb[37].mxu1 }
 0xba0   :  { %v1536_v39 = vpop.f32.mrb[38].mxu1 }
 0xba1   :  { %v4622_v40 = vpop.f32.mrb[39].mxu1  ;;  %v1542_v42 = vsel %vm881_vm6, %v1534_v37, -inf }
 0xba2   :  { %1543 = vmax.xlane.f32.xlu0 %v1542_v42 }
 0xbfa   :  { %v1541_v43 = vpop.xlane.xlu1 %1540 }
 0xbfb   :  { %v1545_v44 = vsub.f32 %v1484_v16, %v1541_v43 }
 0xbfd   :  { %v1547_v45 = vmul.f32 1.442695, %v1545_v44 }
 0xbff   :  { %5130 = vpow2.f32 %v1547_v45 }
 0xc09   :  { %v5131_v46 = vpop.eup %5130 }
 0xc0a   :  { %v1551_v47 = vsel %vm881_vm6, %v5131_v46, 0.0 }
 0xc0b   :  { %1552 = vadd.xlane.f32.xlu0 %v1551_v47 }
 0xc21   :  { %1563 = vrot.lane.b32.xlu0 %v6111_v27, %s5780_s18 }
 0xc25   :  { %4914 = vrot.lane.b32.xlu0 %v4913_v32, %s5751_s28 }
 0xc2f   :  { %v1544_v48 = vpop.xlane.xlu0 %1543 }
 0xc30   :  { %v1546_v49 = vsub.f32 %v1534_v37, %v1544_v48 }
 0xc32   :  { %v1549_v18 = vmul.f32 1.442695, %v1546_v49 }
 0xc34   :  { %5132 = vpow2.f32 %v1549_v18 }
 0xc3e   :  { %v5133_v23 = vpop.eup %5132 }
 0xc3f   :  { %v1554_v50 = vsel %vm881_vm6, %v5133_v23, 0.0 }
 0xc40   :  { %1555 = vadd.xlane.f32.xlu1 %v1554_v50  ;;  %v4978_v50 = vld [vmem:[#allocation14] ss:$8 sps:$4 sm:$0xff]  }
 0xc51   :  { %1611 = vrot.lane.b32.xlu1 %v6145_v62, %s5780_s18 }
 0xc55   :  { %4909 = vrot.lane.b32.xlu1 %v4908_v31, %s5780_s18 }
 0xc98   :  { %v1553_v51 = vpop.xlane.xlu0 %1552 }
 0xc99   :  { %5134 = vrcp.f32 %v1553_v51  ;;  %v4980_v51 = vld [vmem:[#allocation14 + $0x4] ss:$8 sps:$4 sm:$0xff]  }
 0xc9c   :  { %v1564_v27 = vpop.permute.xlu0 %1563 }
 0xc9d   :  { %v1569_v52 = vsel %vm909_vm4, %v1564_v27, 0  ;;  %v4983_v27 = vld [vmem:[#allocation14 + $0x14] ss:$8 sps:$4 sm:$0xff]  }
 0xc9e   :  { %4624 = vmatpush3.bf16.msra.mxu0 %v1569_v52  ;;  %v4981_v52 = vld [vmem:[#allocation14 + $0x10] ss:$8 sps:$4 sm:$0xff]  }
 0xc9f   :  { %4635 = vmatprep.subr.bf16.mxu0 %v5776_v41 }
 0xca0   :  { %v4915_v29 = vpop.permute.xlu0 %4914 }
 0xca1   :  { %v4917_v34 = vunpack.i.h.bf16 %v4915_v29  ;;  %v4916_v35 = vunpack.i.l.bf16 %v4915_v29 }
 0xca3   :  { %v5135_v53 = vpop.eup %5134 }
 0xca4   :  { %v1559_v54 = vmul.f32 %v5135_v53, %v5131_v46 }
 0xca6   :  { %v1561_v55 = vpack.c.bf16 %v1559_v54, %v1559_v54 }
 0xca8   :  { %4626 = vmatmul.mubr.msk.bf16.vlgmr.msra.gmra.mrb[28].mxu0 %vm881_vm6, %v1561_v55 }
 0xca9   :  { %4651 = vmatprep.mubr.msk.bf16.mxu0 %vm5778_vm2, %v5776_v41  ;;  %4636 = vmatpush3.bf16.msra.mxu0 %v4970_v58  ;;  %v4987_v58 = vld [vmem:[#allocation14 + $0x30] ss:$8 sps:$4 sm:$0xff]  }
 0xcaa   :  { %4637 = vmatprep.subr.bf16.mxu0 %v5776_v41 }
 0xcad   :  { %4638 = vmatpush3.bf16.msra.mxu0 %v4971_v60  ;;  %v4992_v60 = vld [vmem:[#allocation14 + $0x44] ss:$8 sps:$4 sm:$0xff]  }
 0xcae   :  { %4639 = vmatprep.subr.bf16.mxu0 %v5776_v41 }
 0xcb1   :  { %4640 = vmatpush3.bf16.msra.mxu0 %v4972_v22  ;;  %v4990_v22 = vld [vmem:[#allocation14 + $0x40] ss:$8 sps:$4 sm:$0xff]  }
 0xcb2   :  { %4641 = vmatprep.subr.bf16.mxu0 %v5776_v41 }
 0xcb5   :  { %4642 = vmatpush3.bf16.msra.mxu0 %v4973_v28  ;;  %v4995_v28 = vld [vmem:[#allocation14 + $0x54] ss:$8 sps:$4 sm:$0xff]  }
 0xcb6   :  { %4643 = vmatprep.subr.bf16.mxu0 %v5776_v41 }
 0xcb9   :  { %4644 = vmatpush3.bf16.msra.mxu0 %v4974_v2  ;;  %v4993_v2 = vld [vmem:[#allocation14 + $0x50] ss:$8 sps:$4 sm:$0xff]  }
 0xcba   :  { %4645 = vmatprep.subr.bf16.mxu0 %v5776_v41 }
 0xcbd   :  { %4646 = vmatpush3.bf16.msra.mxu0 %v4975_v4  ;;  %v4998_v4 = vld [vmem:[#allocation14 + $0x64] ss:$8 sps:$4 sm:$0xff]  }
 0xcbe   :  { %4647 = vmatprep.subr.bf16.mxu0 %v5776_v41 }
 0xcc1   :  { %4648 = vmatpush3.bf16.msra.mxu0 %v4976_v6  ;;  %v4996_v6 = vld [vmem:[#allocation14 + $0x60] ss:$8 sps:$4 sm:$0xff]  }
 0xcc2   :  { %4649 = vmatprep.subr.bf16.mxu0 %v5776_v41 }
 0xcc5   :  { %4650 = vmatpush3.bf16.msra.mxu0 %v4977_v11  ;;  %v5004_v11 = vld [vmem:[#allocation17 + $0x48] sm:$0xff]  }
 0xccd   :  { %v1556_v62 = vpop.xlane.xlu1 %1555 }
 0xcce   :  { %5136 = vrcp.f32 %v1556_v62 }
 0xcd1   :  { %v1612_v12 = vpop.permute.xlu1 %1611 }
 0xcd2   :  { %v1617_v24 = vsel %vm909_vm4, %v1612_v12, 0 }
 0xcd3   :  { %4630 = vmatpush3.bf16.msra.mxu1 %v1617_v24 }
 0xcd4   :  { %1956 = vmatprep.subr.bf16.mxu1 %v4980_v51 }
 0xcd5   :  { %v4910_v20 = vpop.permute.xlu1 %4909 }
 0xcd6   :  { %v4912_v21 = vunpack.i.h.bf16 %v4910_v20  ;;  %v4911_v25 = vunpack.i.l.bf16 %v4910_v20  ;;  %v5010_v20 = vld [vmem:[#allocation17 + $0x60] sm:$0xff]  }
 0xcd8   :  { %v5137_v31 = vpop.eup %5136  ;;  %v1684_v32 = vsel %vm788_vm3, %v6168_v26, %v4912_v21  ;;  %v1683_v33 = vsel %vm788_vm3, %v6165_v17, %v4911_v25  ;;  %v4154_v26 = vld [vmem:[#allocation10] ss:$0 sm:$0xff]  ;;  %v5011_v21 = vld [vmem:[#allocation17 + $0x20] sm:$0xff]   ;;  %v5012_v25 = vld [vmem:[#allocation17 + $0x68] sm:$0xff]  }
 0xcd9   :  { %v1560_v56 = vmul.f32 %v5137_v31, %v5133_v23  ;;  %v1686_v39 = vsel %vm1685_vm7, %v1683_v33, %v4916_v35  ;;  %v1687_v40 = vsel %vm1685_vm7, %v1684_v32, %v4917_v34  ;;  %v4986_v31 = vld [vmem:[#allocation14 + $0x24] ss:$8 sps:$4 sm:$0xff]  }
 0xcdb   :  { %v1562_v57 = vpack.c.bf16 %v1560_v56, %v1560_v56  ;;  %v4984_v56 = vld [vmem:[#allocation14 + $0x20] ss:$8 sps:$4 sm:$0xff]  }
 0xcdd   :  { %4632 = vmatmul.mubr.msk.bf16.vlgmr.msra.gmra.mrb[40].mxu1 %vm881_vm6, %v1562_v57  ;;  %v4989_v57 = vld [vmem:[#allocation14 + $0x34] ss:$8 sps:$4 sm:$0xff]  }
 0xcde   :  { %1988 = vmatprep.mubr.bf16.mxu1 %v5775_v0  ;;  %1957 = vmatpush1.bf16.msra.mxu1 %v4978_v50  ;;  %v1864_v50 = vld [vmem:[#allocation16] sm:$0x3] }
 0xcdf   :  { %1958 = vmatprep.subr.bf16.mxu1 %v4983_v27  ;;  %v1869_v51 = vrot.slane %v1864_v50, %v6088_v5  ;;  %v1873_v27 = vrot.slane %v1864_v50, %v6083_v1  ;;  %v5048_v50 = vld [vmem:[#allocation23 + $0xac] ss:$12 sps:$4 sm:$0xff]  }
 0xce2   :  { %1959 = vmatpush1.bf16.msra.mxu1 %v4981_v52 }
 0xce3   :  { %1960 = vmatprep.subr.bf16.mxu1 %v4986_v31 }
 0xce6   :  { %1961 = vmatpush1.bf16.msra.mxu1 %v4984_v56 }
 0xce7   :  { %1962 = vmatprep.subr.bf16.mxu1 %v4989_v57 }
 0xcea   :  { %1963 = vmatpush1.bf16.msra.mxu1 %v4987_v58 }
 0xceb   :  { %1964 = vmatprep.subr.bf16.mxu1 %v4992_v60 }
 0xcee   :  { %1965 = vmatpush1.bf16.msra.mxu1 %v4990_v22 }
 0xcef   :  { %1966 = vmatprep.subr.bf16.mxu1 %v4995_v28  ;;  %v4181_v28 = vld [vmem:[#allocation19] ss:$0 sm:$0xff] }
 0xcf2   :  { %1967 = vmatpush1.bf16.msra.mxu1 %v4993_v2 }
 0xcf3   :  { %1968 = vmatprep.subr.bf16.mxu1 %v4998_v4 }
 0xcf6   :  { %1969 = vmatpush1.bf16.msra.mxu1 %v4996_v6 }
 0xd7b   :  { %v1605_v7 = vpop.f32.mrb[28].mxu0 }
 0xd7c   :  { %v4627_v8 = vpop.f32.mrb[29].mxu0 }
 0xd7d   :  { %v1608_v9 = vpop.f32.mrb[30].mxu0  ;;  %v4999_v8 = vld [vmem:[#allocation14 + $0x70] ss:$8 sps:$4 sm:$0xff]  }
 0xd7e   :  { %v4628_v10 = vpop.f32.mrb[31].mxu0  ;;  %v5002_v9 = vld [vmem:[#allocation17 + $0x40] sm:$0xff]  }
 0xd7f   :  { %v5003_v10 = vld [vmem:[#allocation17] sm:$0xff]   ;;  %4381 = vmatprep.subr.bf16.mxu0 %v5002_v9 }
 0xdb0   :  { %v1653_v13 = vpop.f32.mrb[40].mxu1 }
 0xdb1   :  { %v4918_v14 = vpack.i.bf16 %v1653_v13, %v1605_v7  ;;  %v4633_v15 = vpop.f32.mrb[41].mxu1  ;;  %v5001_v7 = vld [vmem:[#allocation14 + $0x74] ss:$8 sps:$4 sm:$0xff]   ;;  %v5005_v13 = vld [vmem:[#allocation17 + $0x8] sm:$0xff]  }
 0xdb2   :  { %v1656_v16 = vpop.f32.mrb[42].mxu1  ;;  %1970 = vmatprep.subr.bf16.mxu1 %v5001_v7  ;;  %v5007_v15 = vld [vmem:[#allocation17 + $0x10] sm:$0xff]  }
 0xdb3   :  { %4919 = vrot.lane.b32.xlu1 %v4918_v14, %s5779_s11  ;;  %v4634_v19 = vpop.f32.mrb[43].mxu1  ;;  %1971 = vmatpush1.bf16.msra.mxu1 %v4999_v8  ;;  %v5006_v14 = vld [vmem:[#allocation17 + $0x50] sm:$0xff]   ;;  %v5008_v16 = vld [vmem:[#allocation17 + $0x58] sm:$0xff]  }
 0xdb4   :  { %v5009_v19 = vld [vmem:[#allocation17 + $0x18] sm:$0xff]  }
 0xe25   :  { %v4920_v36 = vpop.permute.xlu1 %4919 }
 0xe26   :  { %v4922_v37 = vunpack.i.h.bf16 %v4920_v36  ;;  %v4921_v38 = vunpack.i.l.bf16 %v4920_v36 }
 0xe28   :  { %v1690_v42 = vsel %vm1688_vm8, %v1687_v40, %v4922_v37  ;;  %v1689_v43 = vsel %vm1688_vm8, %v1686_v39, %v4921_v38  ;;  %v4163_v39 = vld [vmem:[#allocation11] ss:$0 sm:$0xff] }
 0xe29   :  { %v1691_v44 = vpack.c.bf16 %v1690_v42, %v1689_v43 }
 0xe2b   :  { %4652 = vmatmul.mubr.bf16.vlgmr.msra.gmra.mrb[32].mxu0 %v1691_v44  ;;  %v4164_v44 = vld [vmem:[#allocation13] ss:$0 sm:$0xff] }
 0xe2c   :  { %4382 = vmatpush3.bf16.msra.mxu0 %v5003_v10 }
 0xe2d   :  { %4383 = vmatprep.subr.bf16.mxu0 %v5004_v11 }
 0xe30   :  { %4384 = vmatpush3.bf16.msra.mxu0 %v5005_v13 }
 0xe31   :  { %4385 = vmatprep.subr.bf16.mxu0 %v5006_v14  ;;  %v5018_v14 = vld [vmem:[#allocation23] ss:$12 sps:$4 sm:$0xff]  }
 0xe34   :  { %4386 = vmatpush3.bf16.msra.mxu0 %v5007_v15  ;;  %v5020_v15 = vld [vmem:[#allocation23 + $0x4] ss:$12 sps:$4 sm:$0xff]  }
 0xe35   :  { %4387 = vmatprep.subr.bf16.mxu0 %v5008_v16  ;;  %v5021_v16 = vld [vmem:[#allocation23 + $0x8] ss:$12 sps:$4 sm:$0xff]   ;;  %2401 = vmatprep.subr.bf16.mxu1 %v5020_v15 }
 0xe38   :  { %4388 = vmatpush3.bf16.msra.mxu0 %v5009_v19  ;;  %v5024_v19 = vld [vmem:[#allocation23 + $0x1c] ss:$12 sps:$4 sm:$0xff]  }
 0xe39   :  { %4389 = vmatprep.subr.bf16.mxu0 %v5010_v20  ;;  %v5025_v20 = vld [vmem:[#allocation23 + $0x20] ss:$12 sps:$4 sm:$0xff]  }
 0xe3c   :  { %4390 = vmatpush3.bf16.msra.mxu0 %v5011_v21  ;;  %v5022_v21 = vld [vmem:[#allocation23 + $0x18] ss:$12 sps:$4 sm:$0xff]  }
 0xe3d   :  { %4391 = vmatprep.subr.bf16.mxu0 %v5012_v25 }
 0xefe   :  { %v1797_v45 = vpop.f32.mrb[32].mxu0 }
 0xeff   :  { %v1798_v17 = vadd.f32 %v4154_v26, %v1797_v45  ;;  %v4653_v46 = vpop.f32.mrb[33].mxu0 }
 0xf00   :  { %v1800_v47 = vpop.f32.mrb[34].mxu0 }
 0xf01   :  { %v1801_v48 = vadd.f32 %v4154_v26, %v1800_v47  ;;  %v4654_v49 = vpop.f32.mrb[35].mxu0  ;;  %v1804_v18 = vadd.f32 %v1798_v17, %v6072_v61  ;;  %v5013_v47 = vld [vmem:[#allocation17 + $0x28] sm:$0xff]  }
 0xf02   :  { %4392 = vmatpush3.bf16.msra.mxu0 %v5013_v47  ;;  %v5015_v49 = vld [vmem:[#allocation17 + $0x30] sm:$0xff]   ;;  %v5038_v47 = vld [vmem:[#allocation23 + $0x78] ss:$12 sps:$4 sm:$0xff]  }
 0xf03   :  { %1808 = vadd.xlane.f32.xlu0 %v1804_v18  ;;  %v1805_v23 = vadd.f32 %v1801_v48, %v6070_v59  ;;  %v5014_v48 = vld [vmem:[#allocation17 + $0x70] sm:$0xff]  }
 0xf04   :  { %4393 = vmatprep.subr.bf16.mxu0 %v5014_v48  ;;  %v5041_v48 = vld [vmem:[#allocation23 + $0x80] ss:$12 sps:$4 sm:$0xff]  }
 0xf05   :  { %1810 = vadd.xlane.f32.xlu1 %v1805_v23 }
 0xf06   :  { %4394 = vmatpush3.bf16.msra.mxu0 %v5015_v49  ;;  %v5044_v49 = vld [vmem:[#allocation23 + $0x94] ss:$12 sps:$4 sm:$0xff]  }
 0xf90   :  { %v1809_v53 = vpop.xlane.xlu0 %1808 }
 0xf91   :  { %v1813_v54 = vmul.f32 0.0078125, %v1809_v53 }
 0xf92   :  { %v1811_v55 = vpop.xlane.xlu1 %1810 }
 0xf93   :  { %v1815_v62 = vsub.f32 %v1804_v18, %v1813_v54  ;;  %v1814_v12 = vmul.f32 0.0078125, %v1811_v55  ;;  %v5016_v18 = vld [vmem:[#allocation17 + $0x78] sm:$0xff]  }
 0xf94   :  { %4395 = vmatprep.subr.bf16.mxu0 %v5016_v18  ;;  %v5042_v18 = vld [vmem:[#allocation23 + $0x90] ss:$12 sps:$4 sm:$0xff]  }
 0xf95   :  { %v6291_v24 = vsub.f32 %v1805_v23, %v1814_v12  ;;  %v1817_v61 = vmul.f32 %v1815_v62, %v1815_v62  ;;  %v5017_v23 = vld [vmem:[#allocation17 + $0x38] sm:$0xff]  }
 0xf96   :  { %4396 = vmatpush3.bf16.msra.mxu0 %v5017_v23  ;;  %v5045_v23 = vld [vmem:[#allocation23 + $0x98] ss:$12 sps:$4 sm:$0xff]  }
 0xf97   :  { %1819 = vadd.xlane.f32.xlu0 %v1817_v61  ;;  %v1818_v59 = vmul.f32 %v6291_v24, %v6291_v24  ;;  %4655 = vmatprep.subr.bf16.mxu0 %v5776_v41 }
 0xf9b   :  { %1821 = vadd.xlane.f32.xlu0 %v1818_v59 }
0x1024   :  { %v1820_v29 = vpop.xlane.xlu0 %1819 }
0x1025   :  { %v1823_v32 = vmul.f32 0.0078125, %v1820_v29 }
0x1027   :  { %v1825_v33 = vadd.f32 1e-05, %v1823_v32 }
0x1028   :  { %v1822_v34 = vpop.xlane.xlu0 %1821 }
0x1029   :  { %5138 = vrsqrt.f32 %v1825_v33  ;;  %v1824_v35 = vmul.f32 0.0078125, %v1822_v34 }
0x102b   :  { %v1826_v36 = vadd.f32 1e-05, %v1824_v35 }
0x102d   :  { %5140 = vrsqrt.f32 %v1826_v36 }
0x1033   :  { %v5139_v37 = vpop.eup %5138 }
0x1034   :  { %v1829_v38 = vmul.f32 %v5139_v37, %v1815_v62 }
0x1036   :  { %v1837_v43 = vmul.f32 %v4163_v39, %v1829_v38  ;;  %v5028_v38 = vld [vmem:[#allocation23 + $0x34] ss:$12 sps:$4 sm:$0xff]  }
0x1037   :  { %v5141_v40 = vpop.eup %5140 }
0x1038   :  { %v1830_v42 = vmul.f32 %v5141_v40, %v6291_v24  ;;  %v1845_v45 = vadd.f32 %v4164_v44, %v1837_v43  ;;  %v5029_v40 = vld [vmem:[#allocation23 + $0x38] ss:$12 sps:$4 sm:$0xff]   ;;  %v5030_v43 = vld [vmem:[#allocation23 + $0x48] ss:$12 sps:$4 sm:$0xff]  }
0x103a   :  { %v1838_v26 = vmul.f32 %v4163_v39, %v1830_v42  ;;  %v5026_v39 = vld [vmem:[#allocation23 + $0x30] ss:$12 sps:$4 sm:$0xff]   ;;  %v5032_v42 = vld [vmem:[#allocation23 + $0x4c] ss:$12 sps:$4 sm:$0xff]  }
0x103c   :  { %v1846_v17 = vadd.f32 %v4164_v44, %v1838_v26  ;;  %v5033_v44 = vld [vmem:[#allocation23 + $0x50] ss:$12 sps:$4 sm:$0xff]  }
0x103d   :  { %v5036_v26 = vld [vmem:[#allocation23 + $0x64] ss:$12 sps:$4 sm:$0xff]  }
0x103e   :  { %v1847_v46 = vpack.c.bf16 %v1846_v17, %v1845_v45 }
0x1040   :  { %1989 = vmatmul.mubr.bf16.vlgmr.msra.gmra.mrb[44].mxu1 %v1847_v46  ;;  %v5040_v46 = vld [vmem:[#allocation23 + $0x7c] ss:$12 sps:$4 sm:$0xff]  }
0x1041   :  { %2433 = vmatprep.mubr.bf16.mxu1 %v5775_v0  ;;  %2402 = vmatpush1.bf16.msra.mxu1 %v5018_v14 }
0x1042   :  { %2403 = vmatprep.subr.bf16.mxu1 %v5024_v19 }
0x1045   :  { %2404 = vmatpush1.bf16.msra.mxu1 %v5022_v21 }
0x1046   :  { %2405 = vmatprep.subr.bf16.mxu1 %v5028_v38 }
0x1049   :  { %2406 = vmatpush1.bf16.msra.mxu1 %v5026_v39 }
0x104a   :  { %2407 = vmatprep.subr.bf16.mxu1 %v5032_v42 }
0x104d   :  { %2408 = vmatpush1.bf16.msra.mxu1 %v5030_v43 }
0x104e   :  { %2409 = vmatprep.subr.bf16.mxu1 %v5036_v26 }
0x1113   :  { %v1990_v52 = vpop.f32.mrb[44].mxu1 }
0x1114   :  { %v1991_v53 = vadd.f32 %v1990_v52, %v1869_v51  ;;  %v1992_v54 = vpop.f32.mrb[45].mxu1 }
0x1115   :  { %v1993_v55 = vadd.f32 %v1992_v54, %v1873_v27  ;;  %v1994_v62 = vpop.f32.mrb[46].mxu1 }
0x1116   :  { %v1995_v12 = vadd.f32 %v1994_v62, %v1869_v51  ;;  %v1996_v24 = vpop.f32.mrb[47].mxu1  ;;  %v1999_v59 = vmax.f32 %v1991_v53, 0.0  ;;  %v5046_v51 = vld [vmem:[#allocation23 + $0xa8] ss:$12 sps:$4 sm:$0xff]  }
0x1117   :  { %v1997_v61 = vadd.f32 %v1996_v24, %v1873_v27  ;;  %v2000_v56 = vmax.f32 %v1993_v55, 0.0  ;;  %v5049_v27 = vld [vmem:[#allocation23 + $0xb0] ss:$12 sps:$4 sm:$0xff]  }
0x1118   :  { %v2001_v31 = vmax.f32 %v1995_v12, 0.0 }
0x1119   :  { %v2002_v57 = vmax.f32 %v1997_v61, 0.0  ;;  %v4198_v61 = vld [vmem:[#allocation20] ss:$0 sm:$0xff] }
0x111a   :  { %v2003_v58 = vpack.c.bf16 %v2001_v31, %v1999_v59 }
0x111b   :  { %v2004_v60 = vpack.c.bf16 %v2002_v57, %v2000_v56 }
0x111d   :  { %2172 = vmatprep.mubr.bf16.mxu0 %v2004_v60 }
0x111e   :  { %2173 = vmatmul.mubr.bf16.vlgmr.msra.gmra.mrb[36].mxu0 %v2003_v58  ;;  %v4199_v58 = vld [vmem:[#allocation22] ss:$0 sm:$0xff] }
0x111f   :  { %4671 = vmatprep.mubr.msk.bf16.mxu0 %vm5778_vm2, %v5776_v41  ;;  %4656 = vmatpush3.bf16.msra.mxu0 %v5021_v16 }
0x1120   :  { %4657 = vmatprep.subr.bf16.mxu0 %v5776_v41 }
0x1123   :  { %4658 = vmatpush3.bf16.msra.mxu0 %v5025_v20 }
0x1124   :  { %4659 = vmatprep.subr.bf16.mxu0 %v5776_v41 }
0x1127   :  { %4660 = vmatpush3.bf16.msra.mxu0 %v5029_v40 }
0x1128   :  { %4661 = vmatprep.subr.bf16.mxu0 %v5776_v41 }
0x112b   :  { %4662 = vmatpush3.bf16.msra.mxu0 %v5033_v44 }
0x112c   :  { %4663 = vmatprep.subr.bf16.mxu0 %v5776_v41 }
0x11f1   :  { %v4397_v22 = vpop.f32.mrb[36].mxu0 }
0x11f2   :  { %v4398_v2 = vpop.f32.mrb[37].mxu0 }
0x11f3   :  { %v4399_v4 = vadd.f32 %v4398_v2, %v4397_v22  ;;  %v4400_v6 = vpop.f32.mrb[38].mxu0 }
0x11f4   :  { %v4401_v7 = vpop.f32.mrb[39].mxu0 }
0x11f5   :  { %v2175_v8 = vadd.f32 %v4399_v4, %v4181_v28  ;;  %v4402_v9 = vadd.f32 %v4401_v7, %v4400_v6  ;;  %v2256_v4 = vld [vmem:[#allocation25] sm:$0x7] }
0x11f6   :  { %v2265_v6 = vrot.slane %v2256_v4, %v6083_v1  ;;  %v2261_v21 = vrot.slane %v2256_v4, %v6088_v5 }
0x11f7   :  { %v2178_v10 = vadd.f32 %v4402_v9, %v4181_v28  ;;  %v2181_v11 = vadd.f32 %v2175_v8, %v1845_v45  ;;  %v5034_v45 = vld [vmem:[#allocation23 + $0x60] ss:$12 sps:$4 sm:$0xff]   ;;  %v2269_v9 = vrot.slane %v2256_v4, %v553_v3 }
0x11f8   :  { %2410 = vmatpush1.bf16.msra.mxu1 %v5034_v45 }
0x11f9   :  { %2185 = vadd.xlane.f32.xlu1 %v2181_v11  ;;  %v2182_v13 = vadd.f32 %v2178_v10, %v1846_v17  ;;  %v5037_v17 = vld [vmem:[#allocation23 + $0x68] ss:$12 sps:$4 sm:$0xff]   ;;  %2411 = vmatprep.subr.bf16.mxu1 %v5040_v46 }
0x11fa   :  { %4664 = vmatpush3.bf16.msra.mxu0 %v5037_v17 }
0x11fb   :  { %2187 = vadd.xlane.f32.xlu0 %v2182_v13  ;;  %4665 = vmatprep.subr.bf16.mxu0 %v5776_v41 }
0x11fc   :  { %2412 = vmatpush1.bf16.msra.mxu1 %v5038_v47 }
0x11fd   :  { %2413 = vmatprep.subr.bf16.mxu1 %v5044_v49 }
0x11fe   :  { %4666 = vmatpush3.bf16.msra.mxu0 %v5041_v48 }
0x11ff   :  { %4667 = vmatprep.subr.bf16.mxu0 %v5776_v41 }
0x1200   :  { %2414 = vmatpush1.bf16.msra.mxu1 %v5042_v18 }
0x1201   :  { %2415 = vmatprep.subr.bf16.mxu1 %v5048_v50 }
0x1202   :  { %4668 = vmatpush3.bf16.msra.mxu0 %v5045_v23 }
0x1203   :  { %4669 = vmatprep.subr.bf16.mxu0 %v5776_v41 }
0x1204   :  { %2416 = vmatpush1.bf16.msra.mxu1 %v5046_v51 }
0x1205   :  { %4675 = vmatprep.subr.bf16.mxu1 %v5776_v41 }
0x1206   :  { %4670 = vmatpush3.bf16.msra.mxu0 %v5049_v27 }
0x1207   :  { %4699 = vmatprep.subr.bf16.mxu0 %v5776_v41 }
0x1286   :  { %v2186_v25 = vpop.xlane.xlu1 %2185 }
0x1287   :  { %v2189_v29 = vmul.f32 0.0078125, %v2186_v25 }
0x1288   :  { %v2188_v32 = vpop.xlane.xlu0 %2187 }
0x1289   :  { %v2191_v33 = vsub.f32 %v2181_v11, %v2189_v29  ;;  %v2190_v34 = vmul.f32 0.0078125, %v2188_v32 }
0x128b   :  { %v2192_v35 = vsub.f32 %v2182_v13, %v2190_v34  ;;  %v2193_v36 = vmul.f32 %v2191_v33, %v2191_v33 }
0x128d   :  { %2195 = vadd.xlane.f32.xlu1 %v2193_v36  ;;  %v2194_v37 = vmul.f32 %v2192_v35, %v2192_v35 }
0x128f   :  { %2197 = vadd.xlane.f32.xlu0 %v2194_v37 }
0x131a   :  { %v2196_v52 = vpop.xlane.xlu1 %2195 }
0x131b   :  { %v2199_v53 = vmul.f32 0.0078125, %v2196_v52 }
0x131c   :  { %v2198_v54 = vpop.xlane.xlu0 %2197 }
0x131d   :  { %v2201_v55 = vadd.f32 1e-05, %v2199_v53  ;;  %v2200_v62 = vmul.f32 0.0078125, %v2198_v54 }
0x131f   :  { %5142 = vrsqrt.f32 %v2201_v55  ;;  %v2202_v12 = vadd.f32 1e-05, %v2200_v62 }
0x1321   :  { %5144 = vrsqrt.f32 %v2202_v12 }
0x1329   :  { %v5143_v24 = vpop.eup %5142 }
0x132a   :  { %v2205_v59 = vmul.f32 %v5143_v24, %v2191_v33 }
0x132b   :  { %v5145_v31 = vpop.eup %5144 }
0x132c   :  { %v2206_v56 = vmul.f32 %v5145_v31, %v2192_v35  ;;  %v2213_v57 = vmul.f32 %v4198_v61, %v2205_v59 }
0x132e   :  { %v2214_v60 = vmul.f32 %v4198_v61, %v2206_v56  ;;  %v6311_v22 = vadd.f32 %v4199_v58, %v2213_v57 }
0x1330   :  { %v6313_v28 = vadd.f32 %v4199_v58, %v2214_v60 }
0x1332   :  { %v2223_v2 = vpack.c.bf16 %v6313_v28, %v6311_v22 }
0x1334   :  { %2434 = vmatmul.mubr.bf16.vlgmr.msra.gmra.mrb[48].mxu1 %v2223_v2  ;;  %4672 = vmatmul.mubr.bf16.vlgmr.msra.gmra.mrb[40].mxu0 %v2223_v2 }
0x1335   :  { %4677 = vmatprep.mubr.msk.bf16.mxu1 %vm5778_vm2, %v5776_v41  ;;  %4701 = vmatprep.mubr.msk.bf16.mxu0 %vm5778_vm2, %v5776_v41 }
0x1407   :  { %v2435_v7 = vpop.f32.mrb[48].mxu1  ;;  %v2478_v8 = vpop.f32.mrb[40].mxu0 }
0x1408   :  { %v2437_v10 = vpop.f32.mrb[49].mxu1  ;;  %v4673_v11 = vpop.f32.mrb[41].mxu0  ;;  %v2436_v63 = vadd.f32 %v2435_v7, %v2261_v21  ;;  %v2479_v34 = vadd.f32 %v2478_v8, %v2269_v9 }
0x1409   :  { %v2438_v13 = vadd.f32 %v2437_v10, %v2265_v6  ;;  %v2439_v14 = vpop.f32.mrb[50].mxu1  ;;  %v2481_v15 = vpop.f32.mrb[42].mxu0 }
0x140a   :  { %v6324_v16 = vadd.f32 %v2481_v15, %v2269_v9  ;;  %v2441_v19 = vpop.f32.mrb[51].mxu1  ;;  %v4674_v20 = vpop.f32.mrb[43].mxu0  ;;  %v6334_v33 = vpack.c.bf16 %v2436_v63, %v2436_v63  ;;  %v2440_v36 = vadd.f32 %v2439_v14, %v2261_v21  ;;  %v6343_v37 = vpack.c.bf16 %v2479_v34, %v2479_v34 }
0x140b   :  { %v6327_v25 = vpack.c.bf16 %v2438_v13, %v2438_v13  ;;  %v2442_v29 = vadd.f32 %v2441_v19, %v2265_v6 }
0x140c   :  { %v6345_v38 = vpack.c.bf16 %v2440_v36, %v2440_v36  ;;  %v2623_v39 = vsel %vm909_vm4, %v6343_v37, 0  ;;  %v6372_v57 = vpack.c.bf16 %v6324_v16, %v6324_v16 }
0x140d   :  { %v2507_v32 = vsel %vm788_vm3, %v6327_v25, 0  ;;  %v6332_v3 = vpack.c.bf16 %v2442_v29, %v2442_v29 }
0x140e   :  { %4676 = vmatpush3.bf16.xpose.msra.mxu1 %v2507_v32  ;;  %v2669_v4 = vsel %vm909_vm4, %v6372_v57, 0 }
0x140f   :  { %4681 = vmatprep.subr.bf16.mxu1 %v5776_v41  ;;  %v2553_v35 = vsel %vm788_vm3, %v6332_v3, 0 }
0x1415   :  { %4678 = vmatmul.mubr.msk.bf16.vlgmr.msra.gmra.mrb[52].mxu1 %vm788_vm3, %v6334_v33 }
0x1416   :  { %4682 = vmatpush3.bf16.xpose.msra.mxu1 %v2553_v35  ;;  %4683 = vmatprep.mubr.msk.bf16.mxu1 %vm5778_vm2, %v5776_v41 }
0x1417   :  { %4687 = vmatprep.subr.bf16.mxu1 %v5776_v41 }
0x141d   :  { %4684 = vmatmul.mubr.msk.bf16.vlgmr.msra.gmra.mrb[56].mxu1 %vm788_vm3, %v6345_v38 }
0x141e   :  { %4688 = vmatpush3.bf16.msra.mxu1 %v2623_v39  ;;  %4689 = vmatprep.mubr.msk.bf16.mxu1 %vm5778_vm2, %v5776_v41 }
0x141f   :  { %4693 = vmatprep.subr.bf16.mxu1 %v5776_v41 }
0x14e8   :  { %v2543_v40 = vpop.f32.mrb[52].mxu1 }
0x14e9   :  { %v2544_v42 = vadd.f32 %v2543_v40, %v6125_v30  ;;  %v4679_v43 = vpop.f32.mrb[53].mxu1 }
0x14ea   :  { %v2546_v44 = vpop.f32.mrb[54].mxu1 }
0x14eb   :  { %v4680_v26 = vpop.f32.mrb[55].mxu1  ;;  %v2595_v45 = vsel %vm881_vm6, %v2544_v42, -inf }
0x14ec   :  { %2596 = vmax.xlane.f32.xlu1 %v2595_v45 }
0x14f0   :  { %v2589_v17 = vpop.f32.mrb[56].mxu1 }
0x14f1   :  { %v2590_v46 = vadd.f32 %v2589_v17, %v6125_v30  ;;  %v4685_v47 = vpop.f32.mrb[57].mxu1 }
0x14f2   :  { %v2592_v48 = vpop.f32.mrb[58].mxu1 }
0x14f3   :  { %v4686_v49 = vpop.f32.mrb[59].mxu1  ;;  %v2598_v18 = vsel %vm881_vm6, %v2590_v46, -inf }
0x14f4   :  { %2599 = vmax.xlane.f32.xlu0 %v2598_v18 }
0x1579   :  { %v2597_v23 = vpop.xlane.xlu1 %2596 }
0x157a   :  { %v2601_v50 = vsub.f32 %v2544_v42, %v2597_v23 }
0x157c   :  { %v2603_v51 = vmul.f32 1.442695, %v2601_v50 }
0x157e   :  { %5146 = vpow2.f32 %v2603_v51 }
0x1581   :  { %v2600_v27 = vpop.xlane.xlu0 %2599 }
0x1582   :  { %v2602_v52 = vsub.f32 %v2590_v46, %v2600_v27 }
0x1584   :  { %v2605_v53 = vmul.f32 1.442695, %v2602_v52 }
0x1586   :  { %5148 = vpow2.f32 %v2605_v53 }
0x1588   :  { %v5147_v54 = vpop.eup %5146 }
0x1589   :  { %v2607_v55 = vsel %vm881_vm6, %v5147_v54, 0.0 }
0x158a   :  { %2608 = vadd.xlane.f32.xlu1 %v2607_v55 }
0x1590   :  { %v5149_v62 = vpop.eup %5148 }
0x1591   :  { %v2610_v12 = vsel %vm881_vm6, %v5149_v62, 0.0 }
0x1592   :  { %2611 = vadd.xlane.f32.xlu0 %v2610_v12 }
0x159b   :  { %2713 = vrot.lane.b32.xlu1 %v6327_v25, %s5779_s11 }
0x159f   :  { %2711 = vrot.lane.b32.xlu1 %v6334_v33, %s5779_s11 }
0x15a3   :  { %2761 = vrot.lane.b32.xlu1 %v6345_v38, %s5779_s11 }
0x15a8   :  { %2763 = vrot.lane.b32.xlu0 %v6332_v3, %s5779_s11 }
0x1617   :  { %v2609_v24 = vpop.xlane.xlu1 %2608 }
0x1618   :  { %5150 = vrcp.f32 %v2609_v24 }
0x161b   :  { %v2714_v61 = vpop.permute.xlu1 %2713 }
0x161c   :  { %v2719_v59 = vsel %vm788_vm3, %v2714_v61, 0 }
0x161d   :  { %4700 = vmatpush3.bf16.xpose.msra.mxu0 %v2719_v59 }
0x161e   :  { %4711 = vmatprep.subr.bf16.mxu0 %v5776_v41 }
0x161f   :  { %v2612_v31 = vpop.xlane.xlu0 %2611  ;;  %v2712_v60 = vpop.permute.xlu1 %2711 }
0x1620   :  { %5152 = vrcp.f32 %v2612_v31 }
0x1622   :  { %v5151_v56 = vpop.eup %5150 }
0x1623   :  { %v2615_v58 = vmul.f32 %v5151_v56, %v5147_v54  ;;  %v2764_v8 = vpop.permute.xlu0 %2763  ;;  %v2762_v11 = vpop.permute.xlu1 %2761 }
0x1624   :  { %4702 = vmatmul.mubr.msk.bf16.vlgmr.msra.gmra.mrb[44].mxu0 %vm788_vm3, %v2712_v60  ;;  %v2769_v10 = vsel %vm788_vm3, %v2764_v8, 0 }
0x1625   :  { %v2617_v2 = vpack.c.bf16 %v2615_v58, %v2615_v58  ;;  %4713 = vmatprep.mubr.msk.bf16.mxu0 %vm5778_vm2, %v5776_v41 }
0x1627   :  { %4690 = vmatmul.mubr.msk.bf16.vlgmr.msra.gmra.mrb[60].mxu1 %vm881_vm6, %v2617_v2 }
0x1628   :  { %4694 = vmatpush3.bf16.msra.mxu1 %v2669_v4  ;;  %4695 = vmatprep.mubr.msk.bf16.mxu1 %vm5778_vm2, %v5776_v41 }
0x1629   :  { %4705 = vmatprep.subr.bf16.mxu1 %v5776_v41 }
0x162a   :  { %v5153_v6 = vpop.eup %5152 }
0x162b   :  { %v2616_v7 = vmul.f32 %v5153_v6, %v5149_v62 }
0x162d   :  { %v2618_v9 = vpack.c.bf16 %v2616_v7, %v2616_v7 }
0x162f   :  { %4696 = vmatmul.mubr.msk.bf16.vlgmr.msra.gmra.mrb[64].mxu1 %vm881_vm6, %v2618_v9 }
0x1630   :  { %4707 = vmatprep.mubr.msk.bf16.mxu1 %vm5778_vm2, %v5776_v41 }
0x1631   :  { %4706 = vmatpush3.bf16.xpose.msra.mxu1 %v2769_v10 }
0x1632   :  { %4717 = vmatprep.subr.bf16.mxu1 %v5776_v41 }
0x1638   :  { %4708 = vmatmul.mubr.msk.bf16.vlgmr.msra.gmra.mrb[68].mxu1 %vm788_vm3, %v2762_v11 }
0x1639   :  { %4719 = vmatprep.mubr.msk.bf16.mxu1 %vm5778_vm2, %v5776_v41 }
0x16f7   :  { %v2755_v13 = vpop.f32.mrb[44].mxu0 }
0x16f8   :  { %v2756_v14 = vadd.f32 %v2755_v13, %v6125_v30  ;;  %v4703_v15 = vpop.f32.mrb[45].mxu0 }
0x16f9   :  { %v2758_v16 = vpop.f32.mrb[46].mxu0 }
0x16fa   :  { %v6392_v19 = vpop.f32.mrb[60].mxu1  ;;  %v4704_v20 = vpop.f32.mrb[47].mxu0  ;;  %v2811_v21 = vsel %vm881_vm6, %v2756_v14, -inf }
0x16fb   :  { %2812 = vmax.xlane.f32.xlu0 %v2811_v21  ;;  %v4691_v29 = vpop.f32.mrb[61].mxu1 }
0x16fc   :  { %v2662_v32 = vpop.f32.mrb[62].mxu1 }
0x16fd   :  { %v4692_v63 = vpop.f32.mrb[63].mxu1 }
0x1702   :  { %v6395_v34 = vpop.f32.mrb[64].mxu1 }
0x1703   :  { %v4697_v35 = vpop.f32.mrb[65].mxu1 }
0x1704   :  { %v2708_v36 = vpop.f32.mrb[66].mxu1 }
0x1705   :  { %v4698_v39 = vpop.f32.mrb[67].mxu1 }
0x170b   :  { %v2805_v40 = vpop.f32.mrb[68].mxu1 }
0x170c   :  { %v2806_v42 = vadd.f32 %v2805_v40, %v6125_v30  ;;  %v4709_v43 = vpop.f32.mrb[69].mxu1 }
0x170d   :  { %v2808_v44 = vpop.f32.mrb[70].mxu1 }
0x170e   :  { %v4710_v26 = vpop.f32.mrb[71].mxu1  ;;  %v2814_v45 = vsel %vm881_vm6, %v2806_v42, -inf }
0x170f   :  { %2815 = vmax.xlane.f32.xlu1 %v2814_v45 }
0x1720   :  { %2835 = vrot.lane.b32.xlu1 %v6343_v37, %s5779_s11 }
0x1724   :  { %2933 = vrot.lane.b32.xlu1 %v6327_v25, %s5751_s28 }
0x1728   :  { %2983 = vrot.lane.b32.xlu1 %v6332_v3, %s5751_s28 }
0x172c   :  { %2981 = vrot.lane.b32.xlu1 %v6345_v38, %s5751_s28 }
0x1788   :  { %v2813_v17 = vpop.xlane.xlu0 %2812 }
0x1789   :  { %v2817_v46 = vsub.f32 %v2756_v14, %v2813_v17 }
0x178b   :  { %v2819_v47 = vmul.f32 1.442695, %v2817_v46 }
0x178d   :  { %5154 = vpow2.f32 %v2819_v47 }
0x1797   :  { %v5155_v48 = vpop.eup %5154 }
0x1798   :  { %v2823_v49 = vsel %vm881_vm6, %v5155_v48, 0.0 }
0x1799   :  { %2824 = vadd.xlane.f32.xlu0 %v2823_v49 }
0x179c   :  { %v2816_v18 = vpop.xlane.xlu1 %2815 }
0x179d   :  { %v2818_v23 = vsub.f32 %v2806_v42, %v2816_v18 }
0x179f   :  { %v2821_v50 = vmul.f32 1.442695, %v2818_v23 }
0x17a0   :  { %v2836_v51 = vpop.permute.xlu1 %2835 }
0x17a1   :  { %5156 = vpow2.f32 %v2821_v50  ;;  %v2841_v27 = vsel %vm909_vm4, %v2836_v51, 0 }
0x17a2   :  { %4712 = vmatpush3.bf16.msra.mxu0 %v2841_v27 }
0x17a3   :  { %4723 = vmatprep.subr.bf16.mxu0 %v5776_v41 }
0x17a4   :  { %v2934_v12 = vpop.permute.xlu1 %2933 }
0x17a5   :  { %v2939_v61 = vsel %vm788_vm3, %v2934_v12, 0 }
0x17a8   :  { %v2984_v4 = vpop.permute.xlu1 %2983 }
0x17a9   :  { %v2989_v7 = vsel %vm788_vm3, %v2984_v4, 0 }
0x17ab   :  { %v5157_v52 = vpop.eup %5156 }
0x17ac   :  { %v2826_v53 = vsel %vm881_vm6, %v5157_v52, 0.0  ;;  %v2982_v8 = vpop.permute.xlu1 %2981 }
0x17ad   :  { %2827 = vadd.xlane.f32.xlu0 %v2826_v53 }
0x17c3   :  { %2883 = vrot.lane.b32.xlu0 %v6372_v57, %s5779_s11 }
0x17c7   :  { %2931 = vrot.lane.b32.xlu0 %v6334_v33, %s5751_s28 }
0x1826   :  { %v2825_v54 = vpop.xlane.xlu0 %2824 }
0x1827   :  { %5158 = vrcp.f32 %v2825_v54 }
0x1831   :  { %v5159_v55 = vpop.eup %5158 }
0x1832   :  { %v2831_v62 = vmul.f32 %v5159_v55, %v5155_v48 }
0x1834   :  { %v2833_v24 = vpack.c.bf16 %v2831_v62, %v2831_v62 }
0x1836   :  { %4714 = vmatmul.mubr.msk.bf16.vlgmr.msra.gmra.mrb[48].mxu0 %vm881_vm6, %v2833_v24 }
0x1837   :  { %4724 = vmatpush3.bf16.xpose.msra.mxu0 %v2939_v61  ;;  %4725 = vmatprep.mubr.msk.bf16.mxu0 %vm5778_vm2, %v5776_v41 }
0x1838   :  { %4735 = vmatprep.subr.bf16.mxu0 %v5776_v41 }
0x183a   :  { %v2828_v59 = vpop.xlane.xlu0 %2827 }
0x183b   :  { %5160 = vrcp.f32 %v2828_v59 }
0x183e   :  { %v2884_v31 = vpop.permute.xlu0 %2883 }
0x183f   :  { %v2889_v56 = vsel %vm909_vm4, %v2884_v31, 0 }
0x1840   :  { %4718 = vmatpush3.bf16.msra.mxu1 %v2889_v56 }
0x1841   :  { %4729 = vmatprep.subr.bf16.mxu1 %v5776_v41 }
0x1842   :  { %v2932_v58 = vpop.permute.xlu0 %2931 }
0x1843   :  { %4726 = vmatmul.mubr.msk.bf16.vlgmr.msra.gmra.mrb[52].mxu0 %vm788_vm3, %v2932_v58 }
0x1844   :  { %4737 = vmatprep.mubr.msk.bf16.mxu0 %vm5778_vm2, %v5776_v41 }
0x1845   :  { %v5161_v60 = vpop.eup %5160 }
0x1846   :  { %v2832_v2 = vmul.f32 %v5161_v60, %v5157_v52 }
0x1848   :  { %v2834_v6 = vpack.c.bf16 %v2832_v2, %v2832_v2 }
0x184a   :  { %4720 = vmatmul.mubr.msk.bf16.vlgmr.msra.gmra.mrb[72].mxu1 %vm881_vm6, %v2834_v6 }
0x184b   :  { %4730 = vmatpush3.bf16.xpose.msra.mxu1 %v2989_v7  ;;  %4731 = vmatprep.mubr.msk.bf16.mxu1 %vm5778_vm2, %v5776_v41 }
0x184c   :  { %4741 = vmatprep.subr.bf16.mxu1 %v5776_v41 }
0x1852   :  { %4732 = vmatmul.mubr.msk.bf16.vlgmr.msra.gmra.mrb[76].mxu1 %vm788_vm3, %v2982_v8 }
0x1853   :  { %4743 = vmatprep.mubr.msk.bf16.mxu1 %vm5778_vm2, %v5776_v41 }
0x1909   :  { %v6433_v9 = vpop.f32.mrb[48].mxu0 }
0x190a   :  { %v4715_v10 = vpop.f32.mrb[49].mxu0 }
0x190b   :  { %v2880_v11 = vpop.f32.mrb[50].mxu0 }
0x190c   :  { %v4716_v13 = vpop.f32.mrb[51].mxu0 }
0x1916   :  { %v2975_v14 = vpop.f32.mrb[52].mxu0 }
0x1917   :  { %v2976_v15 = vadd.f32 %v2975_v14, %v6125_v30  ;;  %v4727_v16 = vpop.f32.mrb[53].mxu0 }
0x1918   :  { %v2978_v20 = vpop.f32.mrb[54].mxu0 }
0x1919   :  { %v4728_v21 = vpop.f32.mrb[55].mxu0  ;;  %v3031_v29 = vsel %vm881_vm6, %v2976_v15, -inf }
0x191a   :  { %3032 = vmax.xlane.f32.xlu0 %v3031_v29 }
0x191d   :  { %v6437_v32 = vpop.f32.mrb[72].mxu1 }
0x191e   :  { %v4923_v63 = vpack.i.bf16 %v6437_v32, %v6433_v9  ;;  %v4721_v35 = vpop.f32.mrb[73].mxu1 }
0x191f   :  { %v2928_v36 = vpop.f32.mrb[74].mxu1 }
0x1920   :  { %v4722_v39 = vpop.f32.mrb[75].mxu1 }
0x1925   :  { %v3025_v40 = vpop.f32.mrb[76].mxu1 }
0x1926   :  { %v3026_v42 = vadd.f32 %v3025_v40, %v6125_v30  ;;  %v4733_v43 = vpop.f32.mrb[77].mxu1 }
0x1927   :  { %v3028_v44 = vpop.f32.mrb[78].mxu1 }
0x1928   :  { %v4734_v26 = vpop.f32.mrb[79].mxu1  ;;  %v3034_v45 = vsel %vm881_vm6, %v3026_v42, -inf }
0x1929   :  { %3035 = vmax.xlane.f32.xlu1 %v3034_v45 }
0x193a   :  { %3055 = vrot.lane.b32.xlu1 %v6343_v37, %s5751_s28 }
0x193e   :  { %3153 = vrot.lane.b32.xlu1 %v6327_v25, %s5780_s18 }
0x1942   :  { %3203 = vrot.lane.b32.xlu1 %v6332_v3, %s5780_s18 }
0x1946   :  { %3201 = vrot.lane.b32.xlu1 %v6345_v38, %s5780_s18 }
0x19a7   :  { %v3033_v17 = vpop.xlane.xlu0 %3032 }
0x19a8   :  { %v3037_v46 = vsub.f32 %v2976_v15, %v3033_v17 }
0x19aa   :  { %v3039_v47 = vmul.f32 1.442695, %v3037_v46 }
0x19ac   :  { %5162 = vpow2.f32 %v3039_v47 }
0x19b6   :  { %v5163_v48 = vpop.eup %5162  ;;  %v3036_v49 = vpop.xlane.xlu1 %3035 }
0x19b7   :  { %v3038_v18 = vsub.f32 %v3026_v42, %v3036_v49  ;;  %v3043_v23 = vsel %vm881_vm6, %v5163_v48, 0.0 }
0x19b8   :  { %3044 = vadd.xlane.f32.xlu0 %v3043_v23 }
0x19b9   :  { %v3041_v50 = vmul.f32 1.442695, %v3038_v18 }
0x19ba   :  { %v3056_v51 = vpop.permute.xlu1 %3055 }
0x19bb   :  { %5164 = vpow2.f32 %v3041_v50  ;;  %v3061_v25 = vsel %vm909_vm4, %v3056_v51, 0 }
0x19bc   :  { %4736 = vmatpush3.bf16.msra.mxu0 %v3061_v25 }
0x19bd   :  { %4747 = vmatprep.subr.bf16.mxu0 %v5776_v41 }
0x19be   :  { %v3154_v54 = vpop.permute.xlu1 %3153 }
0x19bf   :  { %v3159_v12 = vsel %vm788_vm3, %v3154_v54, 0 }
0x19c2   :  { %v3204_v56 = vpop.permute.xlu1 %3203 }
0x19c3   :  { %v3209_v60 = vsel %vm788_vm3, %v3204_v56, 0 }
0x19c5   :  { %v5165_v3 = vpop.eup %5164 }
0x19c6   :  { %v3046_v38 = vsel %vm881_vm6, %v5165_v3, 0.0  ;;  %v3202_v2 = vpop.permute.xlu1 %3201 }
0x19c7   :  { %3047 = vadd.xlane.f32.xlu0 %v3046_v38 }
0x19dd   :  { %3103 = vrot.lane.b32.xlu0 %v6372_v57, %s5751_s28 }
0x19e1   :  { %3151 = vrot.lane.b32.xlu0 %v6334_v33, %s5780_s18 }
0x1a45   :  { %v3045_v27 = vpop.xlane.xlu0 %3044 }
0x1a46   :  { %5166 = vrcp.f32 %v3045_v27 }
0x1a50   :  { %v5167_v52 = vpop.eup %5166 }
0x1a51   :  { %v3051_v53 = vmul.f32 %v5167_v52, %v5163_v48 }
0x1a53   :  { %v3053_v55 = vpack.c.bf16 %v3051_v53, %v3051_v53 }
0x1a54   :  { %v3048_v62 = vpop.xlane.xlu0 %3047 }
0x1a55   :  { %5168 = vrcp.f32 %v3048_v62  ;;  %4738 = vmatmul.mubr.msk.bf16.vlgmr.msra.gmra.mrb[56].mxu0 %vm881_vm6, %v3053_v55 }
0x1a56   :  { %4748 = vmatpush3.bf16.xpose.msra.mxu0 %v3159_v12  ;;  %4749 = vmatprep.mubr.msk.bf16.mxu0 %vm5778_vm2, %v5776_v41 }
0x1a57   :  { %4759 = vmatprep.subr.bf16.mxu0 %v5776_v41 }
0x1a58   :  { %v3104_v24 = vpop.permute.xlu0 %3103 }
0x1a59   :  { %v3109_v33 = vsel %vm909_vm4, %v3104_v24, 0 }
0x1a5a   :  { %4742 = vmatpush3.bf16.msra.mxu1 %v3109_v33 }
0x1a5b   :  { %4753 = vmatprep.subr.bf16.mxu1 %v5776_v41 }
0x1a5c   :  { %v3152_v61 = vpop.permute.xlu0 %3151 }
0x1a5d   :  { %4750 = vmatmul.mubr.msk.bf16.vlgmr.msra.gmra.mrb[60].mxu0 %vm788_vm3, %v3152_v61 }
0x1a5e   :  { %4761 = vmatprep.mubr.msk.bf16.mxu0 %vm5778_vm2, %v5776_v41 }
0x1a5f   :  { %v5169_v59 = vpop.eup %5168 }
0x1a60   :  { %v3052_v31 = vmul.f32 %v5169_v59, %v5165_v3 }
0x1a62   :  { %v3054_v58 = vpack.c.bf16 %v3052_v31, %v3052_v31 }
0x1a64   :  { %4744 = vmatmul.mubr.msk.bf16.vlgmr.msra.gmra.mrb[80].mxu1 %vm881_vm6, %v3054_v58 }
0x1a65   :  { %4754 = vmatpush3.bf16.xpose.msra.mxu1 %v3209_v60  ;;  %4755 = vmatprep.mubr.msk.bf16.mxu1 %vm5778_vm2, %v5776_v41 }
0x1a66   :  { %4765 = vmatprep.subr.bf16.mxu1 %v5776_v41 }
0x1a6c   :  { %4756 = vmatmul.mubr.msk.bf16.vlgmr.msra.gmra.mrb[84].mxu1 %vm788_vm3, %v3202_v2 }
0x1a6d   :  { %4767 = vmatprep.mubr.msk.bf16.mxu1 %vm5778_vm2, %v5776_v41 }
0x1b28   :  { %v3097_v4 = vpop.f32.mrb[56].mxu0 }
0x1b29   :  { %v4739_v6 = vpop.f32.mrb[57].mxu0 }
0x1b2a   :  { %v3100_v7 = vpop.f32.mrb[58].mxu0 }
0x1b2b   :  { %v4740_v8 = vpop.f32.mrb[59].mxu0 }
0x1b30   :  { %v3195_v10 = vpop.f32.mrb[60].mxu0 }
0x1b31   :  { %v3196_v11 = vadd.f32 %v3195_v10, %v6125_v30  ;;  %v4751_v13 = vpop.f32.mrb[61].mxu0 }
0x1b32   :  { %v3198_v14 = vpop.f32.mrb[62].mxu0 }
0x1b33   :  { %v4752_v15 = vpop.f32.mrb[63].mxu0  ;;  %v3251_v16 = vsel %vm881_vm6, %v3196_v11, -inf }
0x1b34   :  { %3252 = vmax.xlane.f32.xlu0 %v3251_v16 }
0x1b37   :  { %v3145_v20 = vpop.f32.mrb[80].mxu1 }
0x1b38   :  { %v4928_v21 = vpack.i.bf16 %v3145_v20, %v3097_v4  ;;  %v4745_v29 = vpop.f32.mrb[81].mxu1 }
0x1b39   :  { %v3148_v35 = vpop.f32.mrb[82].mxu1 }
0x1b3a   :  { %v4746_v36 = vpop.f32.mrb[83].mxu1 }
0x1b3f   :  { %v3245_v39 = vpop.f32.mrb[84].mxu1 }
0x1b40   :  { %v3246_v40 = vadd.f32 %v3245_v39, %v6125_v30  ;;  %v4757_v42 = vpop.f32.mrb[85].mxu1 }
0x1b41   :  { %v3248_v43 = vpop.f32.mrb[86].mxu1 }
0x1b42   :  { %v4758_v44 = vpop.f32.mrb[87].mxu1  ;;  %v3254_v26 = vsel %vm881_vm6, %v3246_v40, -inf }
0x1b43   :  { %3255 = vmax.xlane.f32.xlu1 %v3254_v26  ;;  %v4246_v44 = vld [vmem:[#allocation26] ss:$0 sm:$0xff] }
0x1b54   :  { %3275 = vrot.lane.b32.xlu1 %v6343_v37, %s5780_s18 }
0x1b58   :  { %4924 = vrot.lane.b32.xlu1 %v4923_v63, %s5780_s18 }
0x1b5c   :  { %4929 = vrot.lane.b32.xlu1 %v4928_v21, %s5751_s28  ;;  %s6599_s28 = sld [smem:[#allocation57_spill]] }
0x1b62   :  { %v5050_v54 = vld [vmem:[%s6599_s28] sm:$0xff]   ;;  %v5051_v55 = vld [vmem:[%s6599_s28 + $0x8] sm:$0xff]   ;;  %v5052_v62 = vld [vmem:[%s6599_s28 + $0x10] sm:$0xff]  }
0x1b63   :  { %v5053_v12 = vld [vmem:[%s6599_s28 + $0x18] sm:$0xff]   ;;  %v5054_v24 = vld [vmem:[%s6599_s28 + $0x20] sm:$0xff]   ;;  %v5056_v33 = vld [vmem:[%s6599_s28 + $0x30] sm:$0xff]  }
0x1b64   :  { %v5057_v58 = vld [vmem:[%s6599_s28 + $0x38] sm:$0xff]  }
0x1bc1   :  { %v3253_v45 = vpop.xlane.xlu0 %3252 }
0x1bc2   :  { %v3257_v17 = vsub.f32 %v3196_v11, %v3253_v45 }
0x1bc4   :  { %v3259_v46 = vmul.f32 1.442695, %v3257_v17 }
0x1bc6   :  { %5170 = vpow2.f32 %v3259_v46 }
0x1bd0   :  { %v5171_v30 = vpop.eup %5170  ;;  %v3256_v47 = vpop.xlane.xlu1 %3255 }
0x1bd1   :  { %v3258_v48 = vsub.f32 %v3246_v40, %v3256_v47  ;;  %v3263_v49 = vsel %vm881_vm6, %v5171_v30, 0.0 }
0x1bd2   :  { %3264 = vadd.xlane.f32.xlu0 %v3263_v49  ;;  %v5060_v49 = vld [vmem:[#allocation31 + $0x4] ss:$8 sps:$4 sm:$0xff]  }
0x1bd3   :  { %v3261_v18 = vmul.f32 1.442695, %v3258_v48  ;;  %v5058_v48 = vld [vmem:[#allocation31] ss:$8 sps:$4 sm:$0xff]  }
0x1bd4   :  { %v3276_v23 = vpop.permute.xlu1 %3275 }
0x1bd5   :  { %5172 = vpow2.f32 %v3261_v18  ;;  %v3281_v37 = vsel %vm909_vm4, %v3276_v23, 0  ;;  %v5063_v18 = vld [vmem:[#allocation31 + $0x14] ss:$8 sps:$4 sm:$0xff]   ;;  %v5061_v23 = vld [vmem:[#allocation31 + $0x10] ss:$8 sps:$4 sm:$0xff]  }
0x1bd6   :  { %4760 = vmatpush3.bf16.msra.mxu0 %v3281_v37 }
0x1bd7   :  { %4771 = vmatprep.subr.bf16.mxu0 %v5776_v41 }
0x1bd8   :  { %v4925_v8 = vpop.permute.xlu1 %4924 }
0x1bd9   :  { %v4927_v11 = vunpack.i.h.bf16 %v4925_v8  ;;  %v4926_v13 = vunpack.i.l.bf16 %v4925_v8 }
0x1bdb   :  { %v3396_v20 = vsel %vm788_vm3, %v6395_v34, %v4927_v11  ;;  %v3395_v21 = vsel %vm788_vm3, %v6392_v19, %v4926_v13 }
0x1bdc   :  { %v4930_v10 = vpop.permute.xlu1 %4929 }
0x1bdd   :  { %v4932_v14 = vunpack.i.h.bf16 %v4930_v10  ;;  %v4931_v15 = vunpack.i.l.bf16 %v4930_v10 }
0x1bdf   :  { %v5173_v9 = vpop.eup %5172  ;;  %v3397_v36 = vsel %vm1685_vm7, %v3395_v21, %v4931_v15  ;;  %v3398_v39 = vsel %vm1685_vm7, %v3396_v20, %v4932_v14 }
0x1be0   :  { %v3266_v32 = vsel %vm881_vm6, %v5173_v9, 0.0 }
0x1be1   :  { %3267 = vadd.xlane.f32.xlu0 %v3266_v32 }
0x1bf7   :  { %3323 = vrot.lane.b32.xlu0 %v6372_v57, %s5780_s18 }
0x1c5f   :  { %v3265_v63 = vpop.xlane.xlu0 %3264 }
0x1c60   :  { %5174 = vrcp.f32 %v3265_v63 }
0x1c6a   :  { %v5175_v50 = vpop.eup %5174 }
0x1c6b   :  { %v3271_v51 = vmul.f32 %v5175_v50, %v5171_v30 }
0x1c6d   :  { %v3273_v25 = vpack.c.bf16 %v3271_v51, %v3271_v51 }
0x1c6e   :  { %v3268_v3 = vpop.xlane.xlu0 %3267 }
0x1c6f   :  { %5176 = vrcp.f32 %v3268_v3  ;;  %4762 = vmatmul.mubr.msk.bf16.vlgmr.msra.gmra.mrb[64].mxu0 %vm881_vm6, %v3273_v25  ;;  %v5066_v25 = vld [vmem:[#allocation31 + $0x24] ss:$8 sps:$4 sm:$0xff]   ;;  %v5064_v3 = vld [vmem:[#allocation31 + $0x20] ss:$8 sps:$4 sm:$0xff]  }
0x1c70   :  { %4787 = vmatprep.mubr.msk.bf16.mxu0 %vm5778_vm2, %v5776_v41  ;;  %4772 = vmatpush3.bf16.msra.mxu0 %v5050_v54  ;;  %v5073_v54 = vld [vmem:[#allocation31 + $0x50] ss:$8 sps:$4 sm:$0xff]  }
0x1c71   :  { %4773 = vmatprep.subr.bf16.mxu0 %v5776_v41 }
0x1c72   :  { %v3324_v38 = vpop.permute.xlu0 %3323 }
0x1c73   :  { %v3329_v27 = vsel %vm909_vm4, %v3324_v38, 0  ;;  %v5069_v38 = vld [vmem:[#allocation31 + $0x34] ss:$8 sps:$4 sm:$0xff]  }
0x1c74   :  { %4766 = vmatpush3.bf16.msra.mxu1 %v3329_v27  ;;  %4774 = vmatpush3.bf16.msra.mxu0 %v5051_v55  ;;  %v5067_v27 = vld [vmem:[#allocation31 + $0x30] ss:$8 sps:$4 sm:$0xff]   ;;  %v5078_v55 = vld [vmem:[#allocation31 + $0x64] ss:$8 sps:$4 sm:$0xff]  }
0x1c75   :  { %4775 = vmatprep.subr.bf16.mxu0 %v5776_v41  ;;  %3665 = vmatprep.subr.bf16.mxu1 %v5060_v49 }
0x1c78   :  { %4776 = vmatpush3.bf16.msra.mxu0 %v5052_v62  ;;  %v5076_v62 = vld [vmem:[#allocation31 + $0x60] ss:$8 sps:$4 sm:$0xff]  }
0x1c79   :  { %v5177_v57 = vpop.eup %5176  ;;  %4777 = vmatprep.subr.bf16.mxu0 %v5776_v41 }
0x1c7a   :  { %v3272_v52 = vmul.f32 %v5177_v57, %v5173_v9  ;;  %v5072_v57 = vld [vmem:[#allocation31 + $0x44] ss:$8 sps:$4 sm:$0xff]  }
0x1c7c   :  { %v3274_v53 = vpack.c.bf16 %v3272_v52, %v3272_v52  ;;  %4778 = vmatpush3.bf16.msra.mxu0 %v5053_v12  ;;  %v5070_v52 = vld [vmem:[#allocation31 + $0x40] ss:$8 sps:$4 sm:$0xff]   ;;  %v5081_v12 = vld [vmem:[#allocation31 + $0x74] ss:$8 sps:$4 sm:$0xff]  }
0x1c7d   :  { %4779 = vmatprep.subr.bf16.mxu0 %v5776_v41 }
0x1c7e   :  { %4768 = vmatmul.mubr.msk.bf16.vlgmr.msra.gmra.mrb[88].mxu1 %vm881_vm6, %v3274_v53  ;;  %v5075_v53 = vld [vmem:[#allocation31 + $0x54] ss:$8 sps:$4 sm:$0xff]  }
0x1c7f   :  { %3697 = vmatprep.mubr.bf16.mxu1 %v5775_v0  ;;  %v5055_v0 = vld [vmem:[%s6599_s28 + $0x28] sm:$0xff]   ;;  %3666 = vmatpush1.bf16.msra.mxu1 %v5058_v48 }
0x1c80   :  { %4780 = vmatpush3.bf16.msra.mxu0 %v5054_v24  ;;  %3667 = vmatprep.subr.bf16.mxu1 %v5063_v18  ;;  %v5079_v24 = vld [vmem:[#allocation31 + $0x70] ss:$8 sps:$4 sm:$0xff]  }
0x1c81   :  { %4781 = vmatprep.subr.bf16.mxu0 %v5776_v41 }
0x1c83   :  { %3668 = vmatpush1.bf16.msra.mxu1 %v5061_v23 }
0x1c84   :  { %4782 = vmatpush3.bf16.msra.mxu0 %v5055_v0  ;;  %3669 = vmatprep.subr.bf16.mxu1 %v5066_v25  ;;  %v5082_v0 = vld [vmem:[#allocation34 + $0x40] sm:$0xff]  }
0x1c85   :  { %4783 = vmatprep.subr.bf16.mxu0 %v5776_v41 }
0x1c87   :  { %3670 = vmatpush1.bf16.msra.mxu1 %v5064_v3 }
0x1c88   :  { %4784 = vmatpush3.bf16.msra.mxu0 %v5056_v33  ;;  %3671 = vmatprep.subr.bf16.mxu1 %v5069_v38  ;;  %v5083_v33 = vld [vmem:[#allocation34] sm:$0xff]  }
0x1c89   :  { %4785 = vmatprep.subr.bf16.mxu0 %v5776_v41 }
0x1c8b   :  { %3672 = vmatpush1.bf16.msra.mxu1 %v5067_v27 }
0x1c8c   :  { %4786 = vmatpush3.bf16.msra.mxu0 %v5057_v58  ;;  %3673 = vmatprep.subr.bf16.mxu1 %v5072_v57  ;;  %v5088_v58 = vld [vmem:[#allocation34 + $0x58] sm:$0xff]  }
0x1c8d   :  { %4453 = vmatprep.subr.bf16.mxu0 %v5082_v0 }
0x1c8f   :  { %3674 = vmatpush1.bf16.msra.mxu1 %v5070_v52 }
0x1c90   :  { %3675 = vmatprep.subr.bf16.mxu1 %v5075_v53 }
0x1c93   :  { %3676 = vmatpush1.bf16.msra.mxu1 %v5073_v54 }
0x1c94   :  { %3677 = vmatprep.subr.bf16.mxu1 %v5078_v55 }
0x1c97   :  { %3678 = vmatpush1.bf16.msra.mxu1 %v5076_v62 }
0x1c98   :  { %3679 = vmatprep.subr.bf16.mxu1 %v5081_v12  ;;  %v5098_v12 = vld [vmem:[%s5925_s5] sm:$0xff]  }
0x1c9b   :  { %3680 = vmatpush1.bf16.msra.mxu1 %v5079_v24  ;;  %v5099_v24 = vld [vmem:[%s5925_s5 + $0x8] sm:$0xff]  }
0x1c9c   :  { %4791 = vmatprep.subr.bf16.mxu1 %v5776_v41 }
0x1d42   :  { %v3317_v61 = vpop.f32.mrb[64].mxu0 }
0x1d43   :  { %v4763_v59 = vpop.f32.mrb[65].mxu0 }
0x1d44   :  { %v3320_v31 = vpop.f32.mrb[66].mxu0  ;;  %v5085_v59 = vld [vmem:[#allocation34 + $0x8] sm:$0xff]  }
0x1d45   :  { %v4764_v56 = vpop.f32.mrb[67].mxu0  ;;  %v5086_v31 = vld [vmem:[#allocation34 + $0x50] sm:$0xff]  }
0x1d46   :  { %v5087_v56 = vld [vmem:[#allocation34 + $0x10] sm:$0xff]  }
0x1d51   :  { %v3365_v60 = vpop.f32.mrb[88].mxu1 }
0x1d52   :  { %v4933_v2 = vpack.i.bf16 %v3365_v60, %v3317_v61  ;;  %v4769_v4 = vpop.f32.mrb[89].mxu1  ;;  %v5084_v61 = vld [vmem:[#allocation34 + $0x48] sm:$0xff]   ;;  %v5089_v60 = vld [vmem:[#allocation34 + $0x18] sm:$0xff]  }
0x1d53   :  { %v3368_v6 = vpop.f32.mrb[90].mxu1  ;;  %v5091_v4 = vld [vmem:[#allocation34 + $0x20] sm:$0xff]  }
0x1d54   :  { %4934 = vrot.lane.b32.xlu0 %v4933_v2, %s5779_s11  ;;  %v4770_v7 = vpop.f32.mrb[91].mxu1  ;;  %v5090_v2 = vld [vmem:[#allocation34 + $0x60] sm:$0xff]   ;;  %v5092_v6 = vld [vmem:[#allocation34 + $0x68] sm:$0xff]  }
0x1dc6   :  { %v4935_v16 = vpop.permute.xlu0 %4934 }
0x1dc7   :  { %v4937_v29 = vunpack.i.h.bf16 %v4935_v16  ;;  %v4936_v35 = vunpack.i.l.bf16 %v4935_v16  ;;  %v4255_v16 = vld [vmem:[#allocation28] ss:$0 sm:$0xff] }
0x1dc9   :  { %v3400_v40 = vsel %vm1688_vm8, %v3398_v39, %v4937_v29  ;;  %v3399_v42 = vsel %vm1688_vm8, %v3397_v36, %v4936_v35  ;;  %v4256_v36 = vld [vmem:[#allocation29] ss:$0 sm:$0xff] }
0x1dca   :  { %v3401_v43 = vpack.c.bf16 %v3400_v40, %v3399_v42 }
0x1dcc   :  { %4788 = vmatmul.mubr.bf16.vlgmr.msra.gmra.mrb[68].mxu0 %v3401_v43 }
0x1dcd   :  { %4454 = vmatpush3.bf16.msra.mxu0 %v5083_v33 }
0x1dce   :  { %4455 = vmatprep.subr.bf16.mxu0 %v5084_v61 }
0x1dd1   :  { %4456 = vmatpush3.bf16.msra.mxu0 %v5085_v59 }
0x1dd2   :  { %4457 = vmatprep.subr.bf16.mxu0 %v5086_v31 }
0x1dd5   :  { %4458 = vmatpush3.bf16.msra.mxu0 %v5087_v56 }
0x1dd6   :  { %4459 = vmatprep.subr.bf16.mxu0 %v5088_v58 }
0x1dd9   :  { %4460 = vmatpush3.bf16.msra.mxu0 %v5089_v60 }
0x1dda   :  { %4461 = vmatprep.subr.bf16.mxu0 %v5090_v2  ;;  %v5100_v2 = vld [vmem:[%s5925_s5 + $0x10] sm:$0xff]  }
0x1ddd   :  { %4462 = vmatpush3.bf16.msra.mxu0 %v5091_v4  ;;  %v5101_v4 = vld [vmem:[%s5925_s5 + $0x18] sm:$0xff]  }
0x1dde   :  { %4463 = vmatprep.subr.bf16.mxu0 %v5092_v6  ;;  %v5102_v6 = vld [vmem:[%s5925_s5 + $0x20] sm:$0xff]  }
0x1e9f   :  { %v3507_v26 = vpop.f32.mrb[68].mxu0 }
0x1ea0   :  { %v3508_v45 = vadd.f32 %v4246_v44, %v3507_v26  ;;  %v4789_v17 = vpop.f32.mrb[69].mxu0  ;;  %v5094_v26 = vld [vmem:[#allocation34 + $0x70] sm:$0xff]  }
0x1ea1   :  { %v3510_v34 = vpop.f32.mrb[70].mxu0  ;;  %v5096_v17 = vld [vmem:[#allocation34 + $0x78] sm:$0xff]  }
0x1ea2   :  { %v3511_v46 = vadd.f32 %v4246_v44, %v3510_v34  ;;  %v4790_v30 = vpop.f32.mrb[71].mxu0  ;;  %v3514_v19 = vadd.f32 %v3508_v45, %v6311_v22  ;;  %v5093_v44 = vld [vmem:[#allocation34 + $0x28] sm:$0xff]   ;;  %v5095_v45 = vld [vmem:[#allocation34 + $0x30] sm:$0xff]   ;;  %v5097_v34 = vld [vmem:[#allocation34 + $0x38] sm:$0xff]  }
0x1ea3   :  { %4464 = vmatpush3.bf16.msra.mxu0 %v5093_v44 }
0x1ea4   :  { %3518 = vadd.xlane.f32.xlu1 %v3514_v19  ;;  %v3515_v47 = vadd.f32 %v3511_v46, %v6313_v28  ;;  %4465 = vmatprep.subr.bf16.mxu0 %v5094_v26  ;;  %v3573_v46 = vld [vmem:[#allocation32] sm:$0x3] }
0x1ea5   :  { %v3578_v30 = vrot.slane %v3573_v46, %v6088_v5 }
0x1ea6   :  { %3520 = vadd.xlane.f32.xlu0 %v3515_v47 }
0x1ea7   :  { %4466 = vmatpush3.bf16.msra.mxu0 %v5095_v45  ;;  %v4292_v45 = vld [vmem:[%s5930_s30] ss:$0 sm:$0xff] }
0x1ea8   :  { %4467 = vmatprep.subr.bf16.mxu0 %v5096_v17 }
0x1eab   :  { %4468 = vmatpush3.bf16.msra.mxu0 %v5097_v34 }
0x1f31   :  { %v3519_v37 = vpop.xlane.xlu1 %3518 }
0x1f32   :  { %v3522_v9 = vmul.f32 0.0078125, %v3519_v37 }
0x1f33   :  { %v3521_v32 = vpop.xlane.xlu0 %3520 }
0x1f34   :  { %v6526_v63 = vsub.f32 %v3514_v19, %v3522_v9  ;;  %v3523_v50 = vmul.f32 0.0078125, %v3521_v32  ;;  %v3582_v19 = vrot.slane %v3573_v46, %v6083_v1  ;;  %v4273_v1 = vld [vmem:[#allocation35] ss:$0 sm:$0xff] }
0x1f36   :  { %v6528_v51 = vsub.f32 %v3515_v47, %v3523_v50  ;;  %v3526_v22 = vmul.f32 %v6526_v63, %v6526_v63 }
0x1f38   :  { %3528 = vadd.xlane.f32.xlu0 %v3526_v22  ;;  %v3527_v28 = vmul.f32 %v6528_v51, %v6528_v51 }
0x1f3a   :  { %3530 = vadd.xlane.f32.xlu1 %v3527_v28 }
0x1fc5   :  { %v3529_v7 = vpop.xlane.xlu0 %3528 }
0x1fc6   :  { %v3532_v8 = vmul.f32 0.0078125, %v3529_v7  ;;  %v5103_v7 = vld [vmem:[%s5925_s5 + $0x28] sm:$0xff]  }
0x1fc7   :  { %v3531_v10 = vpop.xlane.xlu1 %3530 }
0x1fc8   :  { %v3534_v11 = vadd.f32 1e-05, %v3532_v8  ;;  %v3533_v13 = vmul.f32 0.0078125, %v3531_v10  ;;  %v5104_v8 = vld [vmem:[%s5925_s5 + $0x30] sm:$0xff]   ;;  %v5105_v10 = vld [vmem:[%s5925_s5 + $0x38] sm:$0xff]   ;;  %s5781_s5 = smov [#allocation37]  }
0x1fc9   :  { %s4052_s23 = sshll.u32 %s5781_s5, 4  ;;  %s4053_s23 = int_to_ptr.vmem [resolvable:$true] %s4052_s23 }
0x1fca   :  { %5178 = vrsqrt.f32 %v3534_v11  ;;  %v3535_v14 = vadd.f32 1e-05, %v3533_v13  ;;  %s5670_s24 = scalar_lea.vmem %s4053_s23, 256  ;;  %p5675_p9 = scmp.lt.s32.totalorder %s4053_s23, %s4053_s23 }
0x1fcb   :  { %p5671_p8 = scmp.ne.s32.totalorder %s4053_s23, %s5670_s24  ;;  %p5676_p10 = scmp.lt.s32.totalorder %s5670_s24, %s5670_s24 }
0x1fcc   :  { %5180 = vrsqrt.f32 %v3535_v14 }
0x1fcd   :  { %p5677_p11 = por %p5676_p10, %p5675_p9 }
0x1fcf   :  { %p5678_p12 = pnand %p5677_p11, %p5671_p8 }
0x1fd4   :  { %v5179_v15 = vpop.eup %5178 }
0x1fd5   :  { %v3538_v20 = vmul.f32 %v5179_v15, %v6526_v63 }
0x1fd6   :  { %v5181_v21 = vpop.eup %5180 }
0x1fd7   :  { %v3539_v29 = vmul.f32 %v5181_v21, %v6528_v51  ;;  %v3546_v35 = vmul.f32 %v4255_v16, %v3538_v20 }
0x1fd9   :  { %v3547_v39 = vmul.f32 %v4255_v16, %v3539_v29  ;;  %v3554_v40 = vadd.f32 %v4256_v36, %v3546_v35  ;;  %v4290_v29 = vld [vmem:[%s6600_s29] ss:$0 sm:$0xff] }
0x1fdb   :  { %v3555_v42 = vadd.f32 %v4256_v36, %v3547_v39 }
0x1fdd   :  { %v3556_v43 = vpack.c.bf16 %v3555_v42, %v3554_v40 }
0x1fdf   :  { %3698 = vmatmul.mubr.bf16.vlgmr.msra.gmra.mrb[92].mxu1 %v3556_v43 }
0x1fe0   :  { %4807 = vmatprep.mubr.msk.bf16.mxu1 %vm5778_vm2, %v5776_v41  ;;  %4792 = vmatpush3.bf16.msra.mxu1 %v5098_v12 }
0x1fe1   :  { %4793 = vmatprep.subr.bf16.mxu1 %v5776_v41 }
0x1fe4   :  { %4794 = vmatpush3.bf16.msra.mxu1 %v5099_v24 }
0x1fe5   :  { %4795 = vmatprep.subr.bf16.mxu1 %v5776_v41 }
0x1fe8   :  { %4796 = vmatpush3.bf16.msra.mxu1 %v5100_v2 }
0x1fe9   :  { %4797 = vmatprep.subr.bf16.mxu1 %v5776_v41 }
0x1fec   :  { %4798 = vmatpush3.bf16.msra.mxu1 %v5101_v4 }
0x1fed   :  { %4799 = vmatprep.subr.bf16.mxu1 %v5776_v41 }
0x1ff0   :  { %4800 = vmatpush3.bf16.msra.mxu1 %v5102_v6 }
0x1ff1   :  { %4801 = vmatprep.subr.bf16.mxu1 %v5776_v41 }
0x1ff4   :  { %4802 = vmatpush3.bf16.msra.mxu1 %v5103_v7 }
0x1ff5   :  { %4803 = vmatprep.subr.bf16.mxu1 %v5776_v41 }
0x1ff8   :  { %4804 = vmatpush3.bf16.msra.mxu1 %v5104_v8 }
0x1ff9   :  { %4805 = vmatprep.subr.bf16.mxu1 %v5776_v41 }
0x1ffc   :  { %4806 = vmatpush3.bf16.msra.mxu1 %v5105_v10 }
0x20b2   :  { %v3699_v47 = vpop.f32.mrb[92].mxu1 }
0x20b3   :  { %v3700_v48 = vadd.f32 %v3699_v47, %v3578_v30  ;;  %v3701_v49 = vpop.f32.mrb[93].mxu1 }
0x20b4   :  { %v3702_v18 = vadd.f32 %v3701_v49, %v3582_v19  ;;  %v3703_v23 = vpop.f32.mrb[94].mxu1 }
0x20b5   :  { %v3704_v37 = vadd.f32 %v3703_v23, %v3578_v30  ;;  %v3705_v9 = vpop.f32.mrb[95].mxu1  ;;  %v3708_v63 = vmax.f32 %v3700_v48, 0.0 }
0x20b6   :  { %v3706_v32 = vadd.f32 %v3705_v9, %v3582_v19  ;;  %v3709_v51 = vmax.f32 %v3702_v18, 0.0 }
0x20b7   :  { %v3710_v50 = vmax.f32 %v3704_v37, 0.0 }
0x20b8   :  { %v3711_v22 = vmax.f32 %v3706_v32, 0.0 }
0x20b9   :  { %v3712_v28 = vpack.c.bf16 %v3710_v50, %v3708_v63 }
0x20ba   :  { %v3713_v25 = vpack.c.bf16 %v3711_v22, %v3709_v51 }
0x20bc   :  { %3881 = vmatprep.mubr.bf16.mxu0 %v3713_v25 }
0x20bd   :  { %3882 = vmatmul.mubr.bf16.vlgmr.msra.gmra.mrb[72].mxu0 %v3712_v28 }
0x2190   :  { %v4469_v5 = vpop.f32.mrb[72].mxu0 }
0x2191   :  { %v4470_v3 = vpop.f32.mrb[73].mxu0 }
0x2192   :  { %v4471_v38 = vadd.f32 %v4470_v3, %v4469_v5  ;;  %v4472_v27 = vpop.f32.mrb[74].mxu0 }
0x2193   :  { %v4473_v57 = vpop.f32.mrb[75].mxu0 }
0x2194   :  { %v3884_v52 = vadd.f32 %v4471_v38, %v4273_v1  ;;  %v4474_v53 = vadd.f32 %v4473_v57, %v4472_v27 }
0x2196   :  { %v3887_v54 = vadd.f32 %v4474_v53, %v4273_v1  ;;  %v3890_v55 = vadd.f32 %v3884_v52, %v3554_v40 }
0x2198   :  { %3894 = vadd.xlane.f32.xlu0 %v3890_v55  ;;  %v3891_v62 = vadd.f32 %v3887_v54, %v3555_v42  ;;  %v4291_v42 = vld [vmem:[%s5920_s19] ss:$0 sm:$0xff] }
0x219a   :  { %3896 = vadd.xlane.f32.xlu1 %v3891_v62 }
0x2225   :  { %v3895_v0 = vpop.xlane.xlu0 %3894 }
0x2226   :  { %v3898_v33 = vmul.f32 0.0078125, %v3895_v0 }
0x2227   :  { %v3897_v61 = vpop.xlane.xlu1 %3896 }
0x2228   :  { %v3900_v59 = vsub.f32 %v3890_v55, %v3898_v33  ;;  %v3899_v31 = vmul.f32 0.0078125, %v3897_v61 }
0x222a   :  { %v3901_v56 = vsub.f32 %v3891_v62, %v3899_v31  ;;  %v3902_v58 = vmul.f32 %v3900_v59, %v3900_v59 }
0x222c   :  { %3904 = vadd.xlane.f32.xlu0 %v3902_v58  ;;  %v3903_v60 = vmul.f32 %v3901_v56, %v3901_v56 }
0x222e   :  { %3906 = vadd.xlane.f32.xlu1 %v3903_v60 }
0x22b9   :  { %v3905_v11 = vpop.xlane.xlu0 %3904 }
0x22ba   :  { %v3908_v13 = vmul.f32 0.0078125, %v3905_v11 }
0x22bb   :  { %v3907_v14 = vpop.xlane.xlu1 %3906 }
0x22bc   :  { %v3910_v15 = vadd.f32 1e-05, %v3908_v13  ;;  %v3909_v16 = vmul.f32 0.0078125, %v3907_v14 }
0x22be   :  { %5182 = vrsqrt.f32 %v3910_v15  ;;  %v3911_v20 = vadd.f32 1e-05, %v3909_v16 }
0x22c0   :  { %5184 = vrsqrt.f32 %v3911_v20 }
0x22c8   :  { %v5183_v21 = vpop.eup %5182 }
0x22c9   :  { %v3914_v35 = vmul.f32 %v5183_v21, %v3900_v59 }
0x22ca   :  { %v5185_v36 = vpop.eup %5184 }
0x22cb   :  { %v3915_v39 = vmul.f32 %v5185_v36, %v3901_v56  ;;  %v3922_v40 = vmul.f32 %v4290_v29, %v3914_v35 }
0x22cd   :  { %v3923_v43 = vmul.f32 %v4290_v29, %v3915_v39  ;;  %v3930_v41 = vadd.f32 %v4291_v42, %v3922_v40 }
0x22cf   :  { %v3931_v44 = vadd.f32 %v4291_v42, %v3923_v43 }
0x22d1   :  { %v3932_v26 = vpack.c.bf16 %v3931_v44, %v3930_v41 }
0x22d3   :  { %4808 = vmatmul.mubr.bf16.vlgmr.msra.gmra.mrb[96].mxu1 %v3932_v26 }
0x23a6   :  { %v4038_v17 = vpop.f32.mrb[96].mxu1 }
0x23a7   :  { %v4039_v34 = vadd.f32 %v4292_v45, %v4038_v17  ;;  %v4809_v46 = vpop.f32.mrb[97].mxu1 }
0x23a8   :  { %v4041_v30 = vpop.f32.mrb[98].mxu1 }
0x23a9   :  { %4045 = vst [vmem:[#allocation37] sm:$0xff] %v4039_v34  ;;  %v4042_v19 = vadd.f32 %v4292_v45, %v4041_v30  ;;  %v4810_v47 = vpop.f32.mrb[99].mxu1 }
0x23ab   :  { %4046 = vst [vmem:[#allocation37 + $0x8] sm:$0xff] %v4042_v19 }
0x23ac   :  { %5681 = shalt.err (!%p5678_p12)
}
0x23ad   :  { %s5682_s19 = scalar_lea.hbm %s5935_s4, 256 }
0x23ae   :  { %p5683_p13 = scmp.ne.s32.totalorder %s5935_s4, %s5682_s19  ;;  %p5686_p0 = scmp.lt.u32.totalorder %s5682_s19, %s5935_s4 }
0x23b0   :  { %p5688_p1 = pnand %p5686_p0, %p5683_p13 }
0x23b2   :  { %5691 = shalt.err (!%p5688_p1)
}
0x23b3   :  { %4058 = dma.vmem_to_hbm [thread:$0]  %s4053_s23, 256, %s5935_s4, [#allocation4], %s5756_s1, %s5756_s1, %s5757_s3  }
0x23b4   :  { %5716 = dma.done.wait [#allocation4], 256  }
0x23b5   :  { %5717 = vsyncadd [#allocation4], 4294967040 }
0x23b6   :  { %4062 = vsyncpa [#allocation3], 1 }
0x23b7   :  { %4063 = vsyncpa [#allocation6], 1 }
0x23b8   :  { %4064 = vsyncpa [#allocation9], 1 }
0x23b9   :  { %4065 = vsyncpa [#allocation12], 1 }
0x23ba   :  { %4066 = vsyncpa [#allocation15], 1 }
0x23bb   :  { %4067 = vsyncpa [#allocation18], 1 }
0x23bc   :  { %4068 = vsyncpa [#allocation21], 1 }
0x23bd   :  { %4069 = vsyncpa [#allocation24], 1 }
0x23be   :  { %4070 = vsyncpa [#allocation27], 1 }
0x23bf   :  { %4071 = vsyncpa [#allocation30], 1 }
0x23c0   :  { %4072 = vsyncpa [#allocation33], 1 }
0x23c1   :  { %4073 = vsyncpa [#allocation36], 1 }
0x23c2   :  { %4074 = vsyncpa [#allocation4], 1 }

</bundles_post_ra>
